<compile_context>
chip_gen: v7x
topology: tpu7x:2x2x1
jax: 0.10.0
libtpu: 0.0.40
codegen_flags: <defaults>
</compile_context>

<pallas_src>
import numpy as np
import jax
import jax.numpy as jnp
from jax import lax
from jax.experimental import pallas as pl
from jax.experimental.pallas import tpu as pltpu


def _make_outconv_kernel(NB, Cin, T, TH, RS, W, W2, out_no, kh, kw,
                         ph_of_dh, off_dh, pw_of_dw, off_dw, wgroups, has_halo):
    """Fused polyphase deconv + temporal-mix + sigmoid_256 kernel."""
    n_strips = TH // RS
    g_of_dw = [wgroups.index((pw_of_dw[dw], off_dw[dw])) for dw in range(kw)]
    nG = len(wgroups)
    need_off1 = any(o == 1 for o in off_dh)
    f32 = jnp.float32

    def widx(c, ci, ti, dh, dw):
        return (((c * Cin + ci) * T + ti) * kh + dh) * kw + dw

    def kernel(*refs):
        if has_halo:
            x_ref, h_ref, w_ref, b_ref, o_ref = refs
            # Zero the halo row on the last row tile: that input row lies
            # outside the image (it is the transposed-conv zero padding).
            last = pl.program_id(1) == pl.num_programs(1) - 1
            halo_scale = jnp.where(last, 0.0, 1.0).astype(f32)
        else:
            x_ref, w_ref, b_ref, o_ref = refs

        for nb in range(NB):
            for s in range(n_strips):
                s0 = s * RS
                is_final = (s0 + RS) == TH

                # source-column-aligned accumulators acc[c][ph][g] : (RS, W) f32
                acc = [[[None] * nG for _ in range(2)] for _ in range(out_no)]

                for ci in range(Cin):
                    for ti in range(T):
                        # row-offset source slabs, read straight from the ref
                        slabs = {0: x_ref[nb, ci, ti, s0:s0 + RS, :].astype(f32)}
                        if need_off1:
                            if not is_final:
                                slabs[1] = x_ref[nb, ci, ti,
                                                 s0 + 1:s0 + 1 + RS, :].astype(f32)
                            else:
                                top = x_ref[nb, ci, ti, s0 + 1:TH, :].astype(f32)
                                if has_halo:
                                    hrow = (h_ref[nb, ci, ti, 0:1, :].astype(f32)
                                            * halo_scale)
                                else:
                                    hrow = jnp.zeros((1, W), f32)
                                slabs[1] = jnp.concatenate([top, hrow], axis=0)
                        for dh in range(kh):
                            slab = slabs[off_dh[dh]]
                            ph = ph_of_dh[dh]
                            for dw in range(kw):
                                g = g_of_dw[dw]
                                for c in range(out_no):
                                    w = w_ref[widx(c, ci, ti, dh, dw)]
                                    a = acc[c][ph][g]
                                    acc[c][ph][g] = (w * slab if a is None
                                                     else a + w * slab)

                # epilogue: combine W-groups (+1-column taps shifted once),
                # add bias, sigmoid_256, store each phase plane directly.
                for c in range(out_no):
                    bias = b_ref[c]
                    for ph in range(2):
                        for pw in range(2):
                            plane = None
                            for g, (pw_g, offw) in enumerate(wgroups):
                                a = acc[c][ph][g]
                                if pw_g != pw or a is None:
                                    continue
                                if offw > 0:
                                    a = jnp.concatenate(
                                        [a[:, offw:],
                                         jnp.zeros((RS, offw), f32)], axis=1)
                                a = a[:, :W2]
                                plane = a if plane is None else plane + a
                            if plane is None:
                                plane = jnp.zeros((RS, W2), f32)
                            val = 256.0 * jax.nn.sigmoid(plane + bias)
                            o_ref[nb, c * 4 + ph * 2 + pw, s0:s0 + RS, :] = \
                                val.astype(o_ref.dtype)

    return kernel


def outconv_forward(x, up_w, up_b, conv_w, conv_b, *, stride=2, padding_t=1,
                    padding=1, out_pad_t=1, out_pad=1, row_tile=None,
                    batch_block=None):
    """Pallas implementation of OutConv.forward (bilinear=False path)."""
    N, Cin, T, H, W = x.shape
    Cin_w, Cout, kt, kh, kw = up_w.shape
    assert Cin_w == Cin and Cout == 1, "squeeze(1) requires out_channels == 1"
    assert stride == 2, "module hardcodes stride=2"
    out_no, in_no = conv_w.shape[0], conv_w.shape[1]

    T_out = (T - 1) * stride - 2 * padding_t + kt + out_pad_t
    H_out = (H - 1) * stride - 2 * padding + kh + out_pad
    W_out = (W - 1) * stride - 2 * padding + kw + out_pad
    assert T_out == in_no, "Conv2d(in_no,...) consumes the upsampled time axis"
    assert H_out % 2 == 0 and W_out % 2 == 0
    H2, W2 = H_out // 2, W_out // 2

    # ---- host glue (tiny): fold the temporal 1x1 conv into the deconv weights
    # Wcomb[c,ci,ti,dh,dw] = sum_{t_o} wc[c,t_o] * wt[ci, t_o - 2*ti + pt, dh, dw]
    wc = conv_w.reshape(out_no, in_no).astype(jnp.float32)      # (c, t_o)
    wt = up_w[:, 0].astype(jnp.float32)                         # (ci, kt, kh, kw)
    M = np.zeros((T, kt, T_out), np.float32)
    for ti in range(T):
        for dt in range(kt):
            t_o = stride * ti - padding_t + dt
            if 0 <= t_o < T_out:
                M[ti, dt, t_o] = 1.0
    wcomb = jnp.einsum("co,tdo,idhw->cithw", wc, jnp.asarray(M), wt,
                       precision=lax.Precision.HIGHEST)
    w_flat = wcomb.reshape(-1)
    b_comb = (conv_b.reshape(out_no).astype(jnp.float32)
              + up_b.reshape(1).astype(jnp.float32)[0] * jnp.sum(wc, axis=1))

    # ---- polyphase tap tables (stride 2): each tap hits exactly one parity --
    ph_of_dh = [(dh + padding) % 2 for dh in range(kh)]
    off_dh = [(ph_of_dh[dh] + padding - dh) // 2 for dh in range(kh)]
    pw_of_dw = [(dw + padding) % 2 for dw in range(kw)]
    off_dw = [(pw_of_dw[dw] + padding - dw) // 2 for dw in range(kw)]

    # TODO(synk): generalized halo/masking for other kernel/padding combos.
    assert H2 == H and W2 == W, "only odd k with padding=(k-1)/2 is supported"
    assert 0 <= min(off_dh) and max(off_dh) <= 1
    assert 0 <= min(off_dw) and max(off_dw) <= 1
    wgroups = sorted(set(zip(pw_of_dw, off_dw)))

    # ---- tiling: H2 row tiles, in-kernel register strips, batch blocks ------
    if row_tile is None:
        row_tile = 64                       # keeps blocks small on v7x (64 MiB VMEM)
    TH = H2
    if H2 % 8 == 0:
        start = max(8, (min(row_tile, H2) // 8) * 8)
        for t in range(start, 7, -8):
            if H2 % t == 0:
                TH = t
                break
    R = H2 // TH

    if TH % 8 == 0 and TH > 8:
        RS = 8
        for cand in (32, 16, 8):
            if TH % cand == 0 and cand * W * 4 <= 16384:
                RS = cand
                break
    else:
        RS = TH

    has_halo = (R > 1) and (max(off_dh) >= 1)

    itemsize = jnp.dtype(x.dtype).itemsize
    if batch_block is None:
        per = Cin * T * TH * W * itemsize
        NB = 1
        for cand in range(N, 0, -1):
            if N % cand == 0 and cand * per <= 2 * 1024 * 1024:
                NB = cand
                break
    else:
        NB = batch_block
        assert N % NB == 0

    kernel = _make_outconv_kernel(NB, Cin, T, TH, RS, W, W2, out_no, kh, kw,
                                  ph_of_dh, off_dh, pw_of_dw, off_dw,
                                  wgroups, has_halo)

    in_specs = [pl.BlockSpec((NB, Cin, T, TH, W), lambda b, r: (b, 0, 0, r, 0))]
    args = [x]
    if has_halo:
        thb = TH // 8
        nhb = max(1, H // 8)
        in_specs.append(pl.BlockSpec(
            (NB, Cin, T, 8, W),
            lambda b, r: (b, 0, 0, jnp.minimum((r + 1) * thb, nhb - 1), 0)))
        args.append(x)                      # same array, small 8-row halo window
    in_specs += [pl.BlockSpec(memory_space=pltpu.MemorySpace.SMEM),  # weights
                 pl.BlockSpec(memory_space=pltpu.MemorySpace.SMEM)]  # bias
    args += [w_flat, b_comb]

    out_specs = pl.BlockSpec((NB, out_no * 4, TH, W2), lambda b, r: (b, 0, r, 0))

    # VMEM budget (double-buffered blocks); raise the scoped limit only if needed.
    in_bytes = NB * Cin * T * TH * W * itemsize
    halo_bytes = NB * Cin * T * 8 * W * itemsize if has_halo else 0
    out_bytes = NB * out_no * 4 * TH * W2 * 4
    need = 2 * (in_bytes + halo_bytes + out_bytes)
    cp = dict(dimension_semantics=("parallel", "parallel"))
    if need > 24 * 1024 * 1024:
        cp["vmem_limit_bytes"] = int(min(need * 2, 120 * 1024 * 1024))

    phased = pl.pallas_call(
        kernel,
        out_shape=jax.ShapeDtypeStruct((N, out_no * 4, H2, W2), jnp.float32),
        grid=(N // NB, R),
        in_specs=in_specs,
        out_specs=out_specs,
        compiler_params=pltpu.CompilerParams(**cp),
    )(*args)

    # Layout plumbing in the wrapper (cheap XLA op): interleave the 2x2 phases.
    out = phased.reshape(N, out_no, 2, 2, H2, W2)
    out = out.transpose(0, 1, 4, 2, 5, 3).reshape(N, out_no, H_out, W_out)
    return out


def outconv_reference(x, up_w, up_b, conv_w, conv_b, *, stride=2,
                      padding_t=1, padding=1, out_pad_t=1, out_pad=1):
    """Pure-JAX reference (XLA conv) for correctness checking."""
    Cin, Cout, kt, kh, kw = up_w.shape
    w_oi = jnp.transpose(up_w[:, :, ::-1, ::-1, ::-1], (1, 0, 2, 3, 4))
    pad = [(kt - 1 - padding_t, kt - 1 - padding_t + out_pad_t),
           (kh - 1 - padding, kh - 1 - padding + out_pad),
           (kw - 1 - padding, kw - 1 - padding + out_pad)]
    y = lax.conv_general_dilated(
        x.astype(jnp.float32), w_oi.astype(jnp.float32),
        window_strides=(1, 1, 1), padding=pad,
        lhs_dilation=(stride, stride, stride),
        dimension_numbers=("NCDHW", "OIDHW", "NCDHW"),
        precision=lax.Precision.HIGHEST)
    y = y + up_b.reshape(1, -1, 1, 1, 1)
    y = y[:, 0]                                   # x.squeeze(1)
    wcm = conv_w.reshape(conv_w.shape[0], conv_w.shape[1])
    z = jnp.einsum("ct,nthw->nchw", wcm, y,
                   precision=lax.Precision.HIGHEST) + conv_b.reshape(1, -1, 1, 1)
    return 256.0 * jax.nn.sigmoid(z)


if __name__ == "__main__":
    # Synthetic "args": krnl_size_t=krnl_size=3, padding_t=padding=1,
    # in_no even -> output_padding_t=1, img_type='greyscale'.
    key = jax.random.PRNGKey(0)

    def run_case(case_key, N, Cin, T, H, W, in_no, out_no, **fwd_kwargs):
        k1, k2, k3, k4, k5 = jax.random.split(case_key, 5)
        kt = khw = 3
        x = jax.random.normal(k1, (N, Cin, T, H, W), jnp.float32)
        up_w = jax.random.normal(k2, (Cin, 1, kt, khw, khw), jnp.float32) * 0.2
        up_b = jax.random.normal(k3, (1,), jnp.float32) * 0.1
        conv_w = jax.random.normal(k4, (out_no, in_no, 1, 1), jnp.float32) * 0.2
        conv_b = jax.random.normal(k5, (out_no,), jnp.float32) * 0.1

        out = outconv_forward(x, up_w, up_b, conv_w, conv_b, **fwd_kwargs)
        out = jax.block_until_ready(out)
        ref = outconv_reference(x, up_w, up_b, conv_w, conv_b)
        assert out.shape == (N, out_no, 2 * H, 2 * W), out.shape
        max_err = float(jnp.max(jnp.abs(out - ref)))
        assert jnp.allclose(out, ref, rtol=1e-4, atol=1e-2), max_err

    k1, k2 = jax.random.split(key)
    # Case 1: module-like small shape (single row tile, batch-blocked).
    run_case(k1, N=2, Cin=4, T=4, H=16, W=16, in_no=8, out_no=1)
    # Case 2: exercises the row-tiled path with the 8-row halo BlockSpec
    # (H2 = 48 split into 3 tiles of 16 rows).
    run_case(k2, N=1, Cin=3, T=4, H=48, W=32, in_no=8, out_no=1, row_tile=16)

    print("KERNEL_OK")
</pallas_src>

<mosaic_0001>
module attributes {stable_mosaic.version = 11 : i64} {
  func.func @kernel(%arg0: i32, %arg1: i32, %arg2: memref<2x4x4x16x16xf32, #tpu.memory_space<vmem>>, %arg3: memref<144xf32, #tpu.memory_space<smem>>, %arg4: memref<1xf32, #tpu.memory_space<smem>>, %arg5: memref<2x4x16x16xf32, #tpu.memory_space<vmem>>) attributes {dimension_semantics = [#tpu.dimension_semantics<parallel>, #tpu.dimension_semantics<parallel>], iteration_bounds = array<i64: 1, 1>, scalar_prefetch = 0 : i64, scratch_operands = 0 : i64, tpu.core_type = #tpu.core_type<tc>, window_params = [{transform_indices = @transform_0, window_bounds = array<i64: 2, 4, 4, 16, 16>}, {transform_indices = @transform_1, window_bounds = array<i64: 144>}, {transform_indices = @transform_2, window_bounds = array<i64: 1>}, {transform_indices = @transform_3, window_bounds = array<i64: 2, 4, 16, 16>}]} {
    %c0 = arith.constant 0 : index
    %c0_0 = arith.constant 0 : index
    %c0_1 = arith.constant 0 : index
    %c0_2 = arith.constant 0 : index
    %c0_3 = arith.constant 0 : index
    %0 = vector.load %arg2[%c0, %c0_0, %c0_1, %c0_2, %c0_3] : memref<2x4x4x16x16xf32, #tpu.memory_space<vmem>>, vector<1x1x1x16x16xf32>
    %1 = vector.shape_cast %0 : vector<1x1x1x16x16xf32> to vector<16x16xf32>
    %c0_4 = arith.constant 0 : index
    %c0_5 = arith.constant 0 : index
    %c0_6 = arith.constant 0 : index
    %c1 = arith.constant 1 : index
    %c0_7 = arith.constant 0 : index
    %2 = vector.load %arg2[%c0_4, %c0_5, %c0_6, %c1, %c0_7] : memref<2x4x4x16x16xf32, #tpu.memory_space<vmem>>, vector<1x1x1x15x16xf32>
    %3 = vector.shape_cast %2 : vector<1x1x1x15x16xf32> to vector<15x16xf32>
    %cst = arith.constant 0.000000e+00 : f32
    %4 = vector.broadcast %cst : f32 to vector<1x16xf32>
    %5 = tpu.concatenate %3, %4 in 0 : vector<15x16xf32>, vector<1x16xf32> -> vector<16x16xf32>
    %c0_8 = arith.constant 0 : index
    %6 = memref.load %arg3[%c0_8] : memref<144xf32, #tpu.memory_space<smem>>
    %7 = vector.broadcast %6 : f32 to vector<16x16xf32>
    %8 = arith.mulf %7, %5 : vector<16x16xf32>
    %c1_9 = arith.constant 1 : index
    %9 = memref.load %arg3[%c1_9] : memref<144xf32, #tpu.memory_space<smem>>
    %10 = vector.broadcast %9 : f32 to vector<16x16xf32>
    %11 = arith.mulf %10, %5 : vector<16x16xf32>
    %c2 = arith.constant 2 : index
    %12 = memref.load %arg3[%c2] : memref<144xf32, #tpu.memory_space<smem>>
    %13 = vector.broadcast %12 : f32 to vector<16x16xf32>
    %14 = arith.mulf %13, %5 : vector<16x16xf32>
    %c3 = arith.constant 3 : index
    %15 = memref.load %arg3[%c3] : memref<144xf32, #tpu.memory_space<smem>>
    %16 = vector.broadcast %15 : f32 to vector<16x16xf32>
    %17 = arith.mulf %16, %1 : vector<16x16xf32>
    %c4 = arith.constant 4 : index
    %18 = memref.load %arg3[%c4] : memref<144xf32, #tpu.memory_space<smem>>
    %19 = vector.broadcast %18 : f32 to vector<16x16xf32>
    %20 = arith.mulf %19, %1 : vector<16x16xf32>
    %c5 = arith.constant 5 : index
    %21 = memref.load %arg3[%c5] : memref<144xf32, #tpu.memory_space<smem>>
    %22 = vector.broadcast %21 : f32 to vector<16x16xf32>
    %23 = arith.mulf %22, %1 : vector<16x16xf32>
    %c6 = arith.constant 6 : index
    %24 = memref.load %arg3[%c6] : memref<144xf32, #tpu.memory_space<smem>>
    %25 = vector.broadcast %24 : f32 to vector<16x16xf32>
    %26 = arith.mulf %25, %1 : vector<16x16xf32>
    %27 = arith.addf %8, %26 : vector<16x16xf32>
    %c7 = arith.constant 7 : index
    %28 = memref.load %arg3[%c7] : memref<144xf32, #tpu.memory_space<smem>>
    %29 = vector.broadcast %28 : f32 to vector<16x16xf32>
    %30 = arith.mulf %29, %1 : vector<16x16xf32>
    %31 = arith.addf %11, %30 : vector<16x16xf32>
    %c8 = arith.constant 8 : index
    %32 = memref.load %arg3[%c8] : memref<144xf32, #tpu.memory_space<smem>>
    %33 = vector.broadcast %32 : f32 to vector<16x16xf32>
    %34 = arith.mulf %33, %1 : vector<16x16xf32>
    %35 = arith.addf %14, %34 : vector<16x16xf32>
    %c0_10 = arith.constant 0 : index
    %c0_11 = arith.constant 0 : index
    %c1_12 = arith.constant 1 : index
    %c0_13 = arith.constant 0 : index
    %c0_14 = arith.constant 0 : index
    %36 = vector.load %arg2[%c0_10, %c0_11, %c1_12, %c0_13, %c0_14] : memref<2x4x4x16x16xf32, #tpu.memory_space<vmem>>, vector<1x1x1x16x16xf32>
    %37 = vector.shape_cast %36 : vector<1x1x1x16x16xf32> to vector<16x16xf32>
    %c0_15 = arith.constant 0 : index
    %c0_16 = arith.constant 0 : index
    %c1_17 = arith.constant 1 : index
    %c1_18 = arith.constant 1 : index
    %c0_19 = arith.constant 0 : index
    %38 = vector.load %arg2[%c0_15, %c0_16, %c1_17, %c1_18, %c0_19] : memref<2x4x4x16x16xf32, #tpu.memory_space<vmem>>, vector<1x1x1x15x16xf32>
    %39 = vector.shape_cast %38 : vector<1x1x1x15x16xf32> to vector<15x16xf32>
    %cst_20 = arith.constant 0.000000e+00 : f32
    %40 = vector.broadcast %cst_20 : f32 to vector<1x16xf32>
    %41 = tpu.concatenate %39, %40 in 0 : vector<15x16xf32>, vector<1x16xf32> -> vector<16x16xf32>
    %c9 = arith.constant 9 : index
    %42 = memref.load %arg3[%c9] : memref<144xf32, #tpu.memory_space<smem>>
    %43 = vector.broadcast %42 : f32 to vector<16x16xf32>
    %44 = arith.mulf %43, %41 : vector<16x16xf32>
    %45 = arith.addf %27, %44 : vector<16x16xf32>
    %c10 = arith.constant 10 : index
    %46 = memref.load %arg3[%c10] : memref<144xf32, #tpu.memory_space<smem>>
    %47 = vector.broadcast %46 : f32 to vector<16x16xf32>
    %48 = arith.mulf %47, %41 : vector<16x16xf32>
    %49 = arith.addf %31, %48 : vector<16x16xf32>
    %c11 = arith.constant 11 : index
    %50 = memref.load %arg3[%c11] : memref<144xf32, #tpu.memory_space<smem>>
    %51 = vector.broadcast %50 : f32 to vector<16x16xf32>
    %52 = arith.mulf %51, %41 : vector<16x16xf32>
    %53 = arith.addf %35, %52 : vector<16x16xf32>
    %c12 = arith.constant 12 : index
    %54 = memref.load %arg3[%c12] : memref<144xf32, #tpu.memory_space<smem>>
    %55 = vector.broadcast %54 : f32 to vector<16x16xf32>
    %56 = arith.mulf %55, %37 : vector<16x16xf32>
    %57 = arith.addf %17, %56 : vector<16x16xf32>
    %c13 = arith.constant 13 : index
    %58 = memref.load %arg3[%c13] : memref<144xf32, #tpu.memory_space<smem>>
    %59 = vector.broadcast %58 : f32 to vector<16x16xf32>
    %60 = arith.mulf %59, %37 : vector<16x16xf32>
    %61 = arith.addf %20, %60 : vector<16x16xf32>
    %c14 = arith.constant 14 : index
    %62 = memref.load %arg3[%c14] : memref<144xf32, #tpu.memory_space<smem>>
    %63 = vector.broadcast %62 : f32 to vector<16x16xf32>
    %64 = arith.mulf %63, %37 : vector<16x16xf32>
    %65 = arith.addf %23, %64 : vector<16x16xf32>
    %c15 = arith.constant 15 : index
    %66 = memref.load %arg3[%c15] : memref<144xf32, #tpu.memory_space<smem>>
    %67 = vector.broadcast %66 : f32 to vector<16x16xf32>
    %68 = arith.mulf %67, %37 : vector<16x16xf32>
    %69 = arith.addf %45, %68 : vector<16x16xf32>
    %c16 = arith.constant 16 : index
    %70 = memref.load %arg3[%c16] : memref<144xf32, #tpu.memory_space<smem>>
    %71 = vector.broadcast %70 : f32 to vector<16x16xf32>
    %72 = arith.mulf %71, %37 : vector<16x16xf32>
    %73 = arith.addf %49, %72 : vector<16x16xf32>
    %c17 = arith.constant 17 : index
    %74 = memref.load %arg3[%c17] : memref<144xf32, #tpu.memory_space<smem>>
    %75 = vector.broadcast %74 : f32 to vector<16x16xf32>
    %76 = arith.mulf %75, %37 : vector<16x16xf32>
    %77 = arith.addf %53, %76 : vector<16x16xf32>
    %c0_21 = arith.constant 0 : index
    %c0_22 = arith.constant 0 : index
    %c2_23 = arith.constant 2 : index
    %c0_24 = arith.constant 0 : index
    %c0_25 = arith.constant 0 : index
    %78 = vector.load %arg2[%c0_21, %c0_22, %c2_23, %c0_24, %c0_25] : memref<2x4x4x16x16xf32, #tpu.memory_space<vmem>>, vector<1x1x1x16x16xf32>
    %79 = vector.shape_cast %78 : vector<1x1x1x16x16xf32> to vector<16x16xf32>
    %c0_26 = arith.constant 0 : index
    %c0_27 = arith.constant 0 : index
    %c2_28 = arith.constant 2 : index
    %c1_29 = arith.constant 1 : index
    %c0_30 = arith.constant 0 : index
    %80 = vector.load %arg2[%c0_26, %c0_27, %c2_28, %c1_29, %c0_30] : memref<2x4x4x16x16xf32, #tpu.memory_space<vmem>>, vector<1x1x1x15x16xf32>
    %81 = vector.shape_cast %80 : vector<1x1x1x15x16xf32> to vector<15x16xf32>
    %cst_31 = arith.constant 0.000000e+00 : f32
    %82 = vector.broadcast %cst_31 : f32 to vector<1x16xf32>
    %83 = tpu.concatenate %81, %82 in 0 : vector<15x16xf32>, vector<1x16xf32> -> vector<16x16xf32>
    %c18 = arith.constant 18 : index
    %84 = memref.load %arg3[%c18] : memref<144xf32, #tpu.memory_space<smem>>
    %85 = vector.broadcast %84 : f32 to vector<16x16xf32>
    %86 = arith.mulf %85, %83 : vector<16x16xf32>
    %87 = arith.addf %69, %86 : vector<16x16xf32>
    %c19 = arith.constant 19 : index
    %88 = memref.load %arg3[%c19] : memref<144xf32, #tpu.memory_space<smem>>
    %89 = vector.broadcast %88 : f32 to vector<16x16xf32>
    %90 = arith.mulf %89, %83 : vector<16x16xf32>
    %91 = arith.addf %73, %90 : vector<16x16xf32>
    %c20 = arith.constant 20 : index
    %92 = memref.load %arg3[%c20] : memref<144xf32, #tpu.memory_space<smem>>
    %93 = vector.broadcast %92 : f32 to vector<16x16xf32>
    %94 = arith.mulf %93, %83 : vector<16x16xf32>
    %95 = arith.addf %77, %94 : vector<16x16xf32>
    %c21 = arith.constant 21 : index
    %96 = memref.load %arg3[%c21] : memref<144xf32, #tpu.memory_space<smem>>
    %97 = vector.broadcast %96 : f32 to vector<16x16xf32>
    %98 = arith.mulf %97, %79 : vector<16x16xf32>
    %99 = arith.addf %57, %98 : vector<16x16xf32>
    %c22 = arith.constant 22 : index
    %100 = memref.load %arg3[%c22] : memref<144xf32, #tpu.memory_space<smem>>
    %101 = vector.broadcast %100 : f32 to vector<16x16xf32>
    %102 = arith.mulf %101, %79 : vector<16x16xf32>
    %103 = arith.addf %61, %102 : vector<16x16xf32>
    %c23 = arith.constant 23 : index
    %104 = memref.load %arg3[%c23] : memref<144xf32, #tpu.memory_space<smem>>
    %105 = vector.broadcast %104 : f32 to vector<16x16xf32>
    %106 = arith.mulf %105, %79 : vector<16x16xf32>
    %107 = arith.addf %65, %106 : vector<16x16xf32>
    %c24 = arith.constant 24 : index
    %108 = memref.load %arg3[%c24] : memref<144xf32, #tpu.memory_space<smem>>
    %109 = vector.broadcast %108 : f32 to vector<16x16xf32>
    %110 = arith.mulf %109, %79 : vector<16x16xf32>
    %111 = arith.addf %87, %110 : vector<16x16xf32>
    %c25 = arith.constant 25 : index
    %112 = memref.load %arg3[%c25] : memref<144xf32, #tpu.memory_space<smem>>
    %113 = vector.broadcast %112 : f32 to vector<16x16xf32>
    %114 = arith.mulf %113, %79 : vector<16x16xf32>
    %115 = arith.addf %91, %114 : vector<16x16xf32>
    %c26 = arith.constant 26 : index
    %116 = memref.load %arg3[%c26] : memref<144xf32, #tpu.memory_space<smem>>
    %117 = vector.broadcast %116 : f32 to vector<16x16xf32>
    %118 = arith.mulf %117, %79 : vector<16x16xf32>
    %119 = arith.addf %95, %118 : vector<16x16xf32>
    %c0_32 = arith.constant 0 : index
    %c0_33 = arith.constant 0 : index
    %c3_34 = arith.constant 3 : index
    %c0_35 = arith.constant 0 : index
    %c0_36 = arith.constant 0 : index
    %120 = vector.load %arg2[%c0_32, %c0_33, %c3_34, %c0_35, %c0_36] : memref<2x4x4x16x16xf32, #tpu.memory_space<vmem>>, vector<1x1x1x16x16xf32>
    %121 = vector.shape_cast %120 : vector<1x1x1x16x16xf32> to vector<16x16xf32>
    %c0_37 = arith.constant 0 : index
    %c0_38 = arith.constant 0 : index
    %c3_39 = arith.constant 3 : index
    %c1_40 = arith.constant 1 : index
    %c0_41 = arith.constant 0 : index
    %122 = vector.load %arg2[%c0_37, %c0_38, %c3_39, %c1_40, %c0_41] : memref<2x4x4x16x16xf32, #tpu.memory_space<vmem>>, vector<1x1x1x15x16xf32>
    %123 = vector.shape_cast %122 : vector<1x1x1x15x16xf32> to vector<15x16xf32>
    %cst_42 = arith.constant 0.000000e+00 : f32
    %124 = vector.broadcast %cst_42 : f32 to vector<1x16xf32>
    %125 = tpu.concatenate %123, %124 in 0 : vector<15x16xf32>, vector<1x16xf32> -> vector<16x16xf32>
    %c27 = arith.constant 27 : index
    %126 = memref.load %arg3[%c27] : memref<144xf32, #tpu.memory_space<smem>>
    %127 = vector.broadcast %126 : f32 to vector<16x16xf32>
    %128 = arith.mulf %127, %125 : vector<16x16xf32>
    %129 = arith.addf %111, %128 : vector<16x16xf32>
    %c28 = arith.constant 28 : index
    %130 = memref.load %arg3[%c28] : memref<144xf32, #tpu.memory_space<smem>>
    %131 = vector.broadcast %130 : f32 to vector<16x16xf32>
    %132 = arith.mulf %131, %125 : vector<16x16xf32>
    %133 = arith.addf %115, %132 : vector<16x16xf32>
    %c29 = arith.constant 29 : index
    %134 = memref.load %arg3[%c29] : memref<144xf32, #tpu.memory_space<smem>>
    %135 = vector.broadcast %134 : f32 to vector<16x16xf32>
    %136 = arith.mulf %135, %125 : vector<16x16xf32>
    %137 = arith.addf %119, %136 : vector<16x16xf32>
    %c30 = arith.constant 30 : index
    %138 = memref.load %arg3[%c30] : memref<144xf32, #tpu.memory_space<smem>>
    %139 = vector.broadcast %138 : f32 to vector<16x16xf32>
    %140 = arith.mulf %139, %121 : vector<16x16xf32>
    %141 = arith.addf %99, %140 : vector<16x16xf32>
    %c31 = arith.constant 31 : index
    %142 = memref.load %arg3[%c31] : memref<144xf32, #tpu.memory_space<smem>>
    %143 = vector.broadcast %142 : f32 to vector<16x16xf32>
    %144 = arith.mulf %143, %121 : vector<16x16xf32>
    %145 = arith.addf %103, %144 : vector<16x16xf32>
    %c32 = arith.constant 32 : index
    %146 = memref.load %arg3[%c32] : memref<144xf32, #tpu.memory_space<smem>>
    %147 = vector.broadcast %146 : f32 to vector<16x16xf32>
    %148 = arith.mulf %147, %121 : vector<16x16xf32>
    %149 = arith.addf %107, %148 : vector<16x16xf32>
    %c33 = arith.constant 33 : index
    %150 = memref.load %arg3[%c33] : memref<144xf32, #tpu.memory_space<smem>>
    %151 = vector.broadcast %150 : f32 to vector<16x16xf32>
    %152 = arith.mulf %151, %121 : vector<16x16xf32>
    %153 = arith.addf %129, %152 : vector<16x16xf32>
    %c34 = arith.constant 34 : index
    %154 = memref.load %arg3[%c34] : memref<144xf32, #tpu.memory_space<smem>>
    %155 = vector.broadcast %154 : f32 to vector<16x16xf32>
    %156 = arith.mulf %155, %121 : vector<16x16xf32>
    %157 = arith.addf %133, %156 : vector<16x16xf32>
    %c35 = arith.constant 35 : index
    %158 = memref.load %arg3[%c35] : memref<144xf32, #tpu.memory_space<smem>>
    %159 = vector.broadcast %158 : f32 to vector<16x16xf32>
    %160 = arith.mulf %159, %121 : vector<16x16xf32>
    %161 = arith.addf %137, %160 : vector<16x16xf32>
    %c0_43 = arith.constant 0 : index
    %c1_44 = arith.constant 1 : index
    %c0_45 = arith.constant 0 : index
    %c0_46 = arith.constant 0 : index
    %c0_47 = arith.constant 0 : index
    %162 = vector.load %arg2[%c0_43, %c1_44, %c0_45, %c0_46, %c0_47] : memref<2x4x4x16x16xf32, #tpu.memory_space<vmem>>, vector<1x1x1x16x16xf32>
    %163 = vector.shape_cast %162 : vector<1x1x1x16x16xf32> to vector<16x16xf32>
    %c0_48 = arith.constant 0 : index
    %c1_49 = arith.constant 1 : index
    %c0_50 = arith.constant 0 : index
    %c1_51 = arith.constant 1 : index
    %c0_52 = arith.constant 0 : index
    %164 = vector.load %arg2[%c0_48, %c1_49, %c0_50, %c1_51, %c0_52] : memref<2x4x4x16x16xf32, #tpu.memory_space<vmem>>, vector<1x1x1x15x16xf32>
    %165 = vector.shape_cast %164 : vector<1x1x1x15x16xf32> to vector<15x16xf32>
    %cst_53 = arith.constant 0.000000e+00 : f32
    %166 = vector.broadcast %cst_53 : f32 to vector<1x16xf32>
    %167 = tpu.concatenate %165, %166 in 0 : vector<15x16xf32>, vector<1x16xf32> -> vector<16x16xf32>
    %c36 = arith.constant 36 : index
    %168 = memref.load %arg3[%c36] : memref<144xf32, #tpu.memory_space<smem>>
    %169 = vector.broadcast %168 : f32 to vector<16x16xf32>
    %170 = arith.mulf %169, %167 : vector<16x16xf32>
    %171 = arith.addf %153, %170 : vector<16x16xf32>
    %c37 = arith.constant 37 : index
    %172 = memref.load %arg3[%c37] : memref<144xf32, #tpu.memory_space<smem>>
    %173 = vector.broadcast %172 : f32 to vector<16x16xf32>
    %174 = arith.mulf %173, %167 : vector<16x16xf32>
    %175 = arith.addf %157, %174 : vector<16x16xf32>
    %c38 = arith.constant 38 : index
    %176 = memref.load %arg3[%c38] : memref<144xf32, #tpu.memory_space<smem>>
    %177 = vector.broadcast %176 : f32 to vector<16x16xf32>
    %178 = arith.mulf %177, %167 : vector<16x16xf32>
    %179 = arith.addf %161, %178 : vector<16x16xf32>
    %c39 = arith.constant 39 : index
    %180 = memref.load %arg3[%c39] : memref<144xf32, #tpu.memory_space<smem>>
    %181 = vector.broadcast %180 : f32 to vector<16x16xf32>
    %182 = arith.mulf %181, %163 : vector<16x16xf32>
    %183 = arith.addf %141, %182 : vector<16x16xf32>
    %c40 = arith.constant 40 : index
    %184 = memref.load %arg3[%c40] : memref<144xf32, #tpu.memory_space<smem>>
    %185 = vector.broadcast %184 : f32 to vector<16x16xf32>
    %186 = arith.mulf %185, %163 : vector<16x16xf32>
    %187 = arith.addf %145, %186 : vector<16x16xf32>
    %c41 = arith.constant 41 : index
    %188 = memref.load %arg3[%c41] : memref<144xf32, #tpu.memory_space<smem>>
    %189 = vector.broadcast %188 : f32 to vector<16x16xf32>
    %190 = arith.mulf %189, %163 : vector<16x16xf32>
    %191 = arith.addf %149, %190 : vector<16x16xf32>
    %c42 = arith.constant 42 : index
    %192 = memref.load %arg3[%c42] : memref<144xf32, #tpu.memory_space<smem>>
    %193 = vector.broadcast %192 : f32 to vector<16x16xf32>
    %194 = arith.mulf %193, %163 : vector<16x16xf32>
    %195 = arith.addf %171, %194 : vector<16x16xf32>
    %c43 = arith.constant 43 : index
    %196 = memref.load %arg3[%c43] : memref<144xf32, #tpu.memory_space<smem>>
    %197 = vector.broadcast %196 : f32 to vector<16x16xf32>
    %198 = arith.mulf %197, %163 : vector<16x16xf32>
    %199 = arith.addf %175, %198 : vector<16x16xf32>
    %c44 = arith.constant 44 : index
    %200 = memref.load %arg3[%c44] : memref<144xf32, #tpu.memory_space<smem>>
    %201 = vector.broadcast %200 : f32 to vector<16x16xf32>
    %202 = arith.mulf %201, %163 : vector<16x16xf32>
    %203 = arith.addf %179, %202 : vector<16x16xf32>
    %c0_54 = arith.constant 0 : index
    %c1_55 = arith.constant 1 : index
    %c1_56 = arith.constant 1 : index
    %c0_57 = arith.constant 0 : index
    %c0_58 = arith.constant 0 : index
    %204 = vector.load %arg2[%c0_54, %c1_55, %c1_56, %c0_57, %c0_58] : memref<2x4x4x16x16xf32, #tpu.memory_space<vmem>>, vector<1x1x1x16x16xf32>
    %205 = vector.shape_cast %204 : vector<1x1x1x16x16xf32> to vector<16x16xf32>
    %c0_59 = arith.constant 0 : index
    %c1_60 = arith.constant 1 : index
    %c1_61 = arith.constant 1 : index
    %c1_62 = arith.constant 1 : index
    %c0_63 = arith.constant 0 : index
    %206 = vector.load %arg2[%c0_59, %c1_60, %c1_61, %c1_62, %c0_63] : memref<2x4x4x16x16xf32, #tpu.memory_space<vmem>>, vector<1x1x1x15x16xf32>
    %207 = vector.shape_cast %206 : vector<1x1x1x15x16xf32> to vector<15x16xf32>
    %cst_64 = arith.constant 0.000000e+00 : f32
    %208 = vector.broadcast %cst_64 : f32 to vector<1x16xf32>
    %209 = tpu.concatenate %207, %208 in 0 : vector<15x16xf32>, vector<1x16xf32> -> vector<16x16xf32>
    %c45 = arith.constant 45 : index
    %210 = memref.load %arg3[%c45] : memref<144xf32, #tpu.memory_space<smem>>
    %211 = vector.broadcast %210 : f32 to vector<16x16xf32>
    %212 = arith.mulf %211, %209 : vector<16x16xf32>
    %213 = arith.addf %195, %212 : vector<16x16xf32>
    %c46 = arith.constant 46 : index
    %214 = memref.load %arg3[%c46] : memref<144xf32, #tpu.memory_space<smem>>
    %215 = vector.broadcast %214 : f32 to vector<16x16xf32>
    %216 = arith.mulf %215, %209 : vector<16x16xf32>
    %217 = arith.addf %199, %216 : vector<16x16xf32>
    %c47 = arith.constant 47 : index
    %218 = memref.load %arg3[%c47] : memref<144xf32, #tpu.memory_space<smem>>
    %219 = vector.broadcast %218 : f32 to vector<16x16xf32>
    %220 = arith.mulf %219, %209 : vector<16x16xf32>
    %221 = arith.addf %203, %220 : vector<16x16xf32>
    %c48 = arith.constant 48 : index
    %222 = memref.load %arg3[%c48] : memref<144xf32, #tpu.memory_space<smem>>
    %223 = vector.broadcast %222 : f32 to vector<16x16xf32>
    %224 = arith.mulf %223, %205 : vector<16x16xf32>
    %225 = arith.addf %183, %224 : vector<16x16xf32>
    %c49 = arith.constant 49 : index
    %226 = memref.load %arg3[%c49] : memref<144xf32, #tpu.memory_space<smem>>
    %227 = vector.broadcast %226 : f32 to vector<16x16xf32>
    %228 = arith.mulf %227, %205 : vector<16x16xf32>
    %229 = arith.addf %187, %228 : vector<16x16xf32>
    %c50 = arith.constant 50 : index
    %230 = memref.load %arg3[%c50] : memref<144xf32, #tpu.memory_space<smem>>
    %231 = vector.broadcast %230 : f32 to vector<16x16xf32>
    %232 = arith.mulf %231, %205 : vector<16x16xf32>
    %233 = arith.addf %191, %232 : vector<16x16xf32>
    %c51 = arith.constant 51 : index
    %234 = memref.load %arg3[%c51] : memref<144xf32, #tpu.memory_space<smem>>
    %235 = vector.broadcast %234 : f32 to vector<16x16xf32>
    %236 = arith.mulf %235, %205 : vector<16x16xf32>
    %237 = arith.addf %213, %236 : vector<16x16xf32>
    %c52 = arith.constant 52 : index
    %238 = memref.load %arg3[%c52] : memref<144xf32, #tpu.memory_space<smem>>
    %239 = vector.broadcast %238 : f32 to vector<16x16xf32>
    %240 = arith.mulf %239, %205 : vector<16x16xf32>
    %241 = arith.addf %217, %240 : vector<16x16xf32>
    %c53 = arith.constant 53 : index
    %242 = memref.load %arg3[%c53] : memref<144xf32, #tpu.memory_space<smem>>
    %243 = vector.broadcast %242 : f32 to vector<16x16xf32>
    %244 = arith.mulf %243, %205 : vector<16x16xf32>
    %245 = arith.addf %221, %244 : vector<16x16xf32>
    %c0_65 = arith.constant 0 : index
    %c1_66 = arith.constant 1 : index
    %c2_67 = arith.constant 2 : index
    %c0_68 = arith.constant 0 : index
    %c0_69 = arith.constant 0 : index
    %246 = vector.load %arg2[%c0_65, %c1_66, %c2_67, %c0_68, %c0_69] : memref<2x4x4x16x16xf32, #tpu.memory_space<vmem>>, vector<1x1x1x16x16xf32>
    %247 = vector.shape_cast %246 : vector<1x1x1x16x16xf32> to vector<16x16xf32>
    %c0_70 = arith.constant 0 : index
    %c1_71 = arith.constant 1 : index
    %c2_72 = arith.constant 2 : index
    %c1_73 = arith.constant 1 : index
    %c0_74 = arith.constant 0 : index
    %248 = vector.load %arg2[%c0_70, %c1_71, %c2_72, %c1_73, %c0_74] : memref<2x4x4x16x16xf32, #tpu.memory_space<vmem>>, vector<1x1x1x15x16xf32>
    %249 = vector.shape_cast %248 : vector<1x1x1x15x16xf32> to vector<15x16xf32>
    %cst_75 = arith.constant 0.000000e+00 : f32
    %250 = vector.broadcast %cst_75 : f32 to vector<1x16xf32>
    %251 = tpu.concatenate %249, %250 in 0 : vector<15x16xf32>, vector<1x16xf32> -> vector<16x16xf32>
    %c54 = arith.constant 54 : index
    %252 = memref.load %arg3[%c54] : memref<144xf32, #tpu.memory_space<smem>>
    %253 = vector.broadcast %252 : f32 to vector<16x16xf32>
    %254 = arith.mulf %253, %251 : vector<16x16xf32>
    %255 = arith.addf %237, %254 : vector<16x16xf32>
    %c55 = arith.constant 55 : index
    %256 = memref.load %arg3[%c55] : memref<144xf32, #tpu.memory_space<smem>>
    %257 = vector.broadcast %256 : f32 to vector<16x16xf32>
    %258 = arith.mulf %257, %251 : vector<16x16xf32>
    %259 = arith.addf %241, %258 : vector<16x16xf32>
    %c56 = arith.constant 56 : index
    %260 = memref.load %arg3[%c56] : memref<144xf32, #tpu.memory_space<smem>>
    %261 = vector.broadcast %260 : f32 to vector<16x16xf32>
    %262 = arith.mulf %261, %251 : vector<16x16xf32>
    %263 = arith.addf %245, %262 : vector<16x16xf32>
    %c57 = arith.constant 57 : index
    %264 = memref.load %arg3[%c57] : memref<144xf32, #tpu.memory_space<smem>>
    %265 = vector.broadcast %264 : f32 to vector<16x16xf32>
    %266 = arith.mulf %265, %247 : vector<16x16xf32>
    %267 = arith.addf %225, %266 : vector<16x16xf32>
    %c58 = arith.constant 58 : index
    %268 = memref.load %arg3[%c58] : memref<144xf32, #tpu.memory_space<smem>>
    %269 = vector.broadcast %268 : f32 to vector<16x16xf32>
    %270 = arith.mulf %269, %247 : vector<16x16xf32>
    %271 = arith.addf %229, %270 : vector<16x16xf32>
    %c59 = arith.constant 59 : index
    %272 = memref.load %arg3[%c59] : memref<144xf32, #tpu.memory_space<smem>>
    %273 = vector.broadcast %272 : f32 to vector<16x16xf32>
    %274 = arith.mulf %273, %247 : vector<16x16xf32>
    %275 = arith.addf %233, %274 : vector<16x16xf32>
    %c60 = arith.constant 60 : index
    %276 = memref.load %arg3[%c60] : memref<144xf32, #tpu.memory_space<smem>>
    %277 = vector.broadcast %276 : f32 to vector<16x16xf32>
    %278 = arith.mulf %277, %247 : vector<16x16xf32>
    %279 = arith.addf %255, %278 : vector<16x16xf32>
    %c61 = arith.constant 61 : index
    %280 = memref.load %arg3[%c61] : memref<144xf32, #tpu.memory_space<smem>>
    %281 = vector.broadcast %280 : f32 to vector<16x16xf32>
    %282 = arith.mulf %281, %247 : vector<16x16xf32>
    %283 = arith.addf %259, %282 : vector<16x16xf32>
    %c62 = arith.constant 62 : index
    %284 = memref.load %arg3[%c62] : memref<144xf32, #tpu.memory_space<smem>>
    %285 = vector.broadcast %284 : f32 to vector<16x16xf32>
    %286 = arith.mulf %285, %247 : vector<16x16xf32>
    %287 = arith.addf %263, %286 : vector<16x16xf32>
    %c0_76 = arith.constant 0 : index
    %c1_77 = arith.constant 1 : index
    %c3_78 = arith.constant 3 : index
    %c0_79 = arith.constant 0 : index
    %c0_80 = arith.constant 0 : index
    %288 = vector.load %arg2[%c0_76, %c1_77, %c3_78, %c0_79, %c0_80] : memref<2x4x4x16x16xf32, #tpu.memory_space<vmem>>, vector<1x1x1x16x16xf32>
    %289 = vector.shape_cast %288 : vector<1x1x1x16x16xf32> to vector<16x16xf32>
    %c0_81 = arith.constant 0 : index
    %c1_82 = arith.constant 1 : index
    %c3_83 = arith.constant 3 : index
    %c1_84 = arith.constant 1 : index
    %c0_85 = arith.constant 0 : index
    %290 = vector.load %arg2[%c0_81, %c1_82, %c3_83, %c1_84, %c0_85] : memref<2x4x4x16x16xf32, #tpu.memory_space<vmem>>, vector<1x1x1x15x16xf32>
    %291 = vector.shape_cast %290 : vector<1x1x1x15x16xf32> to vector<15x16xf32>
    %cst_86 = arith.constant 0.000000e+00 : f32
    %292 = vector.broadcast %cst_86 : f32 to vector<1x16xf32>
    %293 = tpu.concatenate %291, %292 in 0 : vector<15x16xf32>, vector<1x16xf32> -> vector<16x16xf32>
    %c63 = arith.constant 63 : index
    %294 = memref.load %arg3[%c63] : memref<144xf32, #tpu.memory_space<smem>>
    %295 = vector.broadcast %294 : f32 to vector<16x16xf32>
    %296 = arith.mulf %295, %293 : vector<16x16xf32>
    %297 = arith.addf %279, %296 : vector<16x16xf32>
    %c64 = arith.constant 64 : index
    %298 = memref.load %arg3[%c64] : memref<144xf32, #tpu.memory_space<smem>>
    %299 = vector.broadcast %298 : f32 to vector<16x16xf32>
    %300 = arith.mulf %299, %293 : vector<16x16xf32>
    %301 = arith.addf %283, %300 : vector<16x16xf32>
    %c65 = arith.constant 65 : index
    %302 = memref.load %arg3[%c65] : memref<144xf32, #tpu.memory_space<smem>>
    %303 = vector.broadcast %302 : f32 to vector<16x16xf32>
    %304 = arith.mulf %303, %293 : vector<16x16xf32>
    %305 = arith.addf %287, %304 : vector<16x16xf32>
    %c66 = arith.constant 66 : index
    %306 = memref.load %arg3[%c66] : memref<144xf32, #tpu.memory_space<smem>>
    %307 = vector.broadcast %306 : f32 to vector<16x16xf32>
    %308 = arith.mulf %307, %289 : vector<16x16xf32>
    %309 = arith.addf %267, %308 : vector<16x16xf32>
    %c67 = arith.constant 67 : index
    %310 = memref.load %arg3[%c67] : memref<144xf32, #tpu.memory_space<smem>>
    %311 = vector.broadcast %310 : f32 to vector<16x16xf32>
    %312 = arith.mulf %311, %289 : vector<16x16xf32>
    %313 = arith.addf %271, %312 : vector<16x16xf32>
    %c68 = arith.constant 68 : index
    %314 = memref.load %arg3[%c68] : memref<144xf32, #tpu.memory_space<smem>>
    %315 = vector.broadcast %314 : f32 to vector<16x16xf32>
    %316 = arith.mulf %315, %289 : vector<16x16xf32>
    %317 = arith.addf %275, %316 : vector<16x16xf32>
    %c69 = arith.constant 69 : index
    %318 = memref.load %arg3[%c69] : memref<144xf32, #tpu.memory_space<smem>>
    %319 = vector.broadcast %318 : f32 to vector<16x16xf32>
    %320 = arith.mulf %319, %289 : vector<16x16xf32>
    %321 = arith.addf %297, %320 : vector<16x16xf32>
    %c70 = arith.constant 70 : index
    %322 = memref.load %arg3[%c70] : memref<144xf32, #tpu.memory_space<smem>>
    %323 = vector.broadcast %322 : f32 to vector<16x16xf32>
    %324 = arith.mulf %323, %289 : vector<16x16xf32>
    %325 = arith.addf %301, %324 : vector<16x16xf32>
    %c71 = arith.constant 71 : index
    %326 = memref.load %arg3[%c71] : memref<144xf32, #tpu.memory_space<smem>>
    %327 = vector.broadcast %326 : f32 to vector<16x16xf32>
    %328 = arith.mulf %327, %289 : vector<16x16xf32>
    %329 = arith.addf %305, %328 : vector<16x16xf32>
    %c0_87 = arith.constant 0 : index
    %c2_88 = arith.constant 2 : index
    %c0_89 = arith.constant 0 : index
    %c0_90 = arith.constant 0 : index
    %c0_91 = arith.constant 0 : index
    %330 = vector.load %arg2[%c0_87, %c2_88, %c0_89, %c0_90, %c0_91] : memref<2x4x4x16x16xf32, #tpu.memory_space<vmem>>, vector<1x1x1x16x16xf32>
    %331 = vector.shape_cast %330 : vector<1x1x1x16x16xf32> to vector<16x16xf32>
    %c0_92 = arith.constant 0 : index
    %c2_93 = arith.constant 2 : index
    %c0_94 = arith.constant 0 : index
    %c1_95 = arith.constant 1 : index
    %c0_96 = arith.constant 0 : index
    %332 = vector.load %arg2[%c0_92, %c2_93, %c0_94, %c1_95, %c0_96] : memref<2x4x4x16x16xf32, #tpu.memory_space<vmem>>, vector<1x1x1x15x16xf32>
    %333 = vector.shape_cast %332 : vector<1x1x1x15x16xf32> to vector<15x16xf32>
    %cst_97 = arith.constant 0.000000e+00 : f32
    %334 = vector.broadcast %cst_97 : f32 to vector<1x16xf32>
    %335 = tpu.concatenate %333, %334 in 0 : vector<15x16xf32>, vector<1x16xf32> -> vector<16x16xf32>
    %c72 = arith.constant 72 : index
    %336 = memref.load %arg3[%c72] : memref<144xf32, #tpu.memory_space<smem>>
    %337 = vector.broadcast %336 : f32 to vector<16x16xf32>
    %338 = arith.mulf %337, %335 : vector<16x16xf32>
    %339 = arith.addf %321, %338 : vector<16x16xf32>
    %c73 = arith.constant 73 : index
    %340 = memref.load %arg3[%c73] : memref<144xf32, #tpu.memory_space<smem>>
    %341 = vector.broadcast %340 : f32 to vector<16x16xf32>
    %342 = arith.mulf %341, %335 : vector<16x16xf32>
    %343 = arith.addf %325, %342 : vector<16x16xf32>
    %c74 = arith.constant 74 : index
    %344 = memref.load %arg3[%c74] : memref<144xf32, #tpu.memory_space<smem>>
    %345 = vector.broadcast %344 : f32 to vector<16x16xf32>
    %346 = arith.mulf %345, %335 : vector<16x16xf32>
    %347 = arith.addf %329, %346 : vector<16x16xf32>
    %c75 = arith.constant 75 : index
    %348 = memref.load %arg3[%c75] : memref<144xf32, #tpu.memory_space<smem>>
    %349 = vector.broadcast %348 : f32 to vector<16x16xf32>
    %350 = arith.mulf %349, %331 : vector<16x16xf32>
    %351 = arith.addf %309, %350 : vector<16x16xf32>
    %c76 = arith.constant 76 : index
    %352 = memref.load %arg3[%c76] : memref<144xf32, #tpu.memory_space<smem>>
    %353 = vector.broadcast %352 : f32 to vector<16x16xf32>
    %354 = arith.mulf %353, %331 : vector<16x16xf32>
    %355 = arith.addf %313, %354 : vector<16x16xf32>
    %c77 = arith.constant 77 : index
    %356 = memref.load %arg3[%c77] : memref<144xf32, #tpu.memory_space<smem>>
    %357 = vector.broadcast %356 : f32 to vector<16x16xf32>
    %358 = arith.mulf %357, %331 : vector<16x16xf32>
    %359 = arith.addf %317, %358 : vector<16x16xf32>
    %c78 = arith.constant 78 : index
    %360 = memref.load %arg3[%c78] : memref<144xf32, #tpu.memory_space<smem>>
    %361 = vector.broadcast %360 : f32 to vector<16x16xf32>
    %362 = arith.mulf %361, %331 : vector<16x16xf32>
    %363 = arith.addf %339, %362 : vector<16x16xf32>
    %c79 = arith.constant 79 : index
    %364 = memref.load %arg3[%c79] : memref<144xf32, #tpu.memory_space<smem>>
    %365 = vector.broadcast %364 : f32 to vector<16x16xf32>
    %366 = arith.mulf %365, %331 : vector<16x16xf32>
    %367 = arith.addf %343, %366 : vector<16x16xf32>
    %c80 = arith.constant 80 : index
    %368 = memref.load %arg3[%c80] : memref<144xf32, #tpu.memory_space<smem>>
    %369 = vector.broadcast %368 : f32 to vector<16x16xf32>
    %370 = arith.mulf %369, %331 : vector<16x16xf32>
    %371 = arith.addf %347, %370 : vector<16x16xf32>
    %c0_98 = arith.constant 0 : index
    %c2_99 = arith.constant 2 : index
    %c1_100 = arith.constant 1 : index
    %c0_101 = arith.constant 0 : index
    %c0_102 = arith.constant 0 : index
    %372 = vector.load %arg2[%c0_98, %c2_99, %c1_100, %c0_101, %c0_102] : memref<2x4x4x16x16xf32, #tpu.memory_space<vmem>>, vector<1x1x1x16x16xf32>
    %373 = vector.shape_cast %372 : vector<1x1x1x16x16xf32> to vector<16x16xf32>
    %c0_103 = arith.constant 0 : index
    %c2_104 = arith.constant 2 : index
    %c1_105 = arith.constant 1 : index
    %c1_106 = arith.constant 1 : index
    %c0_107 = arith.constant 0 : index
    %374 = vector.load %arg2[%c0_103, %c2_104, %c1_105, %c1_106, %c0_107] : memref<2x4x4x16x16xf32, #tpu.memory_space<vmem>>, vector<1x1x1x15x16xf32>
    %375 = vector.shape_cast %374 : vector<1x1x1x15x16xf32> to vector<15x16xf32>
    %cst_108 = arith.constant 0.000000e+00 : f32
    %376 = vector.broadcast %cst_108 : f32 to vector<1x16xf32>
    %377 = tpu.concatenate %375, %376 in 0 : vector<15x16xf32>, vector<1x16xf32> -> vector<16x16xf32>
    %c81 = arith.constant 81 : index
    %378 = memref.load %arg3[%c81] : memref<144xf32, #tpu.memory_space<smem>>
    %379 = vector.broadcast %378 : f32 to vector<16x16xf32>
    %380 = arith.mulf %379, %377 : vector<16x16xf32>
    %381 = arith.addf %363, %380 : vector<16x16xf32>
    %c82 = arith.constant 82 : index
    %382 = memref.load %arg3[%c82] : memref<144xf32, #tpu.memory_space<smem>>
    %383 = vector.broadcast %382 : f32 to vector<16x16xf32>
    %384 = arith.mulf %383, %377 : vector<16x16xf32>
    %385 = arith.addf %367, %384 : vector<16x16xf32>
    %c83 = arith.constant 83 : index
    %386 = memref.load %arg3[%c83] : memref<144xf32, #tpu.memory_space<smem>>
    %387 = vector.broadcast %386 : f32 to vector<16x16xf32>
    %388 = arith.mulf %387, %377 : vector<16x16xf32>
    %389 = arith.addf %371, %388 : vector<16x16xf32>
    %c84 = arith.constant 84 : index
    %390 = memref.load %arg3[%c84] : memref<144xf32, #tpu.memory_space<smem>>
    %391 = vector.broadcast %390 : f32 to vector<16x16xf32>
    %392 = arith.mulf %391, %373 : vector<16x16xf32>
    %393 = arith.addf %351, %392 : vector<16x16xf32>
    %c85 = arith.constant 85 : index
    %394 = memref.load %arg3[%c85] : memref<144xf32, #tpu.memory_space<smem>>
    %395 = vector.broadcast %394 : f32 to vector<16x16xf32>
    %396 = arith.mulf %395, %373 : vector<16x16xf32>
    %397 = arith.addf %355, %396 : vector<16x16xf32>
    %c86 = arith.constant 86 : index
    %398 = memref.load %arg3[%c86] : memref<144xf32, #tpu.memory_space<smem>>
    %399 = vector.broadcast %398 : f32 to vector<16x16xf32>
    %400 = arith.mulf %399, %373 : vector<16x16xf32>
    %401 = arith.addf %359, %400 : vector<16x16xf32>
    %c87 = arith.constant 87 : index
    %402 = memref.load %arg3[%c87] : memref<144xf32, #tpu.memory_space<smem>>
    %403 = vector.broadcast %402 : f32 to vector<16x16xf32>
    %404 = arith.mulf %403, %373 : vector<16x16xf32>
    %405 = arith.addf %381, %404 : vector<16x16xf32>
    %c88 = arith.constant 88 : index
    %406 = memref.load %arg3[%c88] : memref<144xf32, #tpu.memory_space<smem>>
    %407 = vector.broadcast %406 : f32 to vector<16x16xf32>
    %408 = arith.mulf %407, %373 : vector<16x16xf32>
    %409 = arith.addf %385, %408 : vector<16x16xf32>
    %c89 = arith.constant 89 : index
    %410 = memref.load %arg3[%c89] : memref<144xf32, #tpu.memory_space<smem>>
    %411 = vector.broadcast %410 : f32 to vector<16x16xf32>
    %412 = arith.mulf %411, %373 : vector<16x16xf32>
    %413 = arith.addf %389, %412 : vector<16x16xf32>
    %c0_109 = arith.constant 0 : index
    %c2_110 = arith.constant 2 : index
    %c2_111 = arith.constant 2 : index
    %c0_112 = arith.constant 0 : index
    %c0_113 = arith.constant 0 : index
    %414 = vector.load %arg2[%c0_109, %c2_110, %c2_111, %c0_112, %c0_113] : memref<2x4x4x16x16xf32, #tpu.memory_space<vmem>>, vector<1x1x1x16x16xf32>
    %415 = vector.shape_cast %414 : vector<1x1x1x16x16xf32> to vector<16x16xf32>
    %c0_114 = arith.constant 0 : index
    %c2_115 = arith.constant 2 : index
    %c2_116 = arith.constant 2 : index
    %c1_117 = arith.constant 1 : index
    %c0_118 = arith.constant 0 : index
    %416 = vector.load %arg2[%c0_114, %c2_115, %c2_116, %c1_117, %c0_118] : memref<2x4x4x16x16xf32, #tpu.memory_space<vmem>>, vector<1x1x1x15x16xf32>
    %417 = vector.shape_cast %416 : vector<1x1x1x15x16xf32> to vector<15x16xf32>
    %cst_119 = arith.constant 0.000000e+00 : f32
    %418 = vector.broadcast %cst_119 : f32 to vector<1x16xf32>
    %419 = tpu.concatenate %417, %418 in 0 : vector<15x16xf32>, vector<1x16xf32> -> vector<16x16xf32>
    %c90 = arith.constant 90 : index
    %420 = memref.load %arg3[%c90] : memref<144xf32, #tpu.memory_space<smem>>
    %421 = vector.broadcast %420 : f32 to vector<16x16xf32>
    %422 = arith.mulf %421, %419 : vector<16x16xf32>
    %423 = arith.addf %405, %422 : vector<16x16xf32>
    %c91 = arith.constant 91 : index
    %424 = memref.load %arg3[%c91] : memref<144xf32, #tpu.memory_space<smem>>
    %425 = vector.broadcast %424 : f32 to vector<16x16xf32>
    %426 = arith.mulf %425, %419 : vector<16x16xf32>
    %427 = arith.addf %409, %426 : vector<16x16xf32>
    %c92 = arith.constant 92 : index
    %428 = memref.load %arg3[%c92] : memref<144xf32, #tpu.memory_space<smem>>
    %429 = vector.broadcast %428 : f32 to vector<16x16xf32>
    %430 = arith.mulf %429, %419 : vector<16x16xf32>
    %431 = arith.addf %413, %430 : vector<16x16xf32>
    %c93 = arith.constant 93 : index
    %432 = memref.load %arg3[%c93] : memref<144xf32, #tpu.memory_space<smem>>
    %433 = vector.broadcast %432 : f32 to vector<16x16xf32>
    %434 = arith.mulf %433, %415 : vector<16x16xf32>
    %435 = arith.addf %393, %434 : vector<16x16xf32>
    %c94 = arith.constant 94 : index
    %436 = memref.load %arg3[%c94] : memref<144xf32, #tpu.memory_space<smem>>
    %437 = vector.broadcast %436 : f32 to vector<16x16xf32>
    %438 = arith.mulf %437, %415 : vector<16x16xf32>
    %439 = arith.addf %397, %438 : vector<16x16xf32>
    %c95 = arith.constant 95 : index
    %440 = memref.load %arg3[%c95] : memref<144xf32, #tpu.memory_space<smem>>
    %441 = vector.broadcast %440 : f32 to vector<16x16xf32>
    %442 = arith.mulf %441, %415 : vector<16x16xf32>
    %443 = arith.addf %401, %442 : vector<16x16xf32>
    %c96 = arith.constant 96 : index
    %444 = memref.load %arg3[%c96] : memref<144xf32, #tpu.memory_space<smem>>
    %445 = vector.broadcast %444 : f32 to vector<16x16xf32>
    %446 = arith.mulf %445, %415 : vector<16x16xf32>
    %447 = arith.addf %423, %446 : vector<16x16xf32>
    %c97 = arith.constant 97 : index
    %448 = memref.load %arg3[%c97] : memref<144xf32, #tpu.memory_space<smem>>
    %449 = vector.broadcast %448 : f32 to vector<16x16xf32>
    %450 = arith.mulf %449, %415 : vector<16x16xf32>
    %451 = arith.addf %427, %450 : vector<16x16xf32>
    %c98 = arith.constant 98 : index
    %452 = memref.load %arg3[%c98] : memref<144xf32, #tpu.memory_space<smem>>
    %453 = vector.broadcast %452 : f32 to vector<16x16xf32>
    %454 = arith.mulf %453, %415 : vector<16x16xf32>
    %455 = arith.addf %431, %454 : vector<16x16xf32>
    %c0_120 = arith.constant 0 : index
    %c2_121 = arith.constant 2 : index
    %c3_122 = arith.constant 3 : index
    %c0_123 = arith.constant 0 : index
    %c0_124 = arith.constant 0 : index
    %456 = vector.load %arg2[%c0_120, %c2_121, %c3_122, %c0_123, %c0_124] : memref<2x4x4x16x16xf32, #tpu.memory_space<vmem>>, vector<1x1x1x16x16xf32>
    %457 = vector.shape_cast %456 : vector<1x1x1x16x16xf32> to vector<16x16xf32>
    %c0_125 = arith.constant 0 : index
    %c2_126 = arith.constant 2 : index
    %c3_127 = arith.constant 3 : index
    %c1_128 = arith.constant 1 : index
    %c0_129 = arith.constant 0 : index
    %458 = vector.load %arg2[%c0_125, %c2_126, %c3_127, %c1_128, %c0_129] : memref<2x4x4x16x16xf32, #tpu.memory_space<vmem>>, vector<1x1x1x15x16xf32>
    %459 = vector.shape_cast %458 : vector<1x1x1x15x16xf32> to vector<15x16xf32>
    %cst_130 = arith.constant 0.000000e+00 : f32
    %460 = vector.broadcast %cst_130 : f32 to vector<1x16xf32>
    %461 = tpu.concatenate %459, %460 in 0 : vector<15x16xf32>, vector<1x16xf32> -> vector<16x16xf32>
    %c99 = arith.constant 99 : index
    %462 = memref.load %arg3[%c99] : memref<144xf32, #tpu.memory_space<smem>>
    %463 = vector.broadcast %462 : f32 to vector<16x16xf32>
    %464 = arith.mulf %463, %461 : vector<16x16xf32>
    %465 = arith.addf %447, %464 : vector<16x16xf32>
    %c100 = arith.constant 100 : index
    %466 = memref.load %arg3[%c100] : memref<144xf32, #tpu.memory_space<smem>>
    %467 = vector.broadcast %466 : f32 to vector<16x16xf32>
    %468 = arith.mulf %467, %461 : vector<16x16xf32>
    %469 = arith.addf %451, %468 : vector<16x16xf32>
    %c101 = arith.constant 101 : index
    %470 = memref.load %arg3[%c101] : memref<144xf32, #tpu.memory_space<smem>>
    %471 = vector.broadcast %470 : f32 to vector<16x16xf32>
    %472 = arith.mulf %471, %461 : vector<16x16xf32>
    %473 = arith.addf %455, %472 : vector<16x16xf32>
    %c102 = arith.constant 102 : index
    %474 = memref.load %arg3[%c102] : memref<144xf32, #tpu.memory_space<smem>>
    %475 = vector.broadcast %474 : f32 to vector<16x16xf32>
    %476 = arith.mulf %475, %457 : vector<16x16xf32>
    %477 = arith.addf %435, %476 : vector<16x16xf32>
    %c103 = arith.constant 103 : index
    %478 = memref.load %arg3[%c103] : memref<144xf32, #tpu.memory_space<smem>>
    %479 = vector.broadcast %478 : f32 to vector<16x16xf32>
    %480 = arith.mulf %479, %457 : vector<16x16xf32>
    %481 = arith.addf %439, %480 : vector<16x16xf32>
    %c104 = arith.constant 104 : index
    %482 = memref.load %arg3[%c104] : memref<144xf32, #tpu.memory_space<smem>>
    %483 = vector.broadcast %482 : f32 to vector<16x16xf32>
    %484 = arith.mulf %483, %457 : vector<16x16xf32>
    %485 = arith.addf %443, %484 : vector<16x16xf32>
    %c105 = arith.constant 105 : index
    %486 = memref.load %arg3[%c105] : memref<144xf32, #tpu.memory_space<smem>>
    %487 = vector.broadcast %486 : f32 to vector<16x16xf32>
    %488 = arith.mulf %487, %457 : vector<16x16xf32>
    %489 = arith.addf %465, %488 : vector<16x16xf32>
    %c106 = arith.constant 106 : index
    %490 = memref.load %arg3[%c106] : memref<144xf32, #tpu.memory_space<smem>>
    %491 = vector.broadcast %490 : f32 to vector<16x16xf32>
    %492 = arith.mulf %491, %457 : vector<16x16xf32>
    %493 = arith.addf %469, %492 : vector<16x16xf32>
    %c107 = arith.constant 107 : index
    %494 = memref.load %arg3[%c107] : memref<144xf32, #tpu.memory_space<smem>>
    %495 = vector.broadcast %494 : f32 to vector<16x16xf32>
    %496 = arith.mulf %495, %457 : vector<16x16xf32>
    %497 = arith.addf %473, %496 : vector<16x16xf32>
    %c0_131 = arith.constant 0 : index
    %c3_132 = arith.constant 3 : index
    %c0_133 = arith.constant 0 : index
    %c0_134 = arith.constant 0 : index
    %c0_135 = arith.constant 0 : index
    %498 = vector.load %arg2[%c0_131, %c3_132, %c0_133, %c0_134, %c0_135] : memref<2x4x4x16x16xf32, #tpu.memory_space<vmem>>, vector<1x1x1x16x16xf32>
    %499 = vector.shape_cast %498 : vector<1x1x1x16x16xf32> to vector<16x16xf32>
    %c0_136 = arith.constant 0 : index
    %c3_137 = arith.constant 3 : index
    %c0_138 = arith.constant 0 : index
    %c1_139 = arith.constant 1 : index
    %c0_140 = arith.constant 0 : index
    %500 = vector.load %arg2[%c0_136, %c3_137, %c0_138, %c1_139, %c0_140] : memref<2x4x4x16x16xf32, #tpu.memory_space<vmem>>, vector<1x1x1x15x16xf32>
    %501 = vector.shape_cast %500 : vector<1x1x1x15x16xf32> to vector<15x16xf32>
    %cst_141 = arith.constant 0.000000e+00 : f32
    %502 = vector.broadcast %cst_141 : f32 to vector<1x16xf32>
    %503 = tpu.concatenate %501, %502 in 0 : vector<15x16xf32>, vector<1x16xf32> -> vector<16x16xf32>
    %c108 = arith.constant 108 : index
    %504 = memref.load %arg3[%c108] : memref<144xf32, #tpu.memory_space<smem>>
    %505 = vector.broadcast %504 : f32 to vector<16x16xf32>
    %506 = arith.mulf %505, %503 : vector<16x16xf32>
    %507 = arith.addf %489, %506 : vector<16x16xf32>
    %c109 = arith.constant 109 : index
    %508 = memref.load %arg3[%c109] : memref<144xf32, #tpu.memory_space<smem>>
    %509 = vector.broadcast %508 : f32 to vector<16x16xf32>
    %510 = arith.mulf %509, %503 : vector<16x16xf32>
    %511 = arith.addf %493, %510 : vector<16x16xf32>
    %c110 = arith.constant 110 : index
    %512 = memref.load %arg3[%c110] : memref<144xf32, #tpu.memory_space<smem>>
    %513 = vector.broadcast %512 : f32 to vector<16x16xf32>
    %514 = arith.mulf %513, %503 : vector<16x16xf32>
    %515 = arith.addf %497, %514 : vector<16x16xf32>
    %c111 = arith.constant 111 : index
    %516 = memref.load %arg3[%c111] : memref<144xf32, #tpu.memory_space<smem>>
    %517 = vector.broadcast %516 : f32 to vector<16x16xf32>
    %518 = arith.mulf %517, %499 : vector<16x16xf32>
    %519 = arith.addf %477, %518 : vector<16x16xf32>
    %c112 = arith.constant 112 : index
    %520 = memref.load %arg3[%c112] : memref<144xf32, #tpu.memory_space<smem>>
    %521 = vector.broadcast %520 : f32 to vector<16x16xf32>
    %522 = arith.mulf %521, %499 : vector<16x16xf32>
    %523 = arith.addf %481, %522 : vector<16x16xf32>
    %c113 = arith.constant 113 : index
    %524 = memref.load %arg3[%c113] : memref<144xf32, #tpu.memory_space<smem>>
    %525 = vector.broadcast %524 : f32 to vector<16x16xf32>
    %526 = arith.mulf %525, %499 : vector<16x16xf32>
    %527 = arith.addf %485, %526 : vector<16x16xf32>
    %c114 = arith.constant 114 : index
    %528 = memref.load %arg3[%c114] : memref<144xf32, #tpu.memory_space<smem>>
    %529 = vector.broadcast %528 : f32 to vector<16x16xf32>
    %530 = arith.mulf %529, %499 : vector<16x16xf32>
    %531 = arith.addf %507, %530 : vector<16x16xf32>
    %c115 = arith.constant 115 : index
    %532 = memref.load %arg3[%c115] : memref<144xf32, #tpu.memory_space<smem>>
    %533 = vector.broadcast %532 : f32 to vector<16x16xf32>
    %534 = arith.mulf %533, %499 : vector<16x16xf32>
    %535 = arith.addf %511, %534 : vector<16x16xf32>
    %c116 = arith.constant 116 : index
    %536 = memref.load %arg3[%c116] : memref<144xf32, #tpu.memory_space<smem>>
    %537 = vector.broadcast %536 : f32 to vector<16x16xf32>
    %538 = arith.mulf %537, %499 : vector<16x16xf32>
    %539 = arith.addf %515, %538 : vector<16x16xf32>
    %c0_142 = arith.constant 0 : index
    %c3_143 = arith.constant 3 : index
    %c1_144 = arith.constant 1 : index
    %c0_145 = arith.constant 0 : index
    %c0_146 = arith.constant 0 : index
    %540 = vector.load %arg2[%c0_142, %c3_143, %c1_144, %c0_145, %c0_146] : memref<2x4x4x16x16xf32, #tpu.memory_space<vmem>>, vector<1x1x1x16x16xf32>
    %541 = vector.shape_cast %540 : vector<1x1x1x16x16xf32> to vector<16x16xf32>
    %c0_147 = arith.constant 0 : index
    %c3_148 = arith.constant 3 : index
    %c1_149 = arith.constant 1 : index
    %c1_150 = arith.constant 1 : index
    %c0_151 = arith.constant 0 : index
    %542 = vector.load %arg2[%c0_147, %c3_148, %c1_149, %c1_150, %c0_151] : memref<2x4x4x16x16xf32, #tpu.memory_space<vmem>>, vector<1x1x1x15x16xf32>
    %543 = vector.shape_cast %542 : vector<1x1x1x15x16xf32> to vector<15x16xf32>
    %cst_152 = arith.constant 0.000000e+00 : f32
    %544 = vector.broadcast %cst_152 : f32 to vector<1x16xf32>
    %545 = tpu.concatenate %543, %544 in 0 : vector<15x16xf32>, vector<1x16xf32> -> vector<16x16xf32>
    %c117 = arith.constant 117 : index
    %546 = memref.load %arg3[%c117] : memref<144xf32, #tpu.memory_space<smem>>
    %547 = vector.broadcast %546 : f32 to vector<16x16xf32>
    %548 = arith.mulf %547, %545 : vector<16x16xf32>
    %549 = arith.addf %531, %548 : vector<16x16xf32>
    %c118 = arith.constant 118 : index
    %550 = memref.load %arg3[%c118] : memref<144xf32, #tpu.memory_space<smem>>
    %551 = vector.broadcast %550 : f32 to vector<16x16xf32>
    %552 = arith.mulf %551, %545 : vector<16x16xf32>
    %553 = arith.addf %535, %552 : vector<16x16xf32>
    %c119 = arith.constant 119 : index
    %554 = memref.load %arg3[%c119] : memref<144xf32, #tpu.memory_space<smem>>
    %555 = vector.broadcast %554 : f32 to vector<16x16xf32>
    %556 = arith.mulf %555, %545 : vector<16x16xf32>
    %557 = arith.addf %539, %556 : vector<16x16xf32>
    %c120 = arith.constant 120 : index
    %558 = memref.load %arg3[%c120] : memref<144xf32, #tpu.memory_space<smem>>
    %559 = vector.broadcast %558 : f32 to vector<16x16xf32>
    %560 = arith.mulf %559, %541 : vector<16x16xf32>
    %561 = arith.addf %519, %560 : vector<16x16xf32>
    %c121 = arith.constant 121 : index
    %562 = memref.load %arg3[%c121] : memref<144xf32, #tpu.memory_space<smem>>
    %563 = vector.broadcast %562 : f32 to vector<16x16xf32>
    %564 = arith.mulf %563, %541 : vector<16x16xf32>
    %565 = arith.addf %523, %564 : vector<16x16xf32>
    %c122 = arith.constant 122 : index
    %566 = memref.load %arg3[%c122] : memref<144xf32, #tpu.memory_space<smem>>
    %567 = vector.broadcast %566 : f32 to vector<16x16xf32>
    %568 = arith.mulf %567, %541 : vector<16x16xf32>
    %569 = arith.addf %527, %568 : vector<16x16xf32>
    %c123 = arith.constant 123 : index
    %570 = memref.load %arg3[%c123] : memref<144xf32, #tpu.memory_space<smem>>
    %571 = vector.broadcast %570 : f32 to vector<16x16xf32>
    %572 = arith.mulf %571, %541 : vector<16x16xf32>
    %573 = arith.addf %549, %572 : vector<16x16xf32>
    %c124 = arith.constant 124 : index
    %574 = memref.load %arg3[%c124] : memref<144xf32, #tpu.memory_space<smem>>
    %575 = vector.broadcast %574 : f32 to vector<16x16xf32>
    %576 = arith.mulf %575, %541 : vector<16x16xf32>
    %577 = arith.addf %553, %576 : vector<16x16xf32>
    %c125 = arith.constant 125 : index
    %578 = memref.load %arg3[%c125] : memref<144xf32, #tpu.memory_space<smem>>
    %579 = vector.broadcast %578 : f32 to vector<16x16xf32>
    %580 = arith.mulf %579, %541 : vector<16x16xf32>
    %581 = arith.addf %557, %580 : vector<16x16xf32>
    %c0_153 = arith.constant 0 : index
    %c3_154 = arith.constant 3 : index
    %c2_155 = arith.constant 2 : index
    %c0_156 = arith.constant 0 : index
    %c0_157 = arith.constant 0 : index
    %582 = vector.load %arg2[%c0_153, %c3_154, %c2_155, %c0_156, %c0_157] : memref<2x4x4x16x16xf32, #tpu.memory_space<vmem>>, vector<1x1x1x16x16xf32>
    %583 = vector.shape_cast %582 : vector<1x1x1x16x16xf32> to vector<16x16xf32>
    %c0_158 = arith.constant 0 : index
    %c3_159 = arith.constant 3 : index
    %c2_160 = arith.constant 2 : index
    %c1_161 = arith.constant 1 : index
    %c0_162 = arith.constant 0 : index
    %584 = vector.load %arg2[%c0_158, %c3_159, %c2_160, %c1_161, %c0_162] : memref<2x4x4x16x16xf32, #tpu.memory_space<vmem>>, vector<1x1x1x15x16xf32>
    %585 = vector.shape_cast %584 : vector<1x1x1x15x16xf32> to vector<15x16xf32>
    %cst_163 = arith.constant 0.000000e+00 : f32
    %586 = vector.broadcast %cst_163 : f32 to vector<1x16xf32>
    %587 = tpu.concatenate %585, %586 in 0 : vector<15x16xf32>, vector<1x16xf32> -> vector<16x16xf32>
    %c126 = arith.constant 126 : index
    %588 = memref.load %arg3[%c126] : memref<144xf32, #tpu.memory_space<smem>>
    %589 = vector.broadcast %588 : f32 to vector<16x16xf32>
    %590 = arith.mulf %589, %587 : vector<16x16xf32>
    %591 = arith.addf %573, %590 : vector<16x16xf32>
    %c127 = arith.constant 127 : index
    %592 = memref.load %arg3[%c127] : memref<144xf32, #tpu.memory_space<smem>>
    %593 = vector.broadcast %592 : f32 to vector<16x16xf32>
    %594 = arith.mulf %593, %587 : vector<16x16xf32>
    %595 = arith.addf %577, %594 : vector<16x16xf32>
    %c128 = arith.constant 128 : index
    %596 = memref.load %arg3[%c128] : memref<144xf32, #tpu.memory_space<smem>>
    %597 = vector.broadcast %596 : f32 to vector<16x16xf32>
    %598 = arith.mulf %597, %587 : vector<16x16xf32>
    %599 = arith.addf %581, %598 : vector<16x16xf32>
    %c129 = arith.constant 129 : index
    %600 = memref.load %arg3[%c129] : memref<144xf32, #tpu.memory_space<smem>>
    %601 = vector.broadcast %600 : f32 to vector<16x16xf32>
    %602 = arith.mulf %601, %583 : vector<16x16xf32>
    %603 = arith.addf %561, %602 : vector<16x16xf32>
    %c130 = arith.constant 130 : index
    %604 = memref.load %arg3[%c130] : memref<144xf32, #tpu.memory_space<smem>>
    %605 = vector.broadcast %604 : f32 to vector<16x16xf32>
    %606 = arith.mulf %605, %583 : vector<16x16xf32>
    %607 = arith.addf %565, %606 : vector<16x16xf32>
    %c131 = arith.constant 131 : index
    %608 = memref.load %arg3[%c131] : memref<144xf32, #tpu.memory_space<smem>>
    %609 = vector.broadcast %608 : f32 to vector<16x16xf32>
    %610 = arith.mulf %609, %583 : vector<16x16xf32>
    %611 = arith.addf %569, %610 : vector<16x16xf32>
    %c132 = arith.constant 132 : index
    %612 = memref.load %arg3[%c132] : memref<144xf32, #tpu.memory_space<smem>>
    %613 = vector.broadcast %612 : f32 to vector<16x16xf32>
    %614 = arith.mulf %613, %583 : vector<16x16xf32>
    %615 = arith.addf %591, %614 : vector<16x16xf32>
    %c133 = arith.constant 133 : index
    %616 = memref.load %arg3[%c133] : memref<144xf32, #tpu.memory_space<smem>>
    %617 = vector.broadcast %616 : f32 to vector<16x16xf32>
    %618 = arith.mulf %617, %583 : vector<16x16xf32>
    %619 = arith.addf %595, %618 : vector<16x16xf32>
    %c134 = arith.constant 134 : index
    %620 = memref.load %arg3[%c134] : memref<144xf32, #tpu.memory_space<smem>>
    %621 = vector.broadcast %620 : f32 to vector<16x16xf32>
    %622 = arith.mulf %621, %583 : vector<16x16xf32>
    %623 = arith.addf %599, %622 : vector<16x16xf32>
    %c0_164 = arith.constant 0 : index
    %c3_165 = arith.constant 3 : index
    %c3_166 = arith.constant 3 : index
    %c0_167 = arith.constant 0 : index
    %c0_168 = arith.constant 0 : index
    %624 = vector.load %arg2[%c0_164, %c3_165, %c3_166, %c0_167, %c0_168] : memref<2x4x4x16x16xf32, #tpu.memory_space<vmem>>, vector<1x1x1x16x16xf32>
    %625 = vector.shape_cast %624 : vector<1x1x1x16x16xf32> to vector<16x16xf32>
    %c0_169 = arith.constant 0 : index
    %c3_170 = arith.constant 3 : index
    %c3_171 = arith.constant 3 : index
    %c1_172 = arith.constant 1 : index
    %c0_173 = arith.constant 0 : index
    %626 = vector.load %arg2[%c0_169, %c3_170, %c3_171, %c1_172, %c0_173] : memref<2x4x4x16x16xf32, #tpu.memory_space<vmem>>, vector<1x1x1x15x16xf32>
    %627 = vector.shape_cast %626 : vector<1x1x1x15x16xf32> to vector<15x16xf32>
    %cst_174 = arith.constant 0.000000e+00 : f32
    %628 = vector.broadcast %cst_174 : f32 to vector<1x16xf32>
    %629 = tpu.concatenate %627, %628 in 0 : vector<15x16xf32>, vector<1x16xf32> -> vector<16x16xf32>
    %c135 = arith.constant 135 : index
    %630 = memref.load %arg3[%c135] : memref<144xf32, #tpu.memory_space<smem>>
    %631 = vector.broadcast %630 : f32 to vector<16x16xf32>
    %632 = arith.mulf %631, %629 : vector<16x16xf32>
    %633 = arith.addf %615, %632 : vector<16x16xf32>
    %c136 = arith.constant 136 : index
    %634 = memref.load %arg3[%c136] : memref<144xf32, #tpu.memory_space<smem>>
    %635 = vector.broadcast %634 : f32 to vector<16x16xf32>
    %636 = arith.mulf %635, %629 : vector<16x16xf32>
    %637 = arith.addf %619, %636 : vector<16x16xf32>
    %c137 = arith.constant 137 : index
    %638 = memref.load %arg3[%c137] : memref<144xf32, #tpu.memory_space<smem>>
    %639 = vector.broadcast %638 : f32 to vector<16x16xf32>
    %640 = arith.mulf %639, %629 : vector<16x16xf32>
    %641 = arith.addf %623, %640 : vector<16x16xf32>
    %c138 = arith.constant 138 : index
    %642 = memref.load %arg3[%c138] : memref<144xf32, #tpu.memory_space<smem>>
    %643 = vector.broadcast %642 : f32 to vector<16x16xf32>
    %644 = arith.mulf %643, %625 : vector<16x16xf32>
    %645 = arith.addf %603, %644 : vector<16x16xf32>
    %c139 = arith.constant 139 : index
    %646 = memref.load %arg3[%c139] : memref<144xf32, #tpu.memory_space<smem>>
    %647 = vector.broadcast %646 : f32 to vector<16x16xf32>
    %648 = arith.mulf %647, %625 : vector<16x16xf32>
    %649 = arith.addf %607, %648 : vector<16x16xf32>
    %c140 = arith.constant 140 : index
    %650 = memref.load %arg3[%c140] : memref<144xf32, #tpu.memory_space<smem>>
    %651 = vector.broadcast %650 : f32 to vector<16x16xf32>
    %652 = arith.mulf %651, %625 : vector<16x16xf32>
    %653 = arith.addf %611, %652 : vector<16x16xf32>
    %c141 = arith.constant 141 : index
    %654 = memref.load %arg3[%c141] : memref<144xf32, #tpu.memory_space<smem>>
    %655 = vector.broadcast %654 : f32 to vector<16x16xf32>
    %656 = arith.mulf %655, %625 : vector<16x16xf32>
    %657 = arith.addf %633, %656 : vector<16x16xf32>
    %c142 = arith.constant 142 : index
    %658 = memref.load %arg3[%c142] : memref<144xf32, #tpu.memory_space<smem>>
    %659 = vector.broadcast %658 : f32 to vector<16x16xf32>
    %660 = arith.mulf %659, %625 : vector<16x16xf32>
    %661 = arith.addf %637, %660 : vector<16x16xf32>
    %c143 = arith.constant 143 : index
    %662 = memref.load %arg3[%c143] : memref<144xf32, #tpu.memory_space<smem>>
    %663 = vector.broadcast %662 : f32 to vector<16x16xf32>
    %664 = arith.mulf %663, %625 : vector<16x16xf32>
    %665 = arith.addf %641, %664 : vector<16x16xf32>
    %c0_175 = arith.constant 0 : index
    %666 = memref.load %arg4[%c0_175] : memref<1xf32, #tpu.memory_space<smem>>
    %667 = vector.broadcast %666 : f32 to vector<16x16xf32>
    %668 = arith.addf %649, %667 : vector<16x16xf32>
    %669 = arith.negf %668 : vector<16x16xf32>
    %670 = math.exp %669 : vector<16x16xf32>
    %cst_176 = arith.constant 1.000000e+00 : f32
    %671 = vector.broadcast %cst_176 : f32 to vector<16x16xf32>
    %672 = arith.addf %671, %670 : vector<16x16xf32>
    %673 = arith.divf %671, %672 : vector<16x16xf32>
    %cst_177 = arith.constant 2.560000e+02 : f32
    %674 = vector.broadcast %cst_177 : f32 to vector<16x16xf32>
    %675 = arith.mulf %674, %673 : vector<16x16xf32>
    %c0_178 = arith.constant 0 : index
    %c0_179 = arith.constant 0 : index
    %c0_180 = arith.constant 0 : index
    %c0_181 = arith.constant 0 : index
    %676 = vector.load %arg5[%c0_178, %c0_179, %c0_180, %c0_181] : memref<2x4x16x16xf32, #tpu.memory_space<vmem>>, vector<1x1x16x16xf32>
    %677 = vector.shape_cast %676 : vector<1x1x16x16xf32> to vector<16x16xf32>
    %678 = vector.shape_cast %675 : vector<16x16xf32> to vector<1x1x16x16xf32>
    tpu.vector_store %arg5[%c0_178, %c0_179, %c0_180, %c0_181], %678 {strides = array<i32>} : memref<2x4x16x16xf32, #tpu.memory_space<vmem>>, vector<1x1x16x16xf32>,
    %679 = vector.extract_strided_slice %645 {offsets = [0, 1], sizes = [16, 15], strides = [1, 1]} : vector<16x16xf32> to vector<16x15xf32>
    %cst_182 = arith.constant 0.000000e+00 : f32
    %680 = vector.broadcast %cst_182 : f32 to vector<16x1xf32>
    %681 = tpu.concatenate %679, %680 in 1 : vector<16x15xf32>, vector<16x1xf32> -> vector<16x16xf32>
    %682 = arith.addf %653, %681 : vector<16x16xf32>
    %683 = vector.broadcast %666 : f32 to vector<16x16xf32>
    %684 = arith.addf %682, %683 : vector<16x16xf32>
    %685 = arith.negf %684 : vector<16x16xf32>
    %686 = math.exp %685 : vector<16x16xf32>
    %cst_183 = arith.constant 1.000000e+00 : f32
    %687 = vector.broadcast %cst_183 : f32 to vector<16x16xf32>
    %688 = arith.addf %687, %686 : vector<16x16xf32>
    %689 = arith.divf %687, %688 : vector<16x16xf32>
    %cst_184 = arith.constant 2.560000e+02 : f32
    %690 = vector.broadcast %cst_184 : f32 to vector<16x16xf32>
    %691 = arith.mulf %690, %689 : vector<16x16xf32>
    %c0_185 = arith.constant 0 : index
    %c1_186 = arith.constant 1 : index
    %c0_187 = arith.constant 0 : index
    %c0_188 = arith.constant 0 : index
    %692 = vector.load %arg5[%c0_185, %c1_186, %c0_187, %c0_188] : memref<2x4x16x16xf32, #tpu.memory_space<vmem>>, vector<1x1x16x16xf32>
    %693 = vector.shape_cast %692 : vector<1x1x16x16xf32> to vector<16x16xf32>
    %694 = vector.shape_cast %691 : vector<16x16xf32> to vector<1x1x16x16xf32>
    tpu.vector_store %arg5[%c0_185, %c1_186, %c0_187, %c0_188], %694 {strides = array<i32>} : memref<2x4x16x16xf32, #tpu.memory_space<vmem>>, vector<1x1x16x16xf32>,
    %695 = vector.broadcast %666 : f32 to vector<16x16xf32>
    %696 = arith.addf %661, %695 : vector<16x16xf32>
    %697 = arith.negf %696 : vector<16x16xf32>
    %698 = math.exp %697 : vector<16x16xf32>
    %cst_189 = arith.constant 1.000000e+00 : f32
    %699 = vector.broadcast %cst_189 : f32 to vector<16x16xf32>
    %700 = arith.addf %699, %698 : vector<16x16xf32>
    %701 = arith.divf %699, %700 : vector<16x16xf32>
    %cst_190 = arith.constant 2.560000e+02 : f32
    %702 = vector.broadcast %cst_190 : f32 to vector<16x16xf32>
    %703 = arith.mulf %702, %701 : vector<16x16xf32>
    %c0_191 = arith.constant 0 : index
    %c2_192 = arith.constant 2 : index
    %c0_193 = arith.constant 0 : index
    %c0_194 = arith.constant 0 : index
    %704 = vector.load %arg5[%c0_191, %c2_192, %c0_193, %c0_194] : memref<2x4x16x16xf32, #tpu.memory_space<vmem>>, vector<1x1x16x16xf32>
    %705 = vector.shape_cast %704 : vector<1x1x16x16xf32> to vector<16x16xf32>
    %706 = vector.shape_cast %703 : vector<16x16xf32> to vector<1x1x16x16xf32>
    tpu.vector_store %arg5[%c0_191, %c2_192, %c0_193, %c0_194], %706 {strides = array<i32>} : memref<2x4x16x16xf32, #tpu.memory_space<vmem>>, vector<1x1x16x16xf32>,
    %707 = vector.extract_strided_slice %657 {offsets = [0, 1], sizes = [16, 15], strides = [1, 1]} : vector<16x16xf32> to vector<16x15xf32>
    %cst_195 = arith.constant 0.000000e+00 : f32
    %708 = vector.broadcast %cst_195 : f32 to vector<16x1xf32>
    %709 = tpu.concatenate %707, %708 in 1 : vector<16x15xf32>, vector<16x1xf32> -> vector<16x16xf32>
    %710 = arith.addf %665, %709 : vector<16x16xf32>
    %711 = vector.broadcast %666 : f32 to vector<16x16xf32>
    %712 = arith.addf %710, %711 : vector<16x16xf32>
    %713 = arith.negf %712 : vector<16x16xf32>
    %714 = math.exp %713 : vector<16x16xf32>
    %cst_196 = arith.constant 1.000000e+00 : f32
    %715 = vector.broadcast %cst_196 : f32 to vector<16x16xf32>
    %716 = arith.addf %715, %714 : vector<16x16xf32>
    %717 = arith.divf %715, %716 : vector<16x16xf32>
    %cst_197 = arith.constant 2.560000e+02 : f32
    %718 = vector.broadcast %cst_197 : f32 to vector<16x16xf32>
    %719 = arith.mulf %718, %717 : vector<16x16xf32>
    %c0_198 = arith.constant 0 : index
    %c3_199 = arith.constant 3 : index
    %c0_200 = arith.constant 0 : index
    %c0_201 = arith.constant 0 : index
    %720 = vector.load %arg5[%c0_198, %c3_199, %c0_200, %c0_201] : memref<2x4x16x16xf32, #tpu.memory_space<vmem>>, vector<1x1x16x16xf32>
    %721 = vector.shape_cast %720 : vector<1x1x16x16xf32> to vector<16x16xf32>
    %722 = vector.shape_cast %719 : vector<16x16xf32> to vector<1x1x16x16xf32>
    tpu.vector_store %arg5[%c0_198, %c3_199, %c0_200, %c0_201], %722 {strides = array<i32>} : memref<2x4x16x16xf32, #tpu.memory_space<vmem>>, vector<1x1x16x16xf32>,
    %c1_202 = arith.constant 1 : index
    %c0_203 = arith.constant 0 : index
    %c0_204 = arith.constant 0 : index
    %c0_205 = arith.constant 0 : index
    %c0_206 = arith.constant 0 : index
    %723 = vector.load %arg2[%c1_202, %c0_203, %c0_204, %c0_205, %c0_206] : memref<2x4x4x16x16xf32, #tpu.memory_space<vmem>>, vector<1x1x1x16x16xf32>
    %724 = vector.shape_cast %723 : vector<1x1x1x16x16xf32> to vector<16x16xf32>
    %c1_207 = arith.constant 1 : index
    %c0_208 = arith.constant 0 : index
    %c0_209 = arith.constant 0 : index
    %c1_210 = arith.constant 1 : index
    %c0_211 = arith.constant 0 : index
    %725 = vector.load %arg2[%c1_207, %c0_208, %c0_209, %c1_210, %c0_211] : memref<2x4x4x16x16xf32, #tpu.memory_space<vmem>>, vector<1x1x1x15x16xf32>
    %726 = vector.shape_cast %725 : vector<1x1x1x15x16xf32> to vector<15x16xf32>
    %cst_212 = arith.constant 0.000000e+00 : f32
    %727 = vector.broadcast %cst_212 : f32 to vector<1x16xf32>
    %728 = tpu.concatenate %726, %727 in 0 : vector<15x16xf32>, vector<1x16xf32> -> vector<16x16xf32>
    %c0_213 = arith.constant 0 : index
    %729 = memref.load %arg3[%c0_213] : memref<144xf32, #tpu.memory_space<smem>>
    %730 = vector.broadcast %729 : f32 to vector<16x16xf32>
    %731 = arith.mulf %730, %728 : vector<16x16xf32>
    %c1_214 = arith.constant 1 : index
    %732 = memref.load %arg3[%c1_214] : memref<144xf32, #tpu.memory_space<smem>>
    %733 = vector.broadcast %732 : f32 to vector<16x16xf32>
    %734 = arith.mulf %733, %728 : vector<16x16xf32>
    %c2_215 = arith.constant 2 : index
    %735 = memref.load %arg3[%c2_215] : memref<144xf32, #tpu.memory_space<smem>>
    %736 = vector.broadcast %735 : f32 to vector<16x16xf32>
    %737 = arith.mulf %736, %728 : vector<16x16xf32>
    %c3_216 = arith.constant 3 : index
    %738 = memref.load %arg3[%c3_216] : memref<144xf32, #tpu.memory_space<smem>>
    %739 = vector.broadcast %738 : f32 to vector<16x16xf32>
    %740 = arith.mulf %739, %724 : vector<16x16xf32>
    %c4_217 = arith.constant 4 : index
    %741 = memref.load %arg3[%c4_217] : memref<144xf32, #tpu.memory_space<smem>>
    %742 = vector.broadcast %741 : f32 to vector<16x16xf32>
    %743 = arith.mulf %742, %724 : vector<16x16xf32>
    %c5_218 = arith.constant 5 : index
    %744 = memref.load %arg3[%c5_218] : memref<144xf32, #tpu.memory_space<smem>>
    %745 = vector.broadcast %744 : f32 to vector<16x16xf32>
    %746 = arith.mulf %745, %724 : vector<16x16xf32>
    %c6_219 = arith.constant 6 : index
    %747 = memref.load %arg3[%c6_219] : memref<144xf32, #tpu.memory_space<smem>>
    %748 = vector.broadcast %747 : f32 to vector<16x16xf32>
    %749 = arith.mulf %748, %724 : vector<16x16xf32>
    %750 = arith.addf %731, %749 : vector<16x16xf32>
    %c7_220 = arith.constant 7 : index
    %751 = memref.load %arg3[%c7_220] : memref<144xf32, #tpu.memory_space<smem>>
    %752 = vector.broadcast %751 : f32 to vector<16x16xf32>
    %753 = arith.mulf %752, %724 : vector<16x16xf32>
    %754 = arith.addf %734, %753 : vector<16x16xf32>
    %c8_221 = arith.constant 8 : index
    %755 = memref.load %arg3[%c8_221] : memref<144xf32, #tpu.memory_space<smem>>
    %756 = vector.broadcast %755 : f32 to vector<16x16xf32>
    %757 = arith.mulf %756, %724 : vector<16x16xf32>
    %758 = arith.addf %737, %757 : vector<16x16xf32>
    %c1_222 = arith.constant 1 : index
    %c0_223 = arith.constant 0 : index
    %c1_224 = arith.constant 1 : index
    %c0_225 = arith.constant 0 : index
    %c0_226 = arith.constant 0 : index
    %759 = vector.load %arg2[%c1_222, %c0_223, %c1_224, %c0_225, %c0_226] : memref<2x4x4x16x16xf32, #tpu.memory_space<vmem>>, vector<1x1x1x16x16xf32>
    %760 = vector.shape_cast %759 : vector<1x1x1x16x16xf32> to vector<16x16xf32>
    %c1_227 = arith.constant 1 : index
    %c0_228 = arith.constant 0 : index
    %c1_229 = arith.constant 1 : index
    %c1_230 = arith.constant 1 : index
    %c0_231 = arith.constant 0 : index
    %761 = vector.load %arg2[%c1_227, %c0_228, %c1_229, %c1_230, %c0_231] : memref<2x4x4x16x16xf32, #tpu.memory_space<vmem>>, vector<1x1x1x15x16xf32>
    %762 = vector.shape_cast %761 : vector<1x1x1x15x16xf32> to vector<15x16xf32>
    %cst_232 = arith.constant 0.000000e+00 : f32
    %763 = vector.broadcast %cst_232 : f32 to vector<1x16xf32>
    %764 = tpu.concatenate %762, %763 in 0 : vector<15x16xf32>, vector<1x16xf32> -> vector<16x16xf32>
    %c9_233 = arith.constant 9 : index
    %765 = memref.load %arg3[%c9_233] : memref<144xf32, #tpu.memory_space<smem>>
    %766 = vector.broadcast %765 : f32 to vector<16x16xf32>
    %767 = arith.mulf %766, %764 : vector<16x16xf32>
    %768 = arith.addf %750, %767 : vector<16x16xf32>
    %c10_234 = arith.constant 10 : index
    %769 = memref.load %arg3[%c10_234] : memref<144xf32, #tpu.memory_space<smem>>
    %770 = vector.broadcast %769 : f32 to vector<16x16xf32>
    %771 = arith.mulf %770, %764 : vector<16x16xf32>
    %772 = arith.addf %754, %771 : vector<16x16xf32>
    %c11_235 = arith.constant 11 : index
    %773 = memref.load %arg3[%c11_235] : memref<144xf32, #tpu.memory_space<smem>>
    %774 = vector.broadcast %773 : f32 to vector<16x16xf32>
    %775 = arith.mulf %774, %764 : vector<16x16xf32>
    %776 = arith.addf %758, %775 : vector<16x16xf32>
    %c12_236 = arith.constant 12 : index
    %777 = memref.load %arg3[%c12_236] : memref<144xf32, #tpu.memory_space<smem>>
    %778 = vector.broadcast %777 : f32 to vector<16x16xf32>
    %779 = arith.mulf %778, %760 : vector<16x16xf32>
    %780 = arith.addf %740, %779 : vector<16x16xf32>
    %c13_237 = arith.constant 13 : index
    %781 = memref.load %arg3[%c13_237] : memref<144xf32, #tpu.memory_space<smem>>
    %782 = vector.broadcast %781 : f32 to vector<16x16xf32>
    %783 = arith.mulf %782, %760 : vector<16x16xf32>
    %784 = arith.addf %743, %783 : vector<16x16xf32>
    %c14_238 = arith.constant 14 : index
    %785 = memref.load %arg3[%c14_238] : memref<144xf32, #tpu.memory_space<smem>>
    %786 = vector.broadcast %785 : f32 to vector<16x16xf32>
    %787 = arith.mulf %786, %760 : vector<16x16xf32>
    %788 = arith.addf %746, %787 : vector<16x16xf32>
    %c15_239 = arith.constant 15 : index
    %789 = memref.load %arg3[%c15_239] : memref<144xf32, #tpu.memory_space<smem>>
    %790 = vector.broadcast %789 : f32 to vector<16x16xf32>
    %791 = arith.mulf %790, %760 : vector<16x16xf32>
    %792 = arith.addf %768, %791 : vector<16x16xf32>
    %c16_240 = arith.constant 16 : index
    %793 = memref.load %arg3[%c16_240] : memref<144xf32, #tpu.memory_space<smem>>
    %794 = vector.broadcast %793 : f32 to vector<16x16xf32>
    %795 = arith.mulf %794, %760 : vector<16x16xf32>
    %796 = arith.addf %772, %795 : vector<16x16xf32>
    %c17_241 = arith.constant 17 : index
    %797 = memref.load %arg3[%c17_241] : memref<144xf32, #tpu.memory_space<smem>>
    %798 = vector.broadcast %797 : f32 to vector<16x16xf32>
    %799 = arith.mulf %798, %760 : vector<16x16xf32>
    %800 = arith.addf %776, %799 : vector<16x16xf32>
    %c1_242 = arith.constant 1 : index
    %c0_243 = arith.constant 0 : index
    %c2_244 = arith.constant 2 : index
    %c0_245 = arith.constant 0 : index
    %c0_246 = arith.constant 0 : index
    %801 = vector.load %arg2[%c1_242, %c0_243, %c2_244, %c0_245, %c0_246] : memref<2x4x4x16x16xf32, #tpu.memory_space<vmem>>, vector<1x1x1x16x16xf32>
    %802 = vector.shape_cast %801 : vector<1x1x1x16x16xf32> to vector<16x16xf32>
    %c1_247 = arith.constant 1 : index
    %c0_248 = arith.constant 0 : index
    %c2_249 = arith.constant 2 : index
    %c1_250 = arith.constant 1 : index
    %c0_251 = arith.constant 0 : index
    %803 = vector.load %arg2[%c1_247, %c0_248, %c2_249, %c1_250, %c0_251] : memref<2x4x4x16x16xf32, #tpu.memory_space<vmem>>, vector<1x1x1x15x16xf32>
    %804 = vector.shape_cast %803 : vector<1x1x1x15x16xf32> to vector<15x16xf32>
    %cst_252 = arith.constant 0.000000e+00 : f32
    %805 = vector.broadcast %cst_252 : f32 to vector<1x16xf32>
    %806 = tpu.concatenate %804, %805 in 0 : vector<15x16xf32>, vector<1x16xf32> -> vector<16x16xf32>
    %c18_253 = arith.constant 18 : index
    %807 = memref.load %arg3[%c18_253] : memref<144xf32, #tpu.memory_space<smem>>
    %808 = vector.broadcast %807 : f32 to vector<16x16xf32>
    %809 = arith.mulf %808, %806 : vector<16x16xf32>
    %810 = arith.addf %792, %809 : vector<16x16xf32>
    %c19_254 = arith.constant 19 : index
    %811 = memref.load %arg3[%c19_254] : memref<144xf32, #tpu.memory_space<smem>>
    %812 = vector.broadcast %811 : f32 to vector<16x16xf32>
    %813 = arith.mulf %812, %806 : vector<16x16xf32>
    %814 = arith.addf %796, %813 : vector<16x16xf32>
    %c20_255 = arith.constant 20 : index
    %815 = memref.load %arg3[%c20_255] : memref<144xf32, #tpu.memory_space<smem>>
    %816 = vector.broadcast %815 : f32 to vector<16x16xf32>
    %817 = arith.mulf %816, %806 : vector<16x16xf32>
    %818 = arith.addf %800, %817 : vector<16x16xf32>
    %c21_256 = arith.constant 21 : index
    %819 = memref.load %arg3[%c21_256] : memref<144xf32, #tpu.memory_space<smem>>
    %820 = vector.broadcast %819 : f32 to vector<16x16xf32>
    %821 = arith.mulf %820, %802 : vector<16x16xf32>
    %822 = arith.addf %780, %821 : vector<16x16xf32>
    %c22_257 = arith.constant 22 : index
    %823 = memref.load %arg3[%c22_257] : memref<144xf32, #tpu.memory_space<smem>>
    %824 = vector.broadcast %823 : f32 to vector<16x16xf32>
    %825 = arith.mulf %824, %802 : vector<16x16xf32>
    %826 = arith.addf %784, %825 : vector<16x16xf32>
    %c23_258 = arith.constant 23 : index
    %827 = memref.load %arg3[%c23_258] : memref<144xf32, #tpu.memory_space<smem>>
    %828 = vector.broadcast %827 : f32 to vector<16x16xf32>
    %829 = arith.mulf %828, %802 : vector<16x16xf32>
    %830 = arith.addf %788, %829 : vector<16x16xf32>
    %c24_259 = arith.constant 24 : index
    %831 = memref.load %arg3[%c24_259] : memref<144xf32, #tpu.memory_space<smem>>
    %832 = vector.broadcast %831 : f32 to vector<16x16xf32>
    %833 = arith.mulf %832, %802 : vector<16x16xf32>
    %834 = arith.addf %810, %833 : vector<16x16xf32>
    %c25_260 = arith.constant 25 : index
    %835 = memref.load %arg3[%c25_260] : memref<144xf32, #tpu.memory_space<smem>>
    %836 = vector.broadcast %835 : f32 to vector<16x16xf32>
    %837 = arith.mulf %836, %802 : vector<16x16xf32>
    %838 = arith.addf %814, %837 : vector<16x16xf32>
    %c26_261 = arith.constant 26 : index
    %839 = memref.load %arg3[%c26_261] : memref<144xf32, #tpu.memory_space<smem>>
    %840 = vector.broadcast %839 : f32 to vector<16x16xf32>
    %841 = arith.mulf %840, %802 : vector<16x16xf32>
    %842 = arith.addf %818, %841 : vector<16x16xf32>
    %c1_262 = arith.constant 1 : index
    %c0_263 = arith.constant 0 : index
    %c3_264 = arith.constant 3 : index
    %c0_265 = arith.constant 0 : index
    %c0_266 = arith.constant 0 : index
    %843 = vector.load %arg2[%c1_262, %c0_263, %c3_264, %c0_265, %c0_266] : memref<2x4x4x16x16xf32, #tpu.memory_space<vmem>>, vector<1x1x1x16x16xf32>
    %844 = vector.shape_cast %843 : vector<1x1x1x16x16xf32> to vector<16x16xf32>
    %c1_267 = arith.constant 1 : index
    %c0_268 = arith.constant 0 : index
    %c3_269 = arith.constant 3 : index
    %c1_270 = arith.constant 1 : index
    %c0_271 = arith.constant 0 : index
    %845 = vector.load %arg2[%c1_267, %c0_268, %c3_269, %c1_270, %c0_271] : memref<2x4x4x16x16xf32, #tpu.memory_space<vmem>>, vector<1x1x1x15x16xf32>
    %846 = vector.shape_cast %845 : vector<1x1x1x15x16xf32> to vector<15x16xf32>
    %cst_272 = arith.constant 0.000000e+00 : f32
    %847 = vector.broadcast %cst_272 : f32 to vector<1x16xf32>
    %848 = tpu.concatenate %846, %847 in 0 : vector<15x16xf32>, vector<1x16xf32> -> vector<16x16xf32>
    %c27_273 = arith.constant 27 : index
    %849 = memref.load %arg3[%c27_273] : memref<144xf32, #tpu.memory_space<smem>>
    %850 = vector.broadcast %849 : f32 to vector<16x16xf32>
    %851 = arith.mulf %850, %848 : vector<16x16xf32>
    %852 = arith.addf %834, %851 : vector<16x16xf32>
    %c28_274 = arith.constant 28 : index
    %853 = memref.load %arg3[%c28_274] : memref<144xf32, #tpu.memory_space<smem>>
    %854 = vector.broadcast %853 : f32 to vector<16x16xf32>
    %855 = arith.mulf %854, %848 : vector<16x16xf32>
    %856 = arith.addf %838, %855 : vector<16x16xf32>
    %c29_275 = arith.constant 29 : index
    %857 = memref.load %arg3[%c29_275] : memref<144xf32, #tpu.memory_space<smem>>
    %858 = vector.broadcast %857 : f32 to vector<16x16xf32>
    %859 = arith.mulf %858, %848 : vector<16x16xf32>
    %860 = arith.addf %842, %859 : vector<16x16xf32>
    %c30_276 = arith.constant 30 : index
    %861 = memref.load %arg3[%c30_276] : memref<144xf32, #tpu.memory_space<smem>>
    %862 = vector.broadcast %861 : f32 to vector<16x16xf32>
    %863 = arith.mulf %862, %844 : vector<16x16xf32>
    %864 = arith.addf %822, %863 : vector<16x16xf32>
    %c31_277 = arith.constant 31 : index
    %865 = memref.load %arg3[%c31_277] : memref<144xf32, #tpu.memory_space<smem>>
    %866 = vector.broadcast %865 : f32 to vector<16x16xf32>
    %867 = arith.mulf %866, %844 : vector<16x16xf32>
    %868 = arith.addf %826, %867 : vector<16x16xf32>
    %c32_278 = arith.constant 32 : index
    %869 = memref.load %arg3[%c32_278] : memref<144xf32, #tpu.memory_space<smem>>
    %870 = vector.broadcast %869 : f32 to vector<16x16xf32>
    %871 = arith.mulf %870, %844 : vector<16x16xf32>
    %872 = arith.addf %830, %871 : vector<16x16xf32>
    %c33_279 = arith.constant 33 : index
    %873 = memref.load %arg3[%c33_279] : memref<144xf32, #tpu.memory_space<smem>>
    %874 = vector.broadcast %873 : f32 to vector<16x16xf32>
    %875 = arith.mulf %874, %844 : vector<16x16xf32>
    %876 = arith.addf %852, %875 : vector<16x16xf32>
    %c34_280 = arith.constant 34 : index
    %877 = memref.load %arg3[%c34_280] : memref<144xf32, #tpu.memory_space<smem>>
    %878 = vector.broadcast %877 : f32 to vector<16x16xf32>
    %879 = arith.mulf %878, %844 : vector<16x16xf32>
    %880 = arith.addf %856, %879 : vector<16x16xf32>
    %c35_281 = arith.constant 35 : index
    %881 = memref.load %arg3[%c35_281] : memref<144xf32, #tpu.memory_space<smem>>
    %882 = vector.broadcast %881 : f32 to vector<16x16xf32>
    %883 = arith.mulf %882, %844 : vector<16x16xf32>
    %884 = arith.addf %860, %883 : vector<16x16xf32>
    %c1_282 = arith.constant 1 : index
    %c1_283 = arith.constant 1 : index
    %c0_284 = arith.constant 0 : index
    %c0_285 = arith.constant 0 : index
    %c0_286 = arith.constant 0 : index
    %885 = vector.load %arg2[%c1_282, %c1_283, %c0_284, %c0_285, %c0_286] : memref<2x4x4x16x16xf32, #tpu.memory_space<vmem>>, vector<1x1x1x16x16xf32>
    %886 = vector.shape_cast %885 : vector<1x1x1x16x16xf32> to vector<16x16xf32>
    %c1_287 = arith.constant 1 : index
    %c1_288 = arith.constant 1 : index
    %c0_289 = arith.constant 0 : index
    %c1_290 = arith.constant 1 : index
    %c0_291 = arith.constant 0 : index
    %887 = vector.load %arg2[%c1_287, %c1_288, %c0_289, %c1_290, %c0_291] : memref<2x4x4x16x16xf32, #tpu.memory_space<vmem>>, vector<1x1x1x15x16xf32>
    %888 = vector.shape_cast %887 : vector<1x1x1x15x16xf32> to vector<15x16xf32>
    %cst_292 = arith.constant 0.000000e+00 : f32
    %889 = vector.broadcast %cst_292 : f32 to vector<1x16xf32>
    %890 = tpu.concatenate %888, %889 in 0 : vector<15x16xf32>, vector<1x16xf32> -> vector<16x16xf32>
    %c36_293 = arith.constant 36 : index
    %891 = memref.load %arg3[%c36_293] : memref<144xf32, #tpu.memory_space<smem>>
    %892 = vector.broadcast %891 : f32 to vector<16x16xf32>
    %893 = arith.mulf %892, %890 : vector<16x16xf32>
    %894 = arith.addf %876, %893 : vector<16x16xf32>
    %c37_294 = arith.constant 37 : index
    %895 = memref.load %arg3[%c37_294] : memref<144xf32, #tpu.memory_space<smem>>
    %896 = vector.broadcast %895 : f32 to vector<16x16xf32>
    %897 = arith.mulf %896, %890 : vector<16x16xf32>
    %898 = arith.addf %880, %897 : vector<16x16xf32>
    %c38_295 = arith.constant 38 : index
    %899 = memref.load %arg3[%c38_295] : memref<144xf32, #tpu.memory_space<smem>>
    %900 = vector.broadcast %899 : f32 to vector<16x16xf32>
    %901 = arith.mulf %900, %890 : vector<16x16xf32>
    %902 = arith.addf %884, %901 : vector<16x16xf32>
    %c39_296 = arith.constant 39 : index
    %903 = memref.load %arg3[%c39_296] : memref<144xf32, #tpu.memory_space<smem>>
    %904 = vector.broadcast %903 : f32 to vector<16x16xf32>
    %905 = arith.mulf %904, %886 : vector<16x16xf32>
    %906 = arith.addf %864, %905 : vector<16x16xf32>
    %c40_297 = arith.constant 40 : index
    %907 = memref.load %arg3[%c40_297] : memref<144xf32, #tpu.memory_space<smem>>
    %908 = vector.broadcast %907 : f32 to vector<16x16xf32>
    %909 = arith.mulf %908, %886 : vector<16x16xf32>
    %910 = arith.addf %868, %909 : vector<16x16xf32>
    %c41_298 = arith.constant 41 : index
    %911 = memref.load %arg3[%c41_298] : memref<144xf32, #tpu.memory_space<smem>>
    %912 = vector.broadcast %911 : f32 to vector<16x16xf32>
    %913 = arith.mulf %912, %886 : vector<16x16xf32>
    %914 = arith.addf %872, %913 : vector<16x16xf32>
    %c42_299 = arith.constant 42 : index
    %915 = memref.load %arg3[%c42_299] : memref<144xf32, #tpu.memory_space<smem>>
    %916 = vector.broadcast %915 : f32 to vector<16x16xf32>
    %917 = arith.mulf %916, %886 : vector<16x16xf32>
    %918 = arith.addf %894, %917 : vector<16x16xf32>
    %c43_300 = arith.constant 43 : index
    %919 = memref.load %arg3[%c43_300] : memref<144xf32, #tpu.memory_space<smem>>
    %920 = vector.broadcast %919 : f32 to vector<16x16xf32>
    %921 = arith.mulf %920, %886 : vector<16x16xf32>
    %922 = arith.addf %898, %921 : vector<16x16xf32>
    %c44_301 = arith.constant 44 : index
    %923 = memref.load %arg3[%c44_301] : memref<144xf32, #tpu.memory_space<smem>>
    %924 = vector.broadcast %923 : f32 to vector<16x16xf32>
    %925 = arith.mulf %924, %886 : vector<16x16xf32>
    %926 = arith.addf %902, %925 : vector<16x16xf32>
    %c1_302 = arith.constant 1 : index
    %c1_303 = arith.constant 1 : index
    %c1_304 = arith.constant 1 : index
    %c0_305 = arith.constant 0 : index
    %c0_306 = arith.constant 0 : index
    %927 = vector.load %arg2[%c1_302, %c1_303, %c1_304, %c0_305, %c0_306] : memref<2x4x4x16x16xf32, #tpu.memory_space<vmem>>, vector<1x1x1x16x16xf32>
    %928 = vector.shape_cast %927 : vector<1x1x1x16x16xf32> to vector<16x16xf32>
    %c1_307 = arith.constant 1 : index
    %c1_308 = arith.constant 1 : index
    %c1_309 = arith.constant 1 : index
    %c1_310 = arith.constant 1 : index
    %c0_311 = arith.constant 0 : index
    %929 = vector.load %arg2[%c1_307, %c1_308, %c1_309, %c1_310, %c0_311] : memref<2x4x4x16x16xf32, #tpu.memory_space<vmem>>, vector<1x1x1x15x16xf32>
    %930 = vector.shape_cast %929 : vector<1x1x1x15x16xf32> to vector<15x16xf32>
    %cst_312 = arith.constant 0.000000e+00 : f32
    %931 = vector.broadcast %cst_312 : f32 to vector<1x16xf32>
    %932 = tpu.concatenate %930, %931 in 0 : vector<15x16xf32>, vector<1x16xf32> -> vector<16x16xf32>
    %c45_313 = arith.constant 45 : index
    %933 = memref.load %arg3[%c45_313] : memref<144xf32, #tpu.memory_space<smem>>
    %934 = vector.broadcast %933 : f32 to vector<16x16xf32>
    %935 = arith.mulf %934, %932 : vector<16x16xf32>
    %936 = arith.addf %918, %935 : vector<16x16xf32>
    %c46_314 = arith.constant 46 : index
    %937 = memref.load %arg3[%c46_314] : memref<144xf32, #tpu.memory_space<smem>>
    %938 = vector.broadcast %937 : f32 to vector<16x16xf32>
    %939 = arith.mulf %938, %932 : vector<16x16xf32>
    %940 = arith.addf %922, %939 : vector<16x16xf32>
    %c47_315 = arith.constant 47 : index
    %941 = memref.load %arg3[%c47_315] : memref<144xf32, #tpu.memory_space<smem>>
    %942 = vector.broadcast %941 : f32 to vector<16x16xf32>
    %943 = arith.mulf %942, %932 : vector<16x16xf32>
    %944 = arith.addf %926, %943 : vector<16x16xf32>
    %c48_316 = arith.constant 48 : index
    %945 = memref.load %arg3[%c48_316] : memref<144xf32, #tpu.memory_space<smem>>
    %946 = vector.broadcast %945 : f32 to vector<16x16xf32>
    %947 = arith.mulf %946, %928 : vector<16x16xf32>
    %948 = arith.addf %906, %947 : vector<16x16xf32>
    %c49_317 = arith.constant 49 : index
    %949 = memref.load %arg3[%c49_317] : memref<144xf32, #tpu.memory_space<smem>>
    %950 = vector.broadcast %949 : f32 to vector<16x16xf32>
    %951 = arith.mulf %950, %928 : vector<16x16xf32>
    %952 = arith.addf %910, %951 : vector<16x16xf32>
    %c50_318 = arith.constant 50 : index
    %953 = memref.load %arg3[%c50_318] : memref<144xf32, #tpu.memory_space<smem>>
    %954 = vector.broadcast %953 : f32 to vector<16x16xf32>
    %955 = arith.mulf %954, %928 : vector<16x16xf32>
    %956 = arith.addf %914, %955 : vector<16x16xf32>
    %c51_319 = arith.constant 51 : index
    %957 = memref.load %arg3[%c51_319] : memref<144xf32, #tpu.memory_space<smem>>
    %958 = vector.broadcast %957 : f32 to vector<16x16xf32>
    %959 = arith.mulf %958, %928 : vector<16x16xf32>
    %960 = arith.addf %936, %959 : vector<16x16xf32>
    %c52_320 = arith.constant 52 : index
    %961 = memref.load %arg3[%c52_320] : memref<144xf32, #tpu.memory_space<smem>>
    %962 = vector.broadcast %961 : f32 to vector<16x16xf32>
    %963 = arith.mulf %962, %928 : vector<16x16xf32>
    %964 = arith.addf %940, %963 : vector<16x16xf32>
    %c53_321 = arith.constant 53 : index
    %965 = memref.load %arg3[%c53_321] : memref<144xf32, #tpu.memory_space<smem>>
    %966 = vector.broadcast %965 : f32 to vector<16x16xf32>
    %967 = arith.mulf %966, %928 : vector<16x16xf32>
    %968 = arith.addf %944, %967 : vector<16x16xf32>
    %c1_322 = arith.constant 1 : index
    %c1_323 = arith.constant 1 : index
    %c2_324 = arith.constant 2 : index
    %c0_325 = arith.constant 0 : index
    %c0_326 = arith.constant 0 : index
    %969 = vector.load %arg2[%c1_322, %c1_323, %c2_324, %c0_325, %c0_326] : memref<2x4x4x16x16xf32, #tpu.memory_space<vmem>>, vector<1x1x1x16x16xf32>
    %970 = vector.shape_cast %969 : vector<1x1x1x16x16xf32> to vector<16x16xf32>
    %c1_327 = arith.constant 1 : index
    %c1_328 = arith.constant 1 : index
    %c2_329 = arith.constant 2 : index
    %c1_330 = arith.constant 1 : index
    %c0_331 = arith.constant 0 : index
    %971 = vector.load %arg2[%c1_327, %c1_328, %c2_329, %c1_330, %c0_331] : memref<2x4x4x16x16xf32, #tpu.memory_space<vmem>>, vector<1x1x1x15x16xf32>
    %972 = vector.shape_cast %971 : vector<1x1x1x15x16xf32> to vector<15x16xf32>
    %cst_332 = arith.constant 0.000000e+00 : f32
    %973 = vector.broadcast %cst_332 : f32 to vector<1x16xf32>
    %974 = tpu.concatenate %972, %973 in 0 : vector<15x16xf32>, vector<1x16xf32> -> vector<16x16xf32>
    %c54_333 = arith.constant 54 : index
    %975 = memref.load %arg3[%c54_333] : memref<144xf32, #tpu.memory_space<smem>>
    %976 = vector.broadcast %975 : f32 to vector<16x16xf32>
    %977 = arith.mulf %976, %974 : vector<16x16xf32>
    %978 = arith.addf %960, %977 : vector<16x16xf32>
    %c55_334 = arith.constant 55 : index
    %979 = memref.load %arg3[%c55_334] : memref<144xf32, #tpu.memory_space<smem>>
    %980 = vector.broadcast %979 : f32 to vector<16x16xf32>
    %981 = arith.mulf %980, %974 : vector<16x16xf32>
    %982 = arith.addf %964, %981 : vector<16x16xf32>
    %c56_335 = arith.constant 56 : index
    %983 = memref.load %arg3[%c56_335] : memref<144xf32, #tpu.memory_space<smem>>
    %984 = vector.broadcast %983 : f32 to vector<16x16xf32>
    %985 = arith.mulf %984, %974 : vector<16x16xf32>
    %986 = arith.addf %968, %985 : vector<16x16xf32>
    %c57_336 = arith.constant 57 : index
    %987 = memref.load %arg3[%c57_336] : memref<144xf32, #tpu.memory_space<smem>>
    %988 = vector.broadcast %987 : f32 to vector<16x16xf32>
    %989 = arith.mulf %988, %970 : vector<16x16xf32>
    %990 = arith.addf %948, %989 : vector<16x16xf32>
    %c58_337 = arith.constant 58 : index
    %991 = memref.load %arg3[%c58_337] : memref<144xf32, #tpu.memory_space<smem>>
    %992 = vector.broadcast %991 : f32 to vector<16x16xf32>
    %993 = arith.mulf %992, %970 : vector<16x16xf32>
    %994 = arith.addf %952, %993 : vector<16x16xf32>
    %c59_338 = arith.constant 59 : index
    %995 = memref.load %arg3[%c59_338] : memref<144xf32, #tpu.memory_space<smem>>
    %996 = vector.broadcast %995 : f32 to vector<16x16xf32>
    %997 = arith.mulf %996, %970 : vector<16x16xf32>
    %998 = arith.addf %956, %997 : vector<16x16xf32>
    %c60_339 = arith.constant 60 : index
    %999 = memref.load %arg3[%c60_339] : memref<144xf32, #tpu.memory_space<smem>>
    %1000 = vector.broadcast %999 : f32 to vector<16x16xf32>
    %1001 = arith.mulf %1000, %970 : vector<16x16xf32>
    %1002 = arith.addf %978, %1001 : vector<16x16xf32>
    %c61_340 = arith.constant 61 : index
    %1003 = memref.load %arg3[%c61_340] : memref<144xf32, #tpu.memory_space<smem>>
    %1004 = vector.broadcast %1003 : f32 to vector<16x16xf32>
    %1005 = arith.mulf %1004, %970 : vector<16x16xf32>
    %1006 = arith.addf %982, %1005 : vector<16x16xf32>
    %c62_341 = arith.constant 62 : index
    %1007 = memref.load %arg3[%c62_341] : memref<144xf32, #tpu.memory_space<smem>>
    %1008 = vector.broadcast %1007 : f32 to vector<16x16xf32>
    %1009 = arith.mulf %1008, %970 : vector<16x16xf32>
    %1010 = arith.addf %986, %1009 : vector<16x16xf32>
    %c1_342 = arith.constant 1 : index
    %c1_343 = arith.constant 1 : index
    %c3_344 = arith.constant 3 : index
    %c0_345 = arith.constant 0 : index
    %c0_346 = arith.constant 0 : index
    %1011 = vector.load %arg2[%c1_342, %c1_343, %c3_344, %c0_345, %c0_346] : memref<2x4x4x16x16xf32, #tpu.memory_space<vmem>>, vector<1x1x1x16x16xf32>
    %1012 = vector.shape_cast %1011 : vector<1x1x1x16x16xf32> to vector<16x16xf32>
    %c1_347 = arith.constant 1 : index
    %c1_348 = arith.constant 1 : index
    %c3_349 = arith.constant 3 : index
    %c1_350 = arith.constant 1 : index
    %c0_351 = arith.constant 0 : index
    %1013 = vector.load %arg2[%c1_347, %c1_348, %c3_349, %c1_350, %c0_351] : memref<2x4x4x16x16xf32, #tpu.memory_space<vmem>>, vector<1x1x1x15x16xf32>
    %1014 = vector.shape_cast %1013 : vector<1x1x1x15x16xf32> to vector<15x16xf32>
    %cst_352 = arith.constant 0.000000e+00 : f32
    %1015 = vector.broadcast %cst_352 : f32 to vector<1x16xf32>
    %1016 = tpu.concatenate %1014, %1015 in 0 : vector<15x16xf32>, vector<1x16xf32> -> vector<16x16xf32>
    %c63_353 = arith.constant 63 : index
    %1017 = memref.load %arg3[%c63_353] : memref<144xf32, #tpu.memory_space<smem>>
    %1018 = vector.broadcast %1017 : f32 to vector<16x16xf32>
    %1019 = arith.mulf %1018, %1016 : vector<16x16xf32>
    %1020 = arith.addf %1002, %1019 : vector<16x16xf32>
    %c64_354 = arith.constant 64 : index
    %1021 = memref.load %arg3[%c64_354] : memref<144xf32, #tpu.memory_space<smem>>
    %1022 = vector.broadcast %1021 : f32 to vector<16x16xf32>
    %1023 = arith.mulf %1022, %1016 : vector<16x16xf32>
    %1024 = arith.addf %1006, %1023 : vector<16x16xf32>
    %c65_355 = arith.constant 65 : index
    %1025 = memref.load %arg3[%c65_355] : memref<144xf32, #tpu.memory_space<smem>>
    %1026 = vector.broadcast %1025 : f32 to vector<16x16xf32>
    %1027 = arith.mulf %1026, %1016 : vector<16x16xf32>
    %1028 = arith.addf %1010, %1027 : vector<16x16xf32>
    %c66_356 = arith.constant 66 : index
    %1029 = memref.load %arg3[%c66_356] : memref<144xf32, #tpu.memory_space<smem>>
    %1030 = vector.broadcast %1029 : f32 to vector<16x16xf32>
    %1031 = arith.mulf %1030, %1012 : vector<16x16xf32>
    %1032 = arith.addf %990, %1031 : vector<16x16xf32>
    %c67_357 = arith.constant 67 : index
    %1033 = memref.load %arg3[%c67_357] : memref<144xf32, #tpu.memory_space<smem>>
    %1034 = vector.broadcast %1033 : f32 to vector<16x16xf32>
    %1035 = arith.mulf %1034, %1012 : vector<16x16xf32>
    %1036 = arith.addf %994, %1035 : vector<16x16xf32>
    %c68_358 = arith.constant 68 : index
    %1037 = memref.load %arg3[%c68_358] : memref<144xf32, #tpu.memory_space<smem>>
    %1038 = vector.broadcast %1037 : f32 to vector<16x16xf32>
    %1039 = arith.mulf %1038, %1012 : vector<16x16xf32>
    %1040 = arith.addf %998, %1039 : vector<16x16xf32>
    %c69_359 = arith.constant 69 : index
    %1041 = memref.load %arg3[%c69_359] : memref<144xf32, #tpu.memory_space<smem>>
    %1042 = vector.broadcast %1041 : f32 to vector<16x16xf32>
    %1043 = arith.mulf %1042, %1012 : vector<16x16xf32>
    %1044 = arith.addf %1020, %1043 : vector<16x16xf32>
    %c70_360 = arith.constant 70 : index
    %1045 = memref.load %arg3[%c70_360] : memref<144xf32, #tpu.memory_space<smem>>
    %1046 = vector.broadcast %1045 : f32 to vector<16x16xf32>
    %1047 = arith.mulf %1046, %1012 : vector<16x16xf32>
    %1048 = arith.addf %1024, %1047 : vector<16x16xf32>
    %c71_361 = arith.constant 71 : index
    %1049 = memref.load %arg3[%c71_361] : memref<144xf32, #tpu.memory_space<smem>>
    %1050 = vector.broadcast %1049 : f32 to vector<16x16xf32>
    %1051 = arith.mulf %1050, %1012 : vector<16x16xf32>
    %1052 = arith.addf %1028, %1051 : vector<16x16xf32>
    %c1_362 = arith.constant 1 : index
    %c2_363 = arith.constant 2 : index
    %c0_364 = arith.constant 0 : index
    %c0_365 = arith.constant 0 : index
    %c0_366 = arith.constant 0 : index
    %1053 = vector.load %arg2[%c1_362, %c2_363, %c0_364, %c0_365, %c0_366] : memref<2x4x4x16x16xf32, #tpu.memory_space<vmem>>, vector<1x1x1x16x16xf32>
    %1054 = vector.shape_cast %1053 : vector<1x1x1x16x16xf32> to vector<16x16xf32>
    %c1_367 = arith.constant 1 : index
    %c2_368 = arith.constant 2 : index
    %c0_369 = arith.constant 0 : index
    %c1_370 = arith.constant 1 : index
    %c0_371 = arith.constant 0 : index
    %1055 = vector.load %arg2[%c1_367, %c2_368, %c0_369, %c1_370, %c0_371] : memref<2x4x4x16x16xf32, #tpu.memory_space<vmem>>, vector<1x1x1x15x16xf32>
    %1056 = vector.shape_cast %1055 : vector<1x1x1x15x16xf32> to vector<15x16xf32>
    %cst_372 = arith.constant 0.000000e+00 : f32
    %1057 = vector.broadcast %cst_372 : f32 to vector<1x16xf32>
    %1058 = tpu.concatenate %1056, %1057 in 0 : vector<15x16xf32>, vector<1x16xf32> -> vector<16x16xf32>
    %c72_373 = arith.constant 72 : index
    %1059 = memref.load %arg3[%c72_373] : memref<144xf32, #tpu.memory_space<smem>>
    %1060 = vector.broadcast %1059 : f32 to vector<16x16xf32>
    %1061 = arith.mulf %1060, %1058 : vector<16x16xf32>
    %1062 = arith.addf %1044, %1061 : vector<16x16xf32>
    %c73_374 = arith.constant 73 : index
    %1063 = memref.load %arg3[%c73_374] : memref<144xf32, #tpu.memory_space<smem>>
    %1064 = vector.broadcast %1063 : f32 to vector<16x16xf32>
    %1065 = arith.mulf %1064, %1058 : vector<16x16xf32>
    %1066 = arith.addf %1048, %1065 : vector<16x16xf32>
    %c74_375 = arith.constant 74 : index
    %1067 = memref.load %arg3[%c74_375] : memref<144xf32, #tpu.memory_space<smem>>
    %1068 = vector.broadcast %1067 : f32 to vector<16x16xf32>
    %1069 = arith.mulf %1068, %1058 : vector<16x16xf32>
    %1070 = arith.addf %1052, %1069 : vector<16x16xf32>
    %c75_376 = arith.constant 75 : index
    %1071 = memref.load %arg3[%c75_376] : memref<144xf32, #tpu.memory_space<smem>>
    %1072 = vector.broadcast %1071 : f32 to vector<16x16xf32>
    %1073 = arith.mulf %1072, %1054 : vector<16x16xf32>
    %1074 = arith.addf %1032, %1073 : vector<16x16xf32>
    %c76_377 = arith.constant 76 : index
    %1075 = memref.load %arg3[%c76_377] : memref<144xf32, #tpu.memory_space<smem>>
    %1076 = vector.broadcast %1075 : f32 to vector<16x16xf32>
    %1077 = arith.mulf %1076, %1054 : vector<16x16xf32>
    %1078 = arith.addf %1036, %1077 : vector<16x16xf32>
    %c77_378 = arith.constant 77 : index
    %1079 = memref.load %arg3[%c77_378] : memref<144xf32, #tpu.memory_space<smem>>
    %1080 = vector.broadcast %1079 : f32 to vector<16x16xf32>
    %1081 = arith.mulf %1080, %1054 : vector<16x16xf32>
    %1082 = arith.addf %1040, %1081 : vector<16x16xf32>
    %c78_379 = arith.constant 78 : index
    %1083 = memref.load %arg3[%c78_379] : memref<144xf32, #tpu.memory_space<smem>>
    %1084 = vector.broadcast %1083 : f32 to vector<16x16xf32>
    %1085 = arith.mulf %1084, %1054 : vector<16x16xf32>
    %1086 = arith.addf %1062, %1085 : vector<16x16xf32>
    %c79_380 = arith.constant 79 : index
    %1087 = memref.load %arg3[%c79_380] : memref<144xf32, #tpu.memory_space<smem>>
    %1088 = vector.broadcast %1087 : f32 to vector<16x16xf32>
    %1089 = arith.mulf %1088, %1054 : vector<16x16xf32>
    %1090 = arith.addf %1066, %1089 : vector<16x16xf32>
    %c80_381 = arith.constant 80 : index
    %1091 = memref.load %arg3[%c80_381] : memref<144xf32, #tpu.memory_space<smem>>
    %1092 = vector.broadcast %1091 : f32 to vector<16x16xf32>
    %1093 = arith.mulf %1092, %1054 : vector<16x16xf32>
    %1094 = arith.addf %1070, %1093 : vector<16x16xf32>
    %c1_382 = arith.constant 1 : index
    %c2_383 = arith.constant 2 : index
    %c1_384 = arith.constant 1 : index
    %c0_385 = arith.constant 0 : index
    %c0_386 = arith.constant 0 : index
    %1095 = vector.load %arg2[%c1_382, %c2_383, %c1_384, %c0_385, %c0_386] : memref<2x4x4x16x16xf32, #tpu.memory_space<vmem>>, vector<1x1x1x16x16xf32>
    %1096 = vector.shape_cast %1095 : vector<1x1x1x16x16xf32> to vector<16x16xf32>
    %c1_387 = arith.constant 1 : index
    %c2_388 = arith.constant 2 : index
    %c1_389 = arith.constant 1 : index
    %c1_390 = arith.constant 1 : index
    %c0_391 = arith.constant 0 : index
    %1097 = vector.load %arg2[%c1_387, %c2_388, %c1_389, %c1_390, %c0_391] : memref<2x4x4x16x16xf32, #tpu.memory_space<vmem>>, vector<1x1x1x15x16xf32>
    %1098 = vector.shape_cast %1097 : vector<1x1x1x15x16xf32> to vector<15x16xf32>
    %cst_392 = arith.constant 0.000000e+00 : f32
    %1099 = vector.broadcast %cst_392 : f32 to vector<1x16xf32>
    %1100 = tpu.concatenate %1098, %1099 in 0 : vector<15x16xf32>, vector<1x16xf32> -> vector<16x16xf32>
    %c81_393 = arith.constant 81 : index
    %1101 = memref.load %arg3[%c81_393] : memref<144xf32, #tpu.memory_space<smem>>
    %1102 = vector.broadcast %1101 : f32 to vector<16x16xf32>
    %1103 = arith.mulf %1102, %1100 : vector<16x16xf32>
    %1104 = arith.addf %1086, %1103 : vector<16x16xf32>
    %c82_394 = arith.constant 82 : index
    %1105 = memref.load %arg3[%c82_394] : memref<144xf32, #tpu.memory_space<smem>>
    %1106 = vector.broadcast %1105 : f32 to vector<16x16xf32>
    %1107 = arith.mulf %1106, %1100 : vector<16x16xf32>
    %1108 = arith.addf %1090, %1107 : vector<16x16xf32>
    %c83_395 = arith.constant 83 : index
    %1109 = memref.load %arg3[%c83_395] : memref<144xf32, #tpu.memory_space<smem>>
    %1110 = vector.broadcast %1109 : f32 to vector<16x16xf32>
    %1111 = arith.mulf %1110, %1100 : vector<16x16xf32>
    %1112 = arith.addf %1094, %1111 : vector<16x16xf32>
    %c84_396 = arith.constant 84 : index
    %1113 = memref.load %arg3[%c84_396] : memref<144xf32, #tpu.memory_space<smem>>
    %1114 = vector.broadcast %1113 : f32 to vector<16x16xf32>
    %1115 = arith.mulf %1114, %1096 : vector<16x16xf32>
    %1116 = arith.addf %1074, %1115 : vector<16x16xf32>
    %c85_397 = arith.constant 85 : index
    %1117 = memref.load %arg3[%c85_397] : memref<144xf32, #tpu.memory_space<smem>>
    %1118 = vector.broadcast %1117 : f32 to vector<16x16xf32>
    %1119 = arith.mulf %1118, %1096 : vector<16x16xf32>
    %1120 = arith.addf %1078, %1119 : vector<16x16xf32>
    %c86_398 = arith.constant 86 : index
    %1121 = memref.load %arg3[%c86_398] : memref<144xf32, #tpu.memory_space<smem>>
    %1122 = vector.broadcast %1121 : f32 to vector<16x16xf32>
    %1123 = arith.mulf %1122, %1096 : vector<16x16xf32>
    %1124 = arith.addf %1082, %1123 : vector<16x16xf32>
    %c87_399 = arith.constant 87 : index
    %1125 = memref.load %arg3[%c87_399] : memref<144xf32, #tpu.memory_space<smem>>
    %1126 = vector.broadcast %1125 : f32 to vector<16x16xf32>
    %1127 = arith.mulf %1126, %1096 : vector<16x16xf32>
    %1128 = arith.addf %1104, %1127 : vector<16x16xf32>
    %c88_400 = arith.constant 88 : index
    %1129 = memref.load %arg3[%c88_400] : memref<144xf32, #tpu.memory_space<smem>>
    %1130 = vector.broadcast %1129 : f32 to vector<16x16xf32>
    %1131 = arith.mulf %1130, %1096 : vector<16x16xf32>
    %1132 = arith.addf %1108, %1131 : vector<16x16xf32>
    %c89_401 = arith.constant 89 : index
    %1133 = memref.load %arg3[%c89_401] : memref<144xf32, #tpu.memory_space<smem>>
    %1134 = vector.broadcast %1133 : f32 to vector<16x16xf32>
    %1135 = arith.mulf %1134, %1096 : vector<16x16xf32>
    %1136 = arith.addf %1112, %1135 : vector<16x16xf32>
    %c1_402 = arith.constant 1 : index
    %c2_403 = arith.constant 2 : index
    %c2_404 = arith.constant 2 : index
    %c0_405 = arith.constant 0 : index
    %c0_406 = arith.constant 0 : index
    %1137 = vector.load %arg2[%c1_402, %c2_403, %c2_404, %c0_405, %c0_406] : memref<2x4x4x16x16xf32, #tpu.memory_space<vmem>>, vector<1x1x1x16x16xf32>
    %1138 = vector.shape_cast %1137 : vector<1x1x1x16x16xf32> to vector<16x16xf32>
    %c1_407 = arith.constant 1 : index
    %c2_408 = arith.constant 2 : index
    %c2_409 = arith.constant 2 : index
    %c1_410 = arith.constant 1 : index
    %c0_411 = arith.constant 0 : index
    %1139 = vector.load %arg2[%c1_407, %c2_408, %c2_409, %c1_410, %c0_411] : memref<2x4x4x16x16xf32, #tpu.memory_space<vmem>>, vector<1x1x1x15x16xf32>
    %1140 = vector.shape_cast %1139 : vector<1x1x1x15x16xf32> to vector<15x16xf32>
    %cst_412 = arith.constant 0.000000e+00 : f32
    %1141 = vector.broadcast %cst_412 : f32 to vector<1x16xf32>
    %1142 = tpu.concatenate %1140, %1141 in 0 : vector<15x16xf32>, vector<1x16xf32> -> vector<16x16xf32>
    %c90_413 = arith.constant 90 : index
    %1143 = memref.load %arg3[%c90_413] : memref<144xf32, #tpu.memory_space<smem>>
    %1144 = vector.broadcast %1143 : f32 to vector<16x16xf32>
    %1145 = arith.mulf %1144, %1142 : vector<16x16xf32>
    %1146 = arith.addf %1128, %1145 : vector<16x16xf32>
    %c91_414 = arith.constant 91 : index
    %1147 = memref.load %arg3[%c91_414] : memref<144xf32, #tpu.memory_space<smem>>
    %1148 = vector.broadcast %1147 : f32 to vector<16x16xf32>
    %1149 = arith.mulf %1148, %1142 : vector<16x16xf32>
    %1150 = arith.addf %1132, %1149 : vector<16x16xf32>
    %c92_415 = arith.constant 92 : index
    %1151 = memref.load %arg3[%c92_415] : memref<144xf32, #tpu.memory_space<smem>>
    %1152 = vector.broadcast %1151 : f32 to vector<16x16xf32>
    %1153 = arith.mulf %1152, %1142 : vector<16x16xf32>
    %1154 = arith.addf %1136, %1153 : vector<16x16xf32>
    %c93_416 = arith.constant 93 : index
    %1155 = memref.load %arg3[%c93_416] : memref<144xf32, #tpu.memory_space<smem>>
    %1156 = vector.broadcast %1155 : f32 to vector<16x16xf32>
    %1157 = arith.mulf %1156, %1138 : vector<16x16xf32>
    %1158 = arith.addf %1116, %1157 : vector<16x16xf32>
    %c94_417 = arith.constant 94 : index
    %1159 = memref.load %arg3[%c94_417] : memref<144xf32, #tpu.memory_space<smem>>
    %1160 = vector.broadcast %1159 : f32 to vector<16x16xf32>
    %1161 = arith.mulf %1160, %1138 : vector<16x16xf32>
    %1162 = arith.addf %1120, %1161 : vector<16x16xf32>
    %c95_418 = arith.constant 95 : index
    %1163 = memref.load %arg3[%c95_418] : memref<144xf32, #tpu.memory_space<smem>>
    %1164 = vector.broadcast %1163 : f32 to vector<16x16xf32>
    %1165 = arith.mulf %1164, %1138 : vector<16x16xf32>
    %1166 = arith.addf %1124, %1165 : vector<16x16xf32>
    %c96_419 = arith.constant 96 : index
    %1167 = memref.load %arg3[%c96_419] : memref<144xf32, #tpu.memory_space<smem>>
    %1168 = vector.broadcast %1167 : f32 to vector<16x16xf32>
    %1169 = arith.mulf %1168, %1138 : vector<16x16xf32>
    %1170 = arith.addf %1146, %1169 : vector<16x16xf32>
    %c97_420 = arith.constant 97 : index
    %1171 = memref.load %arg3[%c97_420] : memref<144xf32, #tpu.memory_space<smem>>
    %1172 = vector.broadcast %1171 : f32 to vector<16x16xf32>
    %1173 = arith.mulf %1172, %1138 : vector<16x16xf32>
    %1174 = arith.addf %1150, %1173 : vector<16x16xf32>
    %c98_421 = arith.constant 98 : index
    %1175 = memref.load %arg3[%c98_421] : memref<144xf32, #tpu.memory_space<smem>>
    %1176 = vector.broadcast %1175 : f32 to vector<16x16xf32>
    %1177 = arith.mulf %1176, %1138 : vector<16x16xf32>
    %1178 = arith.addf %1154, %1177 : vector<16x16xf32>
    %c1_422 = arith.constant 1 : index
    %c2_423 = arith.constant 2 : index
    %c3_424 = arith.constant 3 : index
    %c0_425 = arith.constant 0 : index
    %c0_426 = arith.constant 0 : index
    %1179 = vector.load %arg2[%c1_422, %c2_423, %c3_424, %c0_425, %c0_426] : memref<2x4x4x16x16xf32, #tpu.memory_space<vmem>>, vector<1x1x1x16x16xf32>
    %1180 = vector.shape_cast %1179 : vector<1x1x1x16x16xf32> to vector<16x16xf32>
    %c1_427 = arith.constant 1 : index
    %c2_428 = arith.constant 2 : index
    %c3_429 = arith.constant 3 : index
    %c1_430 = arith.constant 1 : index
    %c0_431 = arith.constant 0 : index
    %1181 = vector.load %arg2[%c1_427, %c2_428, %c3_429, %c1_430, %c0_431] : memref<2x4x4x16x16xf32, #tpu.memory_space<vmem>>, vector<1x1x1x15x16xf32>
    %1182 = vector.shape_cast %1181 : vector<1x1x1x15x16xf32> to vector<15x16xf32>
    %cst_432 = arith.constant 0.000000e+00 : f32
    %1183 = vector.broadcast %cst_432 : f32 to vector<1x16xf32>
    %1184 = tpu.concatenate %1182, %1183 in 0 : vector<15x16xf32>, vector<1x16xf32> -> vector<16x16xf32>
    %c99_433 = arith.constant 99 : index
    %1185 = memref.load %arg3[%c99_433] : memref<144xf32, #tpu.memory_space<smem>>
    %1186 = vector.broadcast %1185 : f32 to vector<16x16xf32>
    %1187 = arith.mulf %1186, %1184 : vector<16x16xf32>
    %1188 = arith.addf %1170, %1187 : vector<16x16xf32>
    %c100_434 = arith.constant 100 : index
    %1189 = memref.load %arg3[%c100_434] : memref<144xf32, #tpu.memory_space<smem>>
    %1190 = vector.broadcast %1189 : f32 to vector<16x16xf32>
    %1191 = arith.mulf %1190, %1184 : vector<16x16xf32>
    %1192 = arith.addf %1174, %1191 : vector<16x16xf32>
    %c101_435 = arith.constant 101 : index
    %1193 = memref.load %arg3[%c101_435] : memref<144xf32, #tpu.memory_space<smem>>
    %1194 = vector.broadcast %1193 : f32 to vector<16x16xf32>
    %1195 = arith.mulf %1194, %1184 : vector<16x16xf32>
    %1196 = arith.addf %1178, %1195 : vector<16x16xf32>
    %c102_436 = arith.constant 102 : index
    %1197 = memref.load %arg3[%c102_436] : memref<144xf32, #tpu.memory_space<smem>>
    %1198 = vector.broadcast %1197 : f32 to vector<16x16xf32>
    %1199 = arith.mulf %1198, %1180 : vector<16x16xf32>
    %1200 = arith.addf %1158, %1199 : vector<16x16xf32>
    %c103_437 = arith.constant 103 : index
    %1201 = memref.load %arg3[%c103_437] : memref<144xf32, #tpu.memory_space<smem>>
    %1202 = vector.broadcast %1201 : f32 to vector<16x16xf32>
    %1203 = arith.mulf %1202, %1180 : vector<16x16xf32>
    %1204 = arith.addf %1162, %1203 : vector<16x16xf32>
    %c104_438 = arith.constant 104 : index
    %1205 = memref.load %arg3[%c104_438] : memref<144xf32, #tpu.memory_space<smem>>
    %1206 = vector.broadcast %1205 : f32 to vector<16x16xf32>
    %1207 = arith.mulf %1206, %1180 : vector<16x16xf32>
    %1208 = arith.addf %1166, %1207 : vector<16x16xf32>
    %c105_439 = arith.constant 105 : index
    %1209 = memref.load %arg3[%c105_439] : memref<144xf32, #tpu.memory_space<smem>>
    %1210 = vector.broadcast %1209 : f32 to vector<16x16xf32>
    %1211 = arith.mulf %1210, %1180 : vector<16x16xf32>
    %1212 = arith.addf %1188, %1211 : vector<16x16xf32>
    %c106_440 = arith.constant 106 : index
    %1213 = memref.load %arg3[%c106_440] : memref<144xf32, #tpu.memory_space<smem>>
    %1214 = vector.broadcast %1213 : f32 to vector<16x16xf32>
    %1215 = arith.mulf %1214, %1180 : vector<16x16xf32>
    %1216 = arith.addf %1192, %1215 : vector<16x16xf32>
    %c107_441 = arith.constant 107 : index
    %1217 = memref.load %arg3[%c107_441] : memref<144xf32, #tpu.memory_space<smem>>
    %1218 = vector.broadcast %1217 : f32 to vector<16x16xf32>
    %1219 = arith.mulf %1218, %1180 : vector<16x16xf32>
    %1220 = arith.addf %1196, %1219 : vector<16x16xf32>
    %c1_442 = arith.constant 1 : index
    %c3_443 = arith.constant 3 : index
    %c0_444 = arith.constant 0 : index
    %c0_445 = arith.constant 0 : index
    %c0_446 = arith.constant 0 : index
    %1221 = vector.load %arg2[%c1_442, %c3_443, %c0_444, %c0_445, %c0_446] : memref<2x4x4x16x16xf32, #tpu.memory_space<vmem>>, vector<1x1x1x16x16xf32>
    %1222 = vector.shape_cast %1221 : vector<1x1x1x16x16xf32> to vector<16x16xf32>
    %c1_447 = arith.constant 1 : index
    %c3_448 = arith.constant 3 : index
    %c0_449 = arith.constant 0 : index
    %c1_450 = arith.constant 1 : index
    %c0_451 = arith.constant 0 : index
    %1223 = vector.load %arg2[%c1_447, %c3_448, %c0_449, %c1_450, %c0_451] : memref<2x4x4x16x16xf32, #tpu.memory_space<vmem>>, vector<1x1x1x15x16xf32>
    %1224 = vector.shape_cast %1223 : vector<1x1x1x15x16xf32> to vector<15x16xf32>
    %cst_452 = arith.constant 0.000000e+00 : f32
    %1225 = vector.broadcast %cst_452 : f32 to vector<1x16xf32>
    %1226 = tpu.concatenate %1224, %1225 in 0 : vector<15x16xf32>, vector<1x16xf32> -> vector<16x16xf32>
    %c108_453 = arith.constant 108 : index
    %1227 = memref.load %arg3[%c108_453] : memref<144xf32, #tpu.memory_space<smem>>
    %1228 = vector.broadcast %1227 : f32 to vector<16x16xf32>
    %1229 = arith.mulf %1228, %1226 : vector<16x16xf32>
    %1230 = arith.addf %1212, %1229 : vector<16x16xf32>
    %c109_454 = arith.constant 109 : index
    %1231 = memref.load %arg3[%c109_454] : memref<144xf32, #tpu.memory_space<smem>>
    %1232 = vector.broadcast %1231 : f32 to vector<16x16xf32>
    %1233 = arith.mulf %1232, %1226 : vector<16x16xf32>
    %1234 = arith.addf %1216, %1233 : vector<16x16xf32>
    %c110_455 = arith.constant 110 : index
    %1235 = memref.load %arg3[%c110_455] : memref<144xf32, #tpu.memory_space<smem>>
    %1236 = vector.broadcast %1235 : f32 to vector<16x16xf32>
    %1237 = arith.mulf %1236, %1226 : vector<16x16xf32>
    %1238 = arith.addf %1220, %1237 : vector<16x16xf32>
    %c111_456 = arith.constant 111 : index
    %1239 = memref.load %arg3[%c111_456] : memref<144xf32, #tpu.memory_space<smem>>
    %1240 = vector.broadcast %1239 : f32 to vector<16x16xf32>
    %1241 = arith.mulf %1240, %1222 : vector<16x16xf32>
    %1242 = arith.addf %1200, %1241 : vector<16x16xf32>
    %c112_457 = arith.constant 112 : index
    %1243 = memref.load %arg3[%c112_457] : memref<144xf32, #tpu.memory_space<smem>>
    %1244 = vector.broadcast %1243 : f32 to vector<16x16xf32>
    %1245 = arith.mulf %1244, %1222 : vector<16x16xf32>
    %1246 = arith.addf %1204, %1245 : vector<16x16xf32>
    %c113_458 = arith.constant 113 : index
    %1247 = memref.load %arg3[%c113_458] : memref<144xf32, #tpu.memory_space<smem>>
    %1248 = vector.broadcast %1247 : f32 to vector<16x16xf32>
    %1249 = arith.mulf %1248, %1222 : vector<16x16xf32>
    %1250 = arith.addf %1208, %1249 : vector<16x16xf32>
    %c114_459 = arith.constant 114 : index
    %1251 = memref.load %arg3[%c114_459] : memref<144xf32, #tpu.memory_space<smem>>
    %1252 = vector.broadcast %1251 : f32 to vector<16x16xf32>
    %1253 = arith.mulf %1252, %1222 : vector<16x16xf32>
    %1254 = arith.addf %1230, %1253 : vector<16x16xf32>
    %c115_460 = arith.constant 115 : index
    %1255 = memref.load %arg3[%c115_460] : memref<144xf32, #tpu.memory_space<smem>>
    %1256 = vector.broadcast %1255 : f32 to vector<16x16xf32>
    %1257 = arith.mulf %1256, %1222 : vector<16x16xf32>
    %1258 = arith.addf %1234, %1257 : vector<16x16xf32>
    %c116_461 = arith.constant 116 : index
    %1259 = memref.load %arg3[%c116_461] : memref<144xf32, #tpu.memory_space<smem>>
    %1260 = vector.broadcast %1259 : f32 to vector<16x16xf32>
    %1261 = arith.mulf %1260, %1222 : vector<16x16xf32>
    %1262 = arith.addf %1238, %1261 : vector<16x16xf32>
    %c1_462 = arith.constant 1 : index
    %c3_463 = arith.constant 3 : index
    %c1_464 = arith.constant 1 : index
    %c0_465 = arith.constant 0 : index
    %c0_466 = arith.constant 0 : index
    %1263 = vector.load %arg2[%c1_462, %c3_463, %c1_464, %c0_465, %c0_466] : memref<2x4x4x16x16xf32, #tpu.memory_space<vmem>>, vector<1x1x1x16x16xf32>
    %1264 = vector.shape_cast %1263 : vector<1x1x1x16x16xf32> to vector<16x16xf32>
    %c1_467 = arith.constant 1 : index
    %c3_468 = arith.constant 3 : index
    %c1_469 = arith.constant 1 : index
    %c1_470 = arith.constant 1 : index
    %c0_471 = arith.constant 0 : index
    %1265 = vector.load %arg2[%c1_467, %c3_468, %c1_469, %c1_470, %c0_471] : memref<2x4x4x16x16xf32, #tpu.memory_space<vmem>>, vector<1x1x1x15x16xf32>
    %1266 = vector.shape_cast %1265 : vector<1x1x1x15x16xf32> to vector<15x16xf32>
    %cst_472 = arith.constant 0.000000e+00 : f32
    %1267 = vector.broadcast %cst_472 : f32 to vector<1x16xf32>
    %1268 = tpu.concatenate %1266, %1267 in 0 : vector<15x16xf32>, vector<1x16xf32> -> vector<16x16xf32>
    %c117_473 = arith.constant 117 : index
    %1269 = memref.load %arg3[%c117_473] : memref<144xf32, #tpu.memory_space<smem>>
    %1270 = vector.broadcast %1269 : f32 to vector<16x16xf32>
    %1271 = arith.mulf %1270, %1268 : vector<16x16xf32>
    %1272 = arith.addf %1254, %1271 : vector<16x16xf32>
    %c118_474 = arith.constant 118 : index
    %1273 = memref.load %arg3[%c118_474] : memref<144xf32, #tpu.memory_space<smem>>
    %1274 = vector.broadcast %1273 : f32 to vector<16x16xf32>
    %1275 = arith.mulf %1274, %1268 : vector<16x16xf32>
    %1276 = arith.addf %1258, %1275 : vector<16x16xf32>
    %c119_475 = arith.constant 119 : index
    %1277 = memref.load %arg3[%c119_475] : memref<144xf32, #tpu.memory_space<smem>>
    %1278 = vector.broadcast %1277 : f32 to vector<16x16xf32>
    %1279 = arith.mulf %1278, %1268 : vector<16x16xf32>
    %1280 = arith.addf %1262, %1279 : vector<16x16xf32>
    %c120_476 = arith.constant 120 : index
    %1281 = memref.load %arg3[%c120_476] : memref<144xf32, #tpu.memory_space<smem>>
    %1282 = vector.broadcast %1281 : f32 to vector<16x16xf32>
    %1283 = arith.mulf %1282, %1264 : vector<16x16xf32>
    %1284 = arith.addf %1242, %1283 : vector<16x16xf32>
    %c121_477 = arith.constant 121 : index
    %1285 = memref.load %arg3[%c121_477] : memref<144xf32, #tpu.memory_space<smem>>
    %1286 = vector.broadcast %1285 : f32 to vector<16x16xf32>
    %1287 = arith.mulf %1286, %1264 : vector<16x16xf32>
    %1288 = arith.addf %1246, %1287 : vector<16x16xf32>
    %c122_478 = arith.constant 122 : index
    %1289 = memref.load %arg3[%c122_478] : memref<144xf32, #tpu.memory_space<smem>>
    %1290 = vector.broadcast %1289 : f32 to vector<16x16xf32>
    %1291 = arith.mulf %1290, %1264 : vector<16x16xf32>
    %1292 = arith.addf %1250, %1291 : vector<16x16xf32>
    %c123_479 = arith.constant 123 : index
    %1293 = memref.load %arg3[%c123_479] : memref<144xf32, #tpu.memory_space<smem>>
    %1294 = vector.broadcast %1293 : f32 to vector<16x16xf32>
    %1295 = arith.mulf %1294, %1264 : vector<16x16xf32>
    %1296 = arith.addf %1272, %1295 : vector<16x16xf32>
    %c124_480 = arith.constant 124 : index
    %1297 = memref.load %arg3[%c124_480] : memref<144xf32, #tpu.memory_space<smem>>
    %1298 = vector.broadcast %1297 : f32 to vector<16x16xf32>
    %1299 = arith.mulf %1298, %1264 : vector<16x16xf32>
    %1300 = arith.addf %1276, %1299 : vector<16x16xf32>
    %c125_481 = arith.constant 125 : index
    %1301 = memref.load %arg3[%c125_481] : memref<144xf32, #tpu.memory_space<smem>>
    %1302 = vector.broadcast %1301 : f32 to vector<16x16xf32>
    %1303 = arith.mulf %1302, %1264 : vector<16x16xf32>
    %1304 = arith.addf %1280, %1303 : vector<16x16xf32>
    %c1_482 = arith.constant 1 : index
    %c3_483 = arith.constant 3 : index
    %c2_484 = arith.constant 2 : index
    %c0_485 = arith.constant 0 : index
    %c0_486 = arith.constant 0 : index
    %1305 = vector.load %arg2[%c1_482, %c3_483, %c2_484, %c0_485, %c0_486] : memref<2x4x4x16x16xf32, #tpu.memory_space<vmem>>, vector<1x1x1x16x16xf32>
    %1306 = vector.shape_cast %1305 : vector<1x1x1x16x16xf32> to vector<16x16xf32>
    %c1_487 = arith.constant 1 : index
    %c3_488 = arith.constant 3 : index
    %c2_489 = arith.constant 2 : index
    %c1_490 = arith.constant 1 : index
    %c0_491 = arith.constant 0 : index
    %1307 = vector.load %arg2[%c1_487, %c3_488, %c2_489, %c1_490, %c0_491] : memref<2x4x4x16x16xf32, #tpu.memory_space<vmem>>, vector<1x1x1x15x16xf32>
    %1308 = vector.shape_cast %1307 : vector<1x1x1x15x16xf32> to vector<15x16xf32>
    %cst_492 = arith.constant 0.000000e+00 : f32
    %1309 = vector.broadcast %cst_492 : f32 to vector<1x16xf32>
    %1310 = tpu.concatenate %1308, %1309 in 0 : vector<15x16xf32>, vector<1x16xf32> -> vector<16x16xf32>
    %c126_493 = arith.constant 126 : index
    %1311 = memref.load %arg3[%c126_493] : memref<144xf32, #tpu.memory_space<smem>>
    %1312 = vector.broadcast %1311 : f32 to vector<16x16xf32>
    %1313 = arith.mulf %1312, %1310 : vector<16x16xf32>
    %1314 = arith.addf %1296, %1313 : vector<16x16xf32>
    %c127_494 = arith.constant 127 : index
    %1315 = memref.load %arg3[%c127_494] : memref<144xf32, #tpu.memory_space<smem>>
    %1316 = vector.broadcast %1315 : f32 to vector<16x16xf32>
    %1317 = arith.mulf %1316, %1310 : vector<16x16xf32>
    %1318 = arith.addf %1300, %1317 : vector<16x16xf32>
    %c128_495 = arith.constant 128 : index
    %1319 = memref.load %arg3[%c128_495] : memref<144xf32, #tpu.memory_space<smem>>
    %1320 = vector.broadcast %1319 : f32 to vector<16x16xf32>
    %1321 = arith.mulf %1320, %1310 : vector<16x16xf32>
    %1322 = arith.addf %1304, %1321 : vector<16x16xf32>
    %c129_496 = arith.constant 129 : index
    %1323 = memref.load %arg3[%c129_496] : memref<144xf32, #tpu.memory_space<smem>>
    %1324 = vector.broadcast %1323 : f32 to vector<16x16xf32>
    %1325 = arith.mulf %1324, %1306 : vector<16x16xf32>
    %1326 = arith.addf %1284, %1325 : vector<16x16xf32>
    %c130_497 = arith.constant 130 : index
    %1327 = memref.load %arg3[%c130_497] : memref<144xf32, #tpu.memory_space<smem>>
    %1328 = vector.broadcast %1327 : f32 to vector<16x16xf32>
    %1329 = arith.mulf %1328, %1306 : vector<16x16xf32>
    %1330 = arith.addf %1288, %1329 : vector<16x16xf32>
    %c131_498 = arith.constant 131 : index
    %1331 = memref.load %arg3[%c131_498] : memref<144xf32, #tpu.memory_space<smem>>
    %1332 = vector.broadcast %1331 : f32 to vector<16x16xf32>
    %1333 = arith.mulf %1332, %1306 : vector<16x16xf32>
    %1334 = arith.addf %1292, %1333 : vector<16x16xf32>
    %c132_499 = arith.constant 132 : index
    %1335 = memref.load %arg3[%c132_499] : memref<144xf32, #tpu.memory_space<smem>>
    %1336 = vector.broadcast %1335 : f32 to vector<16x16xf32>
    %1337 = arith.mulf %1336, %1306 : vector<16x16xf32>
    %1338 = arith.addf %1314, %1337 : vector<16x16xf32>
    %c133_500 = arith.constant 133 : index
    %1339 = memref.load %arg3[%c133_500] : memref<144xf32, #tpu.memory_space<smem>>
    %1340 = vector.broadcast %1339 : f32 to vector<16x16xf32>
    %1341 = arith.mulf %1340, %1306 : vector<16x16xf32>
    %1342 = arith.addf %1318, %1341 : vector<16x16xf32>
    %c134_501 = arith.constant 134 : index
    %1343 = memref.load %arg3[%c134_501] : memref<144xf32, #tpu.memory_space<smem>>
    %1344 = vector.broadcast %1343 : f32 to vector<16x16xf32>
    %1345 = arith.mulf %1344, %1306 : vector<16x16xf32>
    %1346 = arith.addf %1322, %1345 : vector<16x16xf32>
    %c1_502 = arith.constant 1 : index
    %c3_503 = arith.constant 3 : index
    %c3_504 = arith.constant 3 : index
    %c0_505 = arith.constant 0 : index
    %c0_506 = arith.constant 0 : index
    %1347 = vector.load %arg2[%c1_502, %c3_503, %c3_504, %c0_505, %c0_506] : memref<2x4x4x16x16xf32, #tpu.memory_space<vmem>>, vector<1x1x1x16x16xf32>
    %1348 = vector.shape_cast %1347 : vector<1x1x1x16x16xf32> to vector<16x16xf32>
    %c1_507 = arith.constant 1 : index
    %c3_508 = arith.constant 3 : index
    %c3_509 = arith.constant 3 : index
    %c1_510 = arith.constant 1 : index
    %c0_511 = arith.constant 0 : index
    %1349 = vector.load %arg2[%c1_507, %c3_508, %c3_509, %c1_510, %c0_511] : memref<2x4x4x16x16xf32, #tpu.memory_space<vmem>>, vector<1x1x1x15x16xf32>
    %1350 = vector.shape_cast %1349 : vector<1x1x1x15x16xf32> to vector<15x16xf32>
    %cst_512 = arith.constant 0.000000e+00 : f32
    %1351 = vector.broadcast %cst_512 : f32 to vector<1x16xf32>
    %1352 = tpu.concatenate %1350, %1351 in 0 : vector<15x16xf32>, vector<1x16xf32> -> vector<16x16xf32>
    %c135_513 = arith.constant 135 : index
    %1353 = memref.load %arg3[%c135_513] : memref<144xf32, #tpu.memory_space<smem>>
    %1354 = vector.broadcast %1353 : f32 to vector<16x16xf32>
    %1355 = arith.mulf %1354, %1352 : vector<16x16xf32>
    %1356 = arith.addf %1338, %1355 : vector<16x16xf32>
    %c136_514 = arith.constant 136 : index
    %1357 = memref.load %arg3[%c136_514] : memref<144xf32, #tpu.memory_space<smem>>
    %1358 = vector.broadcast %1357 : f32 to vector<16x16xf32>
    %1359 = arith.mulf %1358, %1352 : vector<16x16xf32>
    %1360 = arith.addf %1342, %1359 : vector<16x16xf32>
    %c137_515 = arith.constant 137 : index
    %1361 = memref.load %arg3[%c137_515] : memref<144xf32, #tpu.memory_space<smem>>
    %1362 = vector.broadcast %1361 : f32 to vector<16x16xf32>
    %1363 = arith.mulf %1362, %1352 : vector<16x16xf32>
    %1364 = arith.addf %1346, %1363 : vector<16x16xf32>
    %c138_516 = arith.constant 138 : index
    %1365 = memref.load %arg3[%c138_516] : memref<144xf32, #tpu.memory_space<smem>>
    %1366 = vector.broadcast %1365 : f32 to vector<16x16xf32>
    %1367 = arith.mulf %1366, %1348 : vector<16x16xf32>
    %1368 = arith.addf %1326, %1367 : vector<16x16xf32>
    %c139_517 = arith.constant 139 : index
    %1369 = memref.load %arg3[%c139_517] : memref<144xf32, #tpu.memory_space<smem>>
    %1370 = vector.broadcast %1369 : f32 to vector<16x16xf32>
    %1371 = arith.mulf %1370, %1348 : vector<16x16xf32>
    %1372 = arith.addf %1330, %1371 : vector<16x16xf32>
    %c140_518 = arith.constant 140 : index
    %1373 = memref.load %arg3[%c140_518] : memref<144xf32, #tpu.memory_space<smem>>
    %1374 = vector.broadcast %1373 : f32 to vector<16x16xf32>
    %1375 = arith.mulf %1374, %1348 : vector<16x16xf32>
    %1376 = arith.addf %1334, %1375 : vector<16x16xf32>
    %c141_519 = arith.constant 141 : index
    %1377 = memref.load %arg3[%c141_519] : memref<144xf32, #tpu.memory_space<smem>>
    %1378 = vector.broadcast %1377 : f32 to vector<16x16xf32>
    %1379 = arith.mulf %1378, %1348 : vector<16x16xf32>
    %1380 = arith.addf %1356, %1379 : vector<16x16xf32>
    %c142_520 = arith.constant 142 : index
    %1381 = memref.load %arg3[%c142_520] : memref<144xf32, #tpu.memory_space<smem>>
    %1382 = vector.broadcast %1381 : f32 to vector<16x16xf32>
    %1383 = arith.mulf %1382, %1348 : vector<16x16xf32>
    %1384 = arith.addf %1360, %1383 : vector<16x16xf32>
    %c143_521 = arith.constant 143 : index
    %1385 = memref.load %arg3[%c143_521] : memref<144xf32, #tpu.memory_space<smem>>
    %1386 = vector.broadcast %1385 : f32 to vector<16x16xf32>
    %1387 = arith.mulf %1386, %1348 : vector<16x16xf32>
    %1388 = arith.addf %1364, %1387 : vector<16x16xf32>
    %c0_522 = arith.constant 0 : index
    %1389 = memref.load %arg4[%c0_522] : memref<1xf32, #tpu.memory_space<smem>>
    %1390 = vector.broadcast %1389 : f32 to vector<16x16xf32>
    %1391 = arith.addf %1372, %1390 : vector<16x16xf32>
    %1392 = arith.negf %1391 : vector<16x16xf32>
    %1393 = math.exp %1392 : vector<16x16xf32>
    %cst_523 = arith.constant 1.000000e+00 : f32
    %1394 = vector.broadcast %cst_523 : f32 to vector<16x16xf32>
    %1395 = arith.addf %1394, %1393 : vector<16x16xf32>
    %1396 = arith.divf %1394, %1395 : vector<16x16xf32>
    %cst_524 = arith.constant 2.560000e+02 : f32
    %1397 = vector.broadcast %cst_524 : f32 to vector<16x16xf32>
    %1398 = arith.mulf %1397, %1396 : vector<16x16xf32>
    %c1_525 = arith.constant 1 : index
    %c0_526 = arith.constant 0 : index
    %c0_527 = arith.constant 0 : index
    %c0_528 = arith.constant 0 : index
    %1399 = vector.load %arg5[%c1_525, %c0_526, %c0_527, %c0_528] : memref<2x4x16x16xf32, #tpu.memory_space<vmem>>, vector<1x1x16x16xf32>
    %1400 = vector.shape_cast %1399 : vector<1x1x16x16xf32> to vector<16x16xf32>
    %1401 = vector.shape_cast %1398 : vector<16x16xf32> to vector<1x1x16x16xf32>
    tpu.vector_store %arg5[%c1_525, %c0_526, %c0_527, %c0_528], %1401 {strides = array<i32>} : memref<2x4x16x16xf32, #tpu.memory_space<vmem>>, vector<1x1x16x16xf32>,
    %1402 = vector.extract_strided_slice %1368 {offsets = [0, 1], sizes = [16, 15], strides = [1, 1]} : vector<16x16xf32> to vector<16x15xf32>
    %cst_529 = arith.constant 0.000000e+00 : f32
    %1403 = vector.broadcast %cst_529 : f32 to vector<16x1xf32>
    %1404 = tpu.concatenate %1402, %1403 in 1 : vector<16x15xf32>, vector<16x1xf32> -> vector<16x16xf32>
    %1405 = arith.addf %1376, %1404 : vector<16x16xf32>
    %1406 = vector.broadcast %1389 : f32 to vector<16x16xf32>
    %1407 = arith.addf %1405, %1406 : vector<16x16xf32>
    %1408 = arith.negf %1407 : vector<16x16xf32>
    %1409 = math.exp %1408 : vector<16x16xf32>
    %cst_530 = arith.constant 1.000000e+00 : f32
    %1410 = vector.broadcast %cst_530 : f32 to vector<16x16xf32>
    %1411 = arith.addf %1410, %1409 : vector<16x16xf32>
    %1412 = arith.divf %1410, %1411 : vector<16x16xf32>
    %cst_531 = arith.constant 2.560000e+02 : f32
    %1413 = vector.broadcast %cst_531 : f32 to vector<16x16xf32>
    %1414 = arith.mulf %1413, %1412 : vector<16x16xf32>
    %c1_532 = arith.constant 1 : index
    %c1_533 = arith.constant 1 : index
    %c0_534 = arith.constant 0 : index
    %c0_535 = arith.constant 0 : index
    %1415 = vector.load %arg5[%c1_532, %c1_533, %c0_534, %c0_535] : memref<2x4x16x16xf32, #tpu.memory_space<vmem>>, vector<1x1x16x16xf32>
    %1416 = vector.shape_cast %1415 : vector<1x1x16x16xf32> to vector<16x16xf32>
    %1417 = vector.shape_cast %1414 : vector<16x16xf32> to vector<1x1x16x16xf32>
    tpu.vector_store %arg5[%c1_532, %c1_533, %c0_534, %c0_535], %1417 {strides = array<i32>} : memref<2x4x16x16xf32, #tpu.memory_space<vmem>>, vector<1x1x16x16xf32>,
    %1418 = vector.broadcast %1389 : f32 to vector<16x16xf32>
    %1419 = arith.addf %1384, %1418 : vector<16x16xf32>
    %1420 = arith.negf %1419 : vector<16x16xf32>
    %1421 = math.exp %1420 : vector<16x16xf32>
    %cst_536 = arith.constant 1.000000e+00 : f32
    %1422 = vector.broadcast %cst_536 : f32 to vector<16x16xf32>
    %1423 = arith.addf %1422, %1421 : vector<16x16xf32>
    %1424 = arith.divf %1422, %1423 : vector<16x16xf32>
    %cst_537 = arith.constant 2.560000e+02 : f32
    %1425 = vector.broadcast %cst_537 : f32 to vector<16x16xf32>
    %1426 = arith.mulf %1425, %1424 : vector<16x16xf32>
    %c1_538 = arith.constant 1 : index
    %c2_539 = arith.constant 2 : index
    %c0_540 = arith.constant 0 : index
    %c0_541 = arith.constant 0 : index
    %1427 = vector.load %arg5[%c1_538, %c2_539, %c0_540, %c0_541] : memref<2x4x16x16xf32, #tpu.memory_space<vmem>>, vector<1x1x16x16xf32>
    %1428 = vector.shape_cast %1427 : vector<1x1x16x16xf32> to vector<16x16xf32>
    %1429 = vector.shape_cast %1426 : vector<16x16xf32> to vector<1x1x16x16xf32>
    tpu.vector_store %arg5[%c1_538, %c2_539, %c0_540, %c0_541], %1429 {strides = array<i32>} : memref<2x4x16x16xf32, #tpu.memory_space<vmem>>, vector<1x1x16x16xf32>,
    %1430 = vector.extract_strided_slice %1380 {offsets = [0, 1], sizes = [16, 15], strides = [1, 1]} : vector<16x16xf32> to vector<16x15xf32>
    %cst_542 = arith.constant 0.000000e+00 : f32
    %1431 = vector.broadcast %cst_542 : f32 to vector<16x1xf32>
    %1432 = tpu.concatenate %1430, %1431 in 1 : vector<16x15xf32>, vector<16x1xf32> -> vector<16x16xf32>
    %1433 = arith.addf %1388, %1432 : vector<16x16xf32>
    %1434 = vector.broadcast %1389 : f32 to vector<16x16xf32>
    %1435 = arith.addf %1433, %1434 : vector<16x16xf32>
    %1436 = arith.negf %1435 : vector<16x16xf32>
    %1437 = math.exp %1436 : vector<16x16xf32>
    %cst_543 = arith.constant 1.000000e+00 : f32
    %1438 = vector.broadcast %cst_543 : f32 to vector<16x16xf32>
    %1439 = arith.addf %1438, %1437 : vector<16x16xf32>
    %1440 = arith.divf %1438, %1439 : vector<16x16xf32>
    %cst_544 = arith.constant 2.560000e+02 : f32
    %1441 = vector.broadcast %cst_544 : f32 to vector<16x16xf32>
    %1442 = arith.mulf %1441, %1440 : vector<16x16xf32>
    %c1_545 = arith.constant 1 : index
    %c3_546 = arith.constant 3 : index
    %c0_547 = arith.constant 0 : index
    %c0_548 = arith.constant 0 : index
    %1443 = vector.load %arg5[%c1_545, %c3_546, %c0_547, %c0_548] : memref<2x4x16x16xf32, #tpu.memory_space<vmem>>, vector<1x1x16x16xf32>
    %1444 = vector.shape_cast %1443 : vector<1x1x16x16xf32> to vector<16x16xf32>
    %1445 = vector.shape_cast %1442 : vector<16x16xf32> to vector<1x1x16x16xf32>
    tpu.vector_store %arg5[%c1_545, %c3_546, %c0_547, %c0_548], %1445 {strides = array<i32>} : memref<2x4x16x16xf32, #tpu.memory_space<vmem>>, vector<1x1x16x16xf32>,
    return
  }
  func.func @transform_0(%arg0: i32, %arg1: i32) -> (i32, i32, i32, i32, i32) {
    %c0_i32 = arith.constant 0 : i32
    %c0_i32_0 = arith.constant 0 : i32
    %c0_i32_1 = arith.constant 0 : i32
    %c0_i32_2 = arith.constant 0 : i32
    return %arg0, %c0_i32, %c0_i32_0, %arg1, %c0_i32_1 : i32, i32, i32, i32, i32
  }
  func.func @transform_1(%arg0: i32, %arg1: i32) -> i32 {
    %c0_i32 = arith.constant 0 : i32
    %c0_i32_0 = arith.constant 0 : i32
    return %c0_i32 : i32
  }
  func.func @transform_2(%arg0: i32, %arg1: i32) -> i32 {
    %c0_i32 = arith.constant 0 : i32
    %c0_i32_0 = arith.constant 0 : i32
    return %c0_i32 : i32
  }
  func.func @transform_3(%arg0: i32, %arg1: i32) -> (i32, i32, i32, i32) {
    %c0_i32 = arith.constant 0 : i32
    %c0_i32_0 = arith.constant 0 : i32
    %c0_i32_1 = arith.constant 0 : i32
    return %arg0, %c0_i32, %arg1, %c0_i32_0 : i32, i32, i32, i32
  }
}

</mosaic_0001>

<bundles_post_ra>
// kernel: tpu_custom_call.1
= control target key start
LH: loop header
LB: loop body
LE: loop exit
PB: predicated region body
PF: predicated region fallthrough
CT: control target
= control target key end

     0   :  { %9 = vsyncpa [#allocation4], 0  ;;  %s4637_s0 = inlined_call_operand.hbm [shape: f32[2,4,4,16,16], index: 0, kind: input, shape index: {}]   ;;  %s4638_s1 = inlined_call_operand.vmem [shape: f32[144], index: 1, kind: input, shape index: {}]   ;;  %s4639_s2 = inlined_call_operand.<no memory space> [shape: f32[1], index: 2, kind: input, shape index: {}]   ;;  %s4640_s3 = inlined_call_operand.hbm [shape: f32[2,4,16,16], index: 3, kind: output, shape index: {}]  }
   0x1   :  { %10 = vsyncpa [#allocation6], 0 }
   0x2   :  { %11 = vsyncpa [#allocation5], 0  ;;  %s2688_s12 = smov [#allocation3]   ;;  %s30_s16 = sshll.u32 %s4638_s1, 4  ;;  %s31_s16 = int_to_ptr.vmem [resolvable:$true] %s30_s16 }
   0x3   :  { %s17_s13 = sshll.u32 %s2688_s12, 4  ;;  %s2626_s19 = scalar_lea.hbm %s4637_s0, 8192  ;;  %s18_s13 = int_to_ptr.vmem [resolvable:$true] %s17_s13 }
   0x4   :  { %p2627_p0 = scmp.ne.s32.totalorder %s4637_s0, %s2626_s19  ;;  %p2630_p1 = scmp.lt.u32.totalorder %s2626_s19, %s4637_s0 }
   0x6   :  { %p2632_p2 = pnand %p2630_p1, %p2627_p0 }
   0x8   :  { %2635 = shalt.err (!%p2632_p2)
}
   0x9   :  { %s2636_s24 = scalar_lea.vmem %s18_s13, 8192  ;;  %p2641_p4 = scmp.lt.s32.totalorder %s18_s13, %s18_s13 }
   0xa   :  { %p2637_p3 = scmp.ne.s32.totalorder %s18_s13, %s2636_s24  ;;  %p2642_p5 = scmp.lt.s32.totalorder %s2636_s24, %s2636_s24 }
   0xc   :  { %p2643_p6 = por %p2642_p5, %p2641_p4 }
   0xe   :  { %p2644_p7 = pnand %p2643_p6, %p2637_p3 }
  0x10   :  { %2647 = shalt.err (!%p2644_p7)
}
  0x11   :  { %s2689_s1 = smov 128   ;;  %s2690_s25 = smov 8  }
  0x12   :  { %23 = dma.hbm_to_vmem [thread:$0]  %s4637_s0, 8192, %s18_s13, [#allocation4], %s2689_s1, %s2689_s1, %s2690_s25  }
  0x13   :  { %s2648_s28 = scalar_lea.vmem %s31_s16, 32  ;;  %p2653_p9 = scmp.lt.s32.totalorder %s31_s16, %s31_s16 }
  0x14   :  { %p2649_p8 = scmp.ne.s32.totalorder %s31_s16, %s2648_s28  ;;  %p2654_p10 = scmp.lt.s32.totalorder %s2648_s28, %s2648_s28 }
  0x16   :  { %p2655_p11 = por %p2654_p10, %p2653_p9 }
  0x18   :  { %p2656_p12 = pnand %p2655_p11, %p2649_p8 }
  0x1a   :  { %2659 = shalt.err (!%p2656_p12)
}
  0x1b   :  { %s2691_s29 = smov [#allocation7]  }
  0x1c   :  { %33 = dma.vmem_to_smem %s31_s16, 32, %s2691_s29, [#allocation6]  }
  0x1d   :  { %2682 = dma.done.wait [#allocation4], 8192  }
  0x1e   :  { %2683 = vsyncadd [#allocation4], 4294959104 }
  0x1f   :  { %2684 = dma.done.wait [#allocation6], 32  }
  0x20   :  { %2685 = vsyncadd [#allocation6], 4294967264 }
  0x21   :  { %42 = sfence }
  0x22   :  { %s2315_s30 = sld [smem:[#allocation7 + $0x3]]  ;;  %s2324_s4 = sld [smem:[#allocation7 + $0xc]]  ;;  %v2740_v0 = vld [vmem:[#allocation3 + $0x108] sm:$0xff]  ;;  %v2750_v3 = vld [vmem:[#allocation3 + $0x118] sm:$0xff]  ;;  %v2840_v40 = vld [vmem:[#allocation3] sm:$0xff]  ;;  %vm47_vm0 = vcmask 1046528  }
  0x23   :  { %s2333_s5 = sld [smem:[#allocation7 + $0x15]]  ;;  %s2342_s6 = sld [smem:[#allocation7 + $0x1e]]  ;;  %4803 = vst [vmem:[#allocation12_spill] sm:$0xff] %v2740_v0  ;;  %4805 = vst [vmem:[#allocation14_spill] sm:$0xff] %v2750_v3  ;;  %v2754_v5 = vld [vmem:[#allocation3 + $0x128] sm:$0xff]  ;;  %v2766_v9 = vld [vmem:[#allocation3 + $0x138] sm:$0xff] }
  0x24   :  { %s2351_s0 = sld [smem:[#allocation7 + $0x27]]  ;;  %s2360_s7 = sld [smem:[#allocation7 + $0x30]]  ;;  %4807 = vst [vmem:[#allocation16_spill] sm:$0xff] %v2754_v5  ;;  %4809 = vst [vmem:[#allocation18_spill] sm:$0xff] %v2766_v9  ;;  %v2770_v11 = vld [vmem:[#allocation3 + $0x148] sm:$0xff]  ;;  %v2774_v13 = vld [vmem:[#allocation3 + $0x158] sm:$0xff] }
  0x25   :  { %s2369_s8 = sld [smem:[#allocation7 + $0x39]]  ;;  %s2732_s9 = sld [smem:[#allocation7 + $0x42]]  ;;  %4811 = vst [vmem:[#allocation20_spill] sm:$0xff] %v2770_v11  ;;  %4813 = vst [vmem:[#allocation22_spill] sm:$0xff] %v2774_v13  ;;  %v2784_v17 = vld [vmem:[#allocation3 + $0x168] sm:$0xff]  ;;  %v2788_v19 = vld [vmem:[#allocation3 + $0x198] sm:$0xff] }
  0x26   :  { %s2734_s10 = sld [smem:[#allocation7 + $0x4b]]  ;;  %s2736_s11 = sld [smem:[#allocation7 + $0x54]]  ;;  %4815 = vst [vmem:[#allocation24_spill] sm:$0xff] %v2784_v17  ;;  %4817 = vst [vmem:[#allocation26_spill] sm:$0xff] %v2788_v19  ;;  %v2790_v20 = vld [vmem:[#allocation3 + $0x1a8] sm:$0xff]  ;;  %v2798_v24 = vld [vmem:[#allocation3 + $0x178] sm:$0xff] }
  0x27   :  { %s2738_s12 = sld [smem:[#allocation7 + $0x5d]]  ;;  %s2744_s13 = sld [smem:[#allocation7 + $0x66]]  ;;  %4818 = vst [vmem:[#allocation27_spill] sm:$0xff] %v2790_v20  ;;  %4819 = vst [vmem:[#allocation28_spill] sm:$0xff] %v2798_v24  ;;  %v2803_v26 = vld [vmem:[#allocation3 + $0x188] sm:$0xff]  ;;  %v2818_v31 = vld [vmem:[#allocation3 + $0x1b8] sm:$0xff] }
  0x28   :  { %v2742_v1 = vstv %s2315_s30  ;;  %s2746_s14 = sld [smem:[#allocation7 + $0x6f]]  ;;  %v2752_v4 = vstv %s2324_s4  ;;  %s2758_s15 = sld [smem:[#allocation7 + $0x78]]  ;;  %4821 = vst [vmem:[#allocation30_spill] sm:$0xff] %v2803_v26  ;;  %4825 = vst [vmem:[#allocation34_spill] sm:$0xff] %v2818_v31  ;;  %v2820_v32 = vld [vmem:[#allocation3 + $0x1c8] sm:$0xff]  ;;  %v2822_v33 = vld [vmem:[#allocation3 + $0x1d8] sm:$0xff] }
  0x29   :  { %4804 = vst [vmem:[#allocation13_spill] sm:$0xff] %v2742_v1  ;;  %v1115_v2 = vmul.f32 %v2742_v1, %v2740_v0  ;;  %4806 = vst [vmem:[#allocation15_spill] sm:$0xff] %v2752_v4  ;;  %v2756_v6 = vstv %s2333_s5  ;;  %s2760_s16 = sld [smem:[#allocation7 + $0x81]]  ;;  %v1169_v7 = vmul.f32 %v2752_v4, %v2750_v3  ;;  %v2768_v10 = vstv %s2342_s6  ;;  %s2776_s17 = sld [smem:[#allocation7 + $0x8a]]  ;;  %v2836_v38 = vld [vmem:[#allocation3 + $0x1e8] sm:$0xff]  ;;  %v2838_v39 = vld [vmem:[#allocation3 + $0x1f8] sm:$0xff] }
  0x2a   :  { %4808 = vst [vmem:[#allocation17_spill] sm:$0xff] %v2756_v6  ;;  %v1229_v8 = vmul.f32 %v2756_v6, %v2754_v5  ;;  %4810 = vst [vmem:[#allocation19_spill] sm:$0xff] %v2768_v10  ;;  %v2772_v12 = vstv %s2351_s0  ;;  %v1289_v14 = vmul.f32 %v2768_v10, %v2766_v9  ;;  %v2782_v16 = vstv %s2360_s7  ;;  %s2842_s18 = sld [smem:[#allocation7]]  ;;  %v2856_v45 = vld [vmem:[#allocation3 + $0x10] sm:$0xff]  ;;  %v2858_v46 = vld [vmem:[#allocation3 + $0x20] sm:$0xff]  ;;  %s2860_s19 = sld [smem:[#allocation7 + $0x6]] }
  0x2b   :  { %4812 = vst [vmem:[#allocation21_spill] sm:$0xff] %v2772_v12  ;;  %v1349_v15 = vmul.f32 %v2772_v12, %v2770_v11  ;;  %4814 = vst [vmem:[#allocation23_spill] sm:$0xff] %v2782_v16  ;;  %v2786_v18 = vstv %s2369_s8  ;;  %v1171_v21 = vadd.f32 %v1169_v7, %v1115_v2  ;;  %v1409_v22 = vmul.f32 %v2782_v16, %v2774_v13  ;;  %s2862_s20 = sld [smem:[#allocation7 + $0x9]]  ;;  %v2876_v51 = vld [vmem:[#allocation3 + $0x30] sm:$0xff]  ;;  %v2878_v52 = vld [vmem:[#allocation3 + $0x40] sm:$0xff]  ;;  %s2882_s21 = sld [smem:[#allocation7 + $0xf]] }
  0x2c   :  { %4816 = vst [vmem:[#allocation25_spill] sm:$0xff] %v2786_v18  ;;  %v2796_v23 = vmul.f32 %v2786_v18, %v2784_v17  ;;  %v2801_v25 = vstv %s2732_s9  ;;  %v2810_v28 = vstv %s2734_s10  ;;  %v2813_v29 = vstv %s2736_s11  ;;  %4826 = vst [vmem:[#allocation35_spill] sm:$0xff] %v2820_v32  ;;  %v2880_v53 = vld [vmem:[#allocation3 + $0x50] sm:$0xff]  ;;  %v2895_v58 = vld [vmem:[#allocation3 + $0x60] sm:$0xff]  ;;  %s2899_s22 = sld [smem:[#allocation7 + $0x12]]  ;;  %s2901_s23 = sld [smem:[#allocation7 + $0x18]] }
  0x2d   :  { %4820 = vst [vmem:[#allocation29_spill] sm:$0xff] %v2801_v25  ;;  %v2807_v27 = vmul.f32 %v2801_v25, %v2798_v24  ;;  %4822 = vst [vmem:[#allocation31_spill] sm:$0xff] %v2810_v28  ;;  %v2816_v30 = vstv %s2738_s12  ;;  %v1231_v34 = vadd.f32 %v1229_v8, %v1171_v21  ;;  %v2826_v35 = vmul.f32 %v2810_v28, %v2803_v26  ;;  %v2897_v59 = vld [vmem:[#allocation3 + $0x70] sm:$0xff]  ;;  %v2911_v2 = vld [vmem:[#allocation3 + $0x80] sm:$0xff]  ;;  %s2927_s24 = sld [smem:[#allocation7 + $0x1b]]  ;;  %s2929_s26 = sld [smem:[#allocation7 + $0x21]] }
  0x2e   :  { %4823 = vst [vmem:[#allocation32_spill] sm:$0xff] %v2813_v29  ;;  %4824 = vst [vmem:[#allocation33_spill] sm:$0xff] %v2816_v30  ;;  %v2830_v36 = vmul.f32 %v2813_v29, %v2788_v19  ;;  %v2834_v37 = vmul.f32 %v2816_v30, %v2790_v20  ;;  %v2845_v41 = vstv %s2744_s13  ;;  %v2848_v42 = vstv %s2746_s14  ;;  %v2913_v7 = vld [vmem:[#allocation3 + $0x90] sm:$0xff]  ;;  %v2947_v20 = vld [vmem:[#allocation3 + $0xc0] sm:$0xff]  ;;  %s2949_s27 = sld [smem:[#allocation7 + $0x24]]  ;;  %s2965_s28 = sld [smem:[#allocation7 + $0x2a]] }
  0x2f   :  { %4827 = vst [vmem:[#allocation36_spill] sm:$0xff] %v2822_v33  ;;  %4828 = vst [vmem:[#allocation37_spill] sm:$0xff] %v2836_v38  ;;  %v2851_v43 = vstv %s2758_s15  ;;  %v2854_v44 = vstv %s2760_s16  ;;  %v1291_v47 = vadd.f32 %v1289_v14, %v1231_v34  ;;  %v2866_v48 = vmul.f32 %v2845_v41, %v2818_v31  ;;  %v2915_v8 = vld [vmem:[#allocation3 + $0xd0] sm:$0xff]  ;;  %v2963_v24 = vld [vmem:[#allocation3 + $0x1] sm:$0xff]  ;;  %s2967_s29 = sld [smem:[#allocation7 + $0x2d]]  ;;  %s2991_s30 = sld [smem:[#allocation7 + $0x33]] }
  0x30   :  { %4829 = vst [vmem:[#allocation38_spill] sm:$0xff] %v2838_v39  ;;  %4830 = vst [vmem:[#allocation39_spill] sm:$0xff] %v2845_v41  ;;  %v2870_v49 = vmul.f32 %v2848_v42, %v2820_v32  ;;  %v2874_v50 = vmul.f32 %v2851_v43, %v2822_v33  ;;  %v2886_v54 = vmul.f32 %v2854_v44, %v2836_v38  ;;  %v2889_v55 = vstv %s2776_s17  ;;  %v2943_v32 = vld [vmem:[#allocation3 + $0xa0] sm:$0xff]  ;;  %v2945_v31 = vld [vmem:[#allocation3 + $0xb0] sm:$0xff]  ;;  %s2993_s4 = sld [smem:[#allocation7 + $0x36]]  ;;  %s3001_s5 = sld [smem:[#allocation7 + $0x3c]] }
  0x31   :  { %4831 = vst [vmem:[#allocation40_spill] sm:$0xff] %v2848_v42  ;;  %4832 = vst [vmem:[#allocation41_spill] sm:$0xff] %v2851_v43  ;;  %v63_v56 = vmul.f32 %v2742_v1, %v2840_v40  ;;  %v117_v57 = vmul.f32 %v2752_v4, %v2856_v45  ;;  %v1351_v60 = vadd.f32 %v1349_v15, %v1291_v47  ;;  %v2923_v47 = vld [vmem:[#allocation3 + $0xe0] sm:$0xff]  ;;  %v94_v17 = vld [vmem:[#allocation3 + $0x11] sm:$0xff]  ;;  %v2983_v5 = vstv %s2842_s18  ;;  %s3012_s6 = sld [smem:[#allocation7 + $0x3f]]  ;;  %s3014_s0 = sld [smem:[#allocation7 + $0x45]] }
  0x32   :  { %4833 = vst [vmem:[#allocation42_spill] sm:$0xff] %v2854_v44  ;;  %4834 = vst [vmem:[#allocation43_spill] sm:$0xff] %v2889_v55  ;;  %v2905_v61 = vmul.f32 %v2889_v55, %v2838_v39  ;;  %v177_v62 = vmul.f32 %v2756_v6, %v2858_v46  ;;  %v237_v63 = vmul.f32 %v2768_v10, %v2876_v51  ;;  %v2925_v39 = vld [vmem:[#allocation3 + $0xf0] sm:$0xff]  ;;  %v2986_v3 = vstv %s2860_s19  ;;  %s3028_s7 = sld [smem:[#allocation7 + $0x48]]  ;;  %s3030_s8 = sld [smem:[#allocation7 + $0x4e]] }
  0x33   :  { %v119_v14 = vadd.f32 %v117_v57, %v63_v56  ;;  %v297_v15 = vmul.f32 %v2772_v12, %v2878_v52  ;;  %v357_v21 = vmul.f32 %v2782_v16, %v2880_v53  ;;  %v417_v34 = vmul.f32 %v2786_v18, %v2895_v58  ;;  %4835 = vst [vmem:[#allocation44_spill] sm:$0xff] %v2963_v24  ;;  %s3036_s9 = sld [smem:[#allocation7 + $0x51]]  ;;  %s3047_s10 = sld [smem:[#allocation7 + $0x57]] }
  0x34   :  { %v1411_v38 = vadd.f32 %v1409_v22, %v1351_v60  ;;  %v2933_v56 = vmul.f32 %v2801_v25, %v2897_v59  ;;  %v2937_v57 = vmul.f32 %v2810_v28, %v2911_v2  ;;  %v2941_v33 = vmul.f32 %v2813_v29, %v2913_v7  ;;  %4836 = vst [vmem:[#allocation45_spill] sm:$0xff] %v2983_v5  ;;  %s3049_s11 = sld [smem:[#allocation7 + $0x5a]]  ;;  %s3067_s12 = sld [smem:[#allocation7 + $0x60]] }
  0x35   :  { %v179_v22 = vadd.f32 %v177_v62, %v119_v14  ;;  %v2953_v60 = vmul.f32 %v2816_v30, %v2943_v32  ;;  %v2957_v19 = vmul.f32 %v2845_v41, %v2945_v31  ;;  %v2961_v26 = vmul.f32 %v2848_v42, %v2947_v20  ;;  %4837 = vst [vmem:[#allocation46_spill] sm:$0xff] %v2986_v3  ;;  %s3069_s13 = sld [smem:[#allocation7 + $0x63]]  ;;  %s3079_s14 = sld [smem:[#allocation7 + $0x69]] }
  0x36   :  { %v1471_v62 = vadd.f32 %v2796_v23, %v1411_v38  ;;  %v2972_v14 = vmul.f32 %v2851_v43, %v2915_v8  ;;  %v2976_v13 = vmul.f32 %v2854_v44, %v2923_v47  ;;  %v2980_v11 = vmul.f32 %v2889_v55, %v2925_v39  ;;  %v154_v38 = vld [vmem:[#allocation3 + $0x21] sm:$0xff]  ;;  %s3091_s15 = sld [smem:[#allocation7 + $0x6c]]  ;;  %s3093_s16 = sld [smem:[#allocation7 + $0x72]] }
  0x37   :  { %v239_v9 = vadd.f32 %v237_v63, %v179_v22  ;;  %v2989_v23 = vstv %s2862_s20  ;;  %v51_v44 = vmul.f32 %v2983_v5, %v2963_v24  ;;  %v75_v55 = vmul.f32 %v2986_v3, %v2840_v40  ;;  %v274_v3 = vld [vmem:[#allocation3 + $0x41] sm:$0xff]  ;;  %s3103_s17 = sld [smem:[#allocation7 + $0x75]]  ;;  %s3116_s18 = sld [smem:[#allocation7 + $0x7b]] }
  0x38   :  { %4838 = vst [vmem:[#allocation47_spill] sm:$0xff] %v2989_v23  ;;  %v1531_v0 = vadd.f32 %v2807_v27, %v1471_v62  ;;  %v99_v63 = vmul.f32 %v2989_v23, %v94_v17  ;;  %v3004_v43 = vstv %s2882_s21  ;;  %v3007_v42 = vstv %s2899_s22  ;;  %v214_v27 = vld [vmem:[#allocation3 + $0x31] sm:$0xff]  ;;  %s3118_s19 = sld [smem:[#allocation7 + $0x7e]]  ;;  %s3128_s20 = sld [smem:[#allocation7 + $0x84]] }
  0x39   :  { %v299_v22 = vadd.f32 %v297_v15, %v239_v9  ;;  %4839 = vst [vmem:[#allocation48_spill] sm:$0xff] %v3004_v43  ;;  %v3010_v41 = vstv %s2901_s23  ;;  %v77_v62 = vadd.f32 %v75_v55, %v51_v44  ;;  %v135_v17 = vmul.f32 %v3004_v43, %v2856_v45  ;;  %v334_v55 = vld [vmem:[#allocation3 + $0x51] sm:$0xff]  ;;  %s3140_s21 = sld [smem:[#allocation7 + $0x87]]  ;;  %s3142_s22 = sld [smem:[#allocation7 + $0x8d]] }
  0x3a   :  { %4840 = vst [vmem:[#allocation49_spill] sm:$0xff] %v3010_v41  ;;  %v1591_v40 = vadd.f32 %v2826_v35, %v1531_v0  ;;  %v159_v9 = vmul.f32 %v3007_v42, %v154_v38  ;;  %v195_v24 = vmul.f32 %v3010_v41, %v2858_v46  ;;  %v3023_v23 = vstv %s2927_s24  ;;  %v394_v41 = vld [vmem:[#allocation3 + $0x61] sm:$0xff]  ;;  %s2692_s23 = smov 127   ;;  %s3796_s24 = sld [smem:[#allocation7 + $0x1]] }
  0x3b   :  { %v359_v15 = vadd.f32 %v357_v21, %v299_v22  ;;  %v3026_v5 = vstv %s2929_s26  ;;  %v101_v35 = vadd.f32 %v99_v63, %v77_v62  ;;  %v219_v44 = vmul.f32 %v3023_v23, %v214_v27  ;;  %s3809_s26 = sld [smem:[#allocation7 + $0x2]] }
  0x3c   :  { %v1651_v0 = vadd.f32 %v2830_v36, %v1591_v40  ;;  %v255_v45 = vmul.f32 %v3026_v5, %v2876_v51  ;;  %v3039_v21 = vstv %s2949_s27  ;;  %v3042_v38 = vstv %s2965_s28  ;;  %s3820_s27 = sld [smem:[#allocation7 + $0x8]]  ;;  %s3832_s28 = sld [smem:[#allocation7 + $0x5]] }
  0x3d   :  { %v419_v46 = vadd.f32 %v417_v34, %v359_v15  ;;  %v3045_v22 = vstv %s2967_s29  ;;  %v137_v51 = vadd.f32 %v135_v17, %v101_v35  ;;  %v279_v63 = vmul.f32 %v3039_v21, %v274_v3  ;;  %s3834_s29 = sld [smem:[#allocation7 + $0x7]] }
  0x3e   :  { %v1711_v36 = vadd.f32 %v2834_v37, %v1651_v0  ;;  %v3055_v34 = vmul.f32 %v3042_v38, %v2878_v52  ;;  %v3059_v40 = vmul.f32 %v3045_v22, %v334_v55  ;;  %v3062_v62 = vstv %s2991_s30  ;;  %v454_v37 = vld [vmem:[#allocation3 + $0x71] sm:$0xff]  ;;  %s3865_s30 = sld [smem:[#allocation7 + $0xa]] }
  0x3f   :  { %v479_v27 = vadd.f32 %v2933_v56, %v419_v46  ;;  %v3065_v15 = vstv %s2993_s4  ;;  %v161_v17 = vadd.f32 %v159_v9, %v137_v51  ;;  %v3074_v52 = vmul.f32 %v3062_v62, %v2880_v53  ;;  %s3867_s4 = sld [smem:[#allocation7 + $0xb]] }
  0x40   :  { %v1771_v3 = vadd.f32 %v2866_v48, %v1711_v36  ;;  %v3077_v56 = vmul.f32 %v3065_v15, %v394_v41  ;;  %v3083_v35 = vstv %s3001_s5  ;;  %v3086_v55 = vstv %s3012_s6  ;;  %v514_v48 = vld [vmem:[#allocation3 + $0x81] sm:$0xff]  ;;  %s3893_s5 = sld [smem:[#allocation7 + $0x4]]  ;;  %s3899_s6 = sld [smem:[#allocation7 + $0xd]] }
  0x41   :  { %v539_v0 = vadd.f32 %v2937_v57, %v479_v27  ;;  %4841 = vst [vmem:[#allocation50_spill] sm:$0xff] %v3086_v55  ;;  %v3089_v46 = vstv %s3014_s0  ;;  %v197_v53 = vadd.f32 %v195_v24, %v161_v17  ;;  %v3098_v9 = vmul.f32 %v3083_v35, %v2895_v58  ;;  %v574_v58 = vld [vmem:[#allocation3 + $0x91] sm:$0xff]  ;;  %s3901_s0 = sld [smem:[#allocation7 + $0xe]] }
  0x42   :  { %4842 = vst [vmem:[#allocation51_spill] sm:$0xff] %v3089_v46  ;;  %v1831_v41 = vadd.f32 %v2870_v49, %v1771_v3  ;;  %v3101_v57 = vmul.f32 %v3086_v55, %v454_v37  ;;  %v3108_v51 = vmul.f32 %v3089_v46, %v2897_v59  ;;  %v3111_v49 = vstv %s3028_s7  ;;  %v634_v59 = vld [vmem:[#allocation3 + $0xa1] sm:$0xff]  ;;  %s3913_s7 = sld [smem:[#allocation7 + $0x10]] }
  0x43   :  { %v599_v36 = vadd.f32 %v2941_v33, %v539_v0  ;;  %4843 = vst [vmem:[#allocation52_spill] sm:$0xff] %v3111_v49  ;;  %v3114_v24 = vstv %s3030_s8  ;;  %v221_v37 = vadd.f32 %v219_v44, %v197_v53  ;;  %v3122_v3 = vmul.f32 %v3111_v49, %v514_v48  ;;  %v694_v44 = vld [vmem:[#allocation3 + $0xb1] sm:$0xff]  ;;  %v754_v55 = vld [vmem:[#allocation3 + $0xc1] sm:$0xff]  ;;  %s3915_s8 = sld [smem:[#allocation7 + $0x11]] }
  0x44   :  { %4844 = vst [vmem:[#allocation53_spill] sm:$0xff] %v3114_v24  ;;  %v1891_v27 = vadd.f32 %v2874_v50, %v1831_v41  ;;  %v3126_v33 = vmul.f32 %v3114_v24, %v2911_v2  ;;  %v3132_v0 = vstv %s3036_s9  ;;  %v3135_v46 = vstv %s3047_s10  ;;  %s3923_s9 = sld [smem:[#allocation7 + $0x13]]  ;;  %s3925_s10 = sld [smem:[#allocation7 + $0x14]] }
  0x45   :  { %v659_v17 = vadd.f32 %v2953_v60, %v599_v36  ;;  %v3138_v50 = vstv %s3049_s11  ;;  %v257_v48 = vadd.f32 %v255_v45, %v221_v37  ;;  %v3146_v41 = vmul.f32 %v3132_v0, %v574_v58  ;;  %s3933_s11 = sld [smem:[#allocation7 + $0x16]] }
  0x46   :  { %v1951_v2 = vadd.f32 %v2886_v54, %v1891_v27  ;;  %v3150_v60 = vmul.f32 %v3135_v46, %v2913_v7  ;;  %v3154_v36 = vmul.f32 %v3138_v50, %v634_v59  ;;  %v3157_v24 = vstv %s3067_s12  ;;  %s3942_s12 = sld [smem:[#allocation7 + $0x17]] }
  0x47   :  { %v719_v53 = vadd.f32 %v2957_v19, %v659_v17  ;;  %v3160_v49 = vstv %s3069_s13  ;;  %v281_v45 = vadd.f32 %v279_v63, %v257_v48  ;;  %v3165_v58 = vmul.f32 %v3157_v24, %v2943_v32  ;;  %v874_v63 = vld [vmem:[#allocation3 + $0xe1] sm:$0xff]  ;;  %s3944_s13 = sld [smem:[#allocation7 + $0x19]] }
  0x48   :  { %v2011_v54 = vadd.f32 %v2905_v61, %v1951_v2  ;;  %v3168_v7 = vmul.f32 %v3160_v49, %v694_v44  ;;  %v3172_v27 = vstv %s3079_s14  ;;  %v3175_v37 = vstv %s3091_s15  ;;  %v814_v61 = vld [vmem:[#allocation3 + $0xd1] sm:$0xff]  ;;  %s3952_s14 = sld [smem:[#allocation7 + $0x1a]]  ;;  %s3960_s15 = sld [smem:[#allocation7 + $0x1c]] }
  0x49   :  { %v779_v19 = vadd.f32 %v2961_v26, %v719_v53  ;;  %4846 = vst [vmem:[#allocation55_spill] sm:$0xff] %v3175_v37  ;;  %v3178_v59 = vstv %s3093_s16  ;;  %v317_v32 = vadd.f32 %v3055_v34, %v281_v45  ;;  %v3184_v17 = vmul.f32 %v3172_v27, %v2945_v31  ;;  %v934_v34 = vld [vmem:[#allocation3 + $0xf1] sm:$0xff]  ;;  %s3962_s16 = sld [smem:[#allocation7 + $0x1d]] }
  0x4a   :  { %4845 = vst [vmem:[#allocation54_spill] sm:$0xff] %v3168_v7  ;;  %4847 = vst [vmem:[#allocation56_spill] sm:$0xff] %v3178_v59  ;;  %2067 = vrot.lane.b32.xlu1 %v2011_v54, %s2692_s23  ;;  %v3187_v26 = vmul.f32 %v3175_v37, %v754_v55  ;;  %v3191_v44 = vmul.f32 %v3178_v59, %v2947_v20  ;;  %v3195_v48 = vstv %s3103_s17  ;;  %v3198_v53 = vstv %s3116_s18  ;;  %v155_v59 = vld [vmem:[#allocation3 + $0x29] sm:$0x7f]  ;;  %s3967_s17 = sld [smem:[#allocation7 + $0x1f]]  ;;  %s3974_s18 = sld [smem:[#allocation7 + $0x20]] }
  0x4b   :  { %4848 = vst [vmem:[#allocation57_spill] sm:$0xff] %v3184_v17  ;;  %v839_v2 = vadd.f32 %v2972_v14, %v779_v19  ;;  %4851 = vst [vmem:[#allocation60_spill] sm:$0xff] %v3195_v48  ;;  %v3201_v54 = vstv %s3118_s19  ;;  %v341_v45 = vadd.f32 %v3059_v40, %v317_v32  ;;  %v3205_v31 = vmul.f32 %v3195_v48, %v814_v61  ;;  %v3224_v17 = vld [vmem:[#allocation3 + $0x8] sm:$0xff]  ;;  %v3226_v40 = vld [vmem:[#allocation3 + $0x18] sm:$0xff]  ;;  %s3979_s19 = sld [smem:[#allocation7 + $0x23]] }
  0x4c   :  { %4849 = vst [vmem:[#allocation58_spill] sm:$0xff] %v3187_v26  ;;  %4850 = vst [vmem:[#allocation59_spill] sm:$0xff] %v3191_v44  ;;  %v3209_v55 = vmul.f32 %v3198_v53, %v2915_v8  ;;  %v3212_v20 = vmul.f32 %v3201_v54, %v874_v63  ;;  %v3216_v19 = vstv %s3128_s20  ;;  %v3219_v44 = vstv %s3140_s21  ;;  %v3228_v61 = vld [vmem:[#allocation3 + $0x28] sm:$0xff]  ;;  %v4869_v48 = vld [vmem:[#allocation40_spill] sm:$0xff]  ;;  %s3982_s20 = sld [smem:[#allocation7 + $0x22]]  ;;  %s3984_s21 = sld [smem:[#allocation7 + $0x25]] }
  0x4d   :  { %4852 = vst [vmem:[#allocation61_spill] sm:$0xff] %v3198_v53  ;;  %4853 = vst [vmem:[#allocation62_spill] sm:$0xff] %v3201_v54  ;;  %v899_v14 = vadd.f32 %v2976_v13, %v839_v2  ;;  %v3222_v26 = vstv %s3142_s22  ;;  %v377_v8 = vadd.f32 %v3074_v52, %v341_v45  ;;  %v3233_v63 = vmul.f32 %v3216_v19, %v2923_v47  ;;  %v3242_v2 = vld [vmem:[#allocation3 + $0x38] sm:$0xff]  ;;  %v3253_v45 = vld [vmem:[#allocation3 + $0x68] sm:$0xff]  ;;  %s3993_s22 = sld [smem:[#allocation7 + $0x26]] }
  0x4e   :  { %4854 = vst [vmem:[#allocation63_spill] sm:$0xff] %v3205_v31  ;;  %4855 = vst [vmem:[#allocation64_spill] sm:$0xff] %v3209_v55  ;;  %v3236_v13 = vmul.f32 %v3219_v44, %v934_v34  ;;  %v3240_v32 = vmul.f32 %v3222_v26, %v2925_v39  ;;  %v3244_v55 = vld [vmem:[#allocation3 + $0x58] sm:$0xff]  ;;  %v64_v52 = vmul.f32 %v2742_v1, %v3224_v17  ;;  %vm1020_vm1 = vcmask 121856  }
  0x4f   :  { %4856 = vst [vmem:[#allocation65_spill] sm:$0xff] %v3212_v20  ;;  %4857 = vst [vmem:[#allocation66_spill] sm:$0xff] %v3216_v19  ;;  %v273_v20 = vld [vmem:[#allocation3 + $0x48] sm:$0xff]  ;;  %v959_v31 = vadd.f32 %v2980_v11, %v899_v14  ;;  %v118_v47 = vmul.f32 %v2752_v4, %v3226_v40  ;;  %v178_v34 = vmul.f32 %v2756_v6, %v3228_v61  ;;  %v3255_v39 = vld [vmem:[#allocation3 + $0x78] sm:$0xff]  ;;  %vm1009_vm2 = vcmask 130048  }
  0x50   :  { %4858 = vst [vmem:[#allocation67_spill] sm:$0xff] %v3219_v44  ;;  %4859 = vst [vmem:[#allocation68_spill] sm:$0xff] %v3222_v26  ;;  %v238_v11 = vmul.f32 %v2768_v10, %v3242_v2  ;;  %v298_v14 = vmul.f32 %v2772_v12, %v273_v20  ;;  %v3265_v4 = vld [vmem:[#allocation3 + $0x98] sm:$0xff]  ;;  %v3269_v6 = vld [vmem:[#allocation3 + $0xe8] sm:$0xff] }
  0x51   :  { %4860 = vst [vmem:[#allocation69_spill] sm:$0xff] %v3224_v17  ;;  %4861 = vst [vmem:[#allocation70_spill] sm:$0xff] %v3226_v40  ;;  %v3267_v1 = vld [vmem:[#allocation3 + $0xd8] sm:$0xff]  ;;  %1014 = vrot.lane.b32.xlu0 %v959_v31, %s2692_s23  ;;  %v120_v26 = vadd.f32 %v118_v47, %v64_v52  ;;  %v3289_v31 = vmul.f32 %v2813_v29, %v3265_v4 }
  0x52   :  { %4862 = vst [vmem:[#allocation71_spill] sm:$0xff] %v3228_v61  ;;  %4863 = vst [vmem:[#allocation72_spill] sm:$0xff] %v3233_v63  ;;  %v358_v63 = vmul.f32 %v2782_v16, %v3244_v55  ;;  %v3280_v16 = vld [vmem:[#allocation3 + $0xa8] sm:$0xff]  ;;  %v3282_v10 = vld [vmem:[#allocation3 + $0xb8] sm:$0xff] }
  0x53   :  { %4864 = vst [vmem:[#allocation73_spill] sm:$0xff] %v3236_v13  ;;  %4865 = vst [vmem:[#allocation74_spill] sm:$0xff] %v3240_v32  ;;  %v3257_v32 = vld [vmem:[#allocation3 + $0x88] sm:$0xff]  ;;  %v401_v13 = vadd.f32 %v3077_v56, %v377_v8  ;;  %v418_v56 = vmul.f32 %v2786_v18, %v3253_v45  ;;  %v478_v8 = vmul.f32 %v2801_v25, %v3255_v39  ;;  %v3284_v44 = vld [vmem:[#allocation3 + $0xf8] sm:$0xff] }
  0x54   :  { %4866 = vst [vmem:[#allocation75_spill] sm:$0xff] %v3242_v2  ;;  %v3278_v12 = vmul.f32 %v2810_v28, %v3257_v32  ;;  %v3293_v52 = vmul.f32 %v2816_v30, %v3280_v16  ;;  %v4867_v47 = vld [vmem:[#allocation39_spill] sm:$0xff]  ;;  %v3299_v25 = vld [vmem:[#allocation3 + $0xc8] sm:$0xff]  ;;  %v180_v53 = vadd.f32 %v178_v34, %v120_v26  ;;  %v4873_v30 = vld [vmem:[#allocation42_spill] sm:$0xff] }
  0x55   :  { %v437_v54 = vadd.f32 %v3098_v9, %v401_v13  ;;  %v3297_v28 = vmul.f32 %v4867_v47, %v3282_v10  ;;  %v46_v18 = vld [vmem:[#allocation3 + $0x9] sm:$0x7f]  ;;  %v95_v19 = vld [vmem:[#allocation3 + $0x19] sm:$0x7f]  ;;  %v3303_v9 = vmul.f32 %v4869_v48, %v3299_v25  ;;  %v3311_v7 = vmul.f32 %v4873_v30, %v3269_v6  ;;  %v4877_v26 = vld [vmem:[#allocation46_spill] sm:$0xff] }
  0x56   :  { %v4871_v13 = vld [vmem:[#allocation41_spill] sm:$0xff]  ;;  %v76_v34 = vmul.f32 %v4877_v26, %v3224_v17  ;;  %v215_v48 = vld [vmem:[#allocation3 + $0x39] sm:$0x7f]  ;;  %v136_v30 = vmul.f32 %v3004_v43, %v3226_v40  ;;  %v3334_v17 = vsel %vm47_vm0, %v155_v59, 0.0  ;;  %v256_v59 = vmul.f32 %v3026_v5, %v3242_v2 }
  0x57   :  { %4868 = vst [vmem:[#allocation76_spill] sm:$0xff] %v3297_v28  ;;  %4870 = vst [vmem:[#allocation77_spill] sm:$0xff] %v3303_v9  ;;  %v3307_v29 = vmul.f32 %v4871_v13, %v3267_v1  ;;  %v461_v47 = vadd.f32 %v3101_v57, %v437_v54  ;;  %v4875_v28 = vld [vmem:[#allocation43_spill] sm:$0xff]  ;;  %v240_v9 = vadd.f32 %v238_v11, %v180_v53  ;;  %v3321_v13 = vsel %vm47_vm0, %v46_v18, 0.0  ;;  %v4880_v54 = vld [vmem:[#allocation45_spill] sm:$0xff] }
  0x58   :  { %4874 = vst [vmem:[#allocation79_spill] sm:$0xff] %v3311_v7  ;;  %v3316_v37 = vmul.f32 %v4875_v28, %v3284_v44  ;;  %4878 = vst [vmem:[#allocation81_spill] sm:$0xff] %v3321_v13  ;;  %v52_v28 = vmul.f32 %v4880_v54, %v3321_v13  ;;  %v275_v53 = vld [vmem:[#allocation3 + $0x49] sm:$0x7f]  ;;  %v335_v18 = vld [vmem:[#allocation3 + $0x59] sm:$0x7f] }
  0x59   :  { %4872 = vst [vmem:[#allocation78_spill] sm:$0xff] %v3307_v29  ;;  %v3324_v29 = vsel %vm47_vm0, %v95_v19, 0.0  ;;  %v497_v57 = vadd.f32 %v3108_v51, %v461_v47  ;;  %4882 = vst [vmem:[#allocation45_spill] sm:$0xff] %v3334_v17  ;;  %v300_v11 = vadd.f32 %v298_v14, %v240_v9  ;;  %v160_v19 = vmul.f32 %v3007_v42, %v3334_v17  ;;  %v4883_v26 = vld [vmem:[#allocation49_spill] sm:$0xff] }
  0x5a   :  { %4876 = vst [vmem:[#allocation80_spill] sm:$0xff] %v3316_v37  ;;  %4879 = vst [vmem:[#allocation82_spill] sm:$0xff] %v3324_v29  ;;  %v4881_v37 = vld [vmem:[#allocation47_spill] sm:$0xff]  ;;  %v196_v40 = vmul.f32 %v4883_v26, %v3228_v61  ;;  %v3341_v51 = vsel %vm47_vm0, %v215_v48, 0.0  ;;  %v78_v13 = vadd.f32 %v76_v34, %v52_v28  ;;  %v395_v43 = vld [vmem:[#allocation3 + $0x69] sm:$0x7f]  ;;  %v3352_v17 = vmul.f32 %v3042_v38, %v273_v20 }
  0x5b   :  { %v100_v7 = vmul.f32 %v4881_v37, %v3324_v29  ;;  %4884 = vst [vmem:[#allocation47_spill] sm:$0xff] %v3341_v51  ;;  %v521_v47 = vadd.f32 %v3122_v3, %v497_v57  ;;  %v220_v29 = vmul.f32 %v3023_v23, %v3341_v51  ;;  %v360_v14 = vadd.f32 %v358_v63, %v300_v11  ;;  %v455_v61 = vld [vmem:[#allocation3 + $0x79] sm:$0x7f]  ;;  %v515_v63 = vld [vmem:[#allocation3 + $0x89] sm:$0x7f] }
  0x5c   :  { %v3349_v9 = vsel %vm47_vm0, %v275_v53, 0.0  ;;  %v3355_v48 = vsel %vm47_vm0, %v335_v18, 0.0  ;;  %v3366_v20 = vmul.f32 %v3062_v62, %v3244_v55  ;;  %v3369_v18 = vsel %vm47_vm0, %v395_v43, 0.0  ;;  %v635_v55 = vld [vmem:[#allocation3 + $0xa9] sm:$0x7f]  ;;  %v4889_v43 = vld [vmem:[#allocation50_spill] sm:$0xff] }
  0x5d   :  { %4885 = vst [vmem:[#allocation83_spill] sm:$0xff] %v3349_v9  ;;  %4886 = vst [vmem:[#allocation84_spill] sm:$0xff] %v3355_v48  ;;  %v557_v28 = vadd.f32 %v3126_v33, %v521_v47  ;;  %v102_v3 = vadd.f32 %v100_v7, %v78_v13  ;;  %v280_v34 = vmul.f32 %v3039_v21, %v3349_v9  ;;  %v575_v47 = vld [vmem:[#allocation3 + $0x99] sm:$0x7f] }
  0x5e   :  { %v3362_v57 = vmul.f32 %v3045_v22, %v3355_v48  ;;  %v420_v53 = vadd.f32 %v418_v56, %v360_v14  ;;  %4887 = vst [vmem:[#allocation85_spill] sm:$0xff] %v3369_v18  ;;  %v3373_v33 = vmul.f32 %v3083_v35, %v3253_v45  ;;  %v3378_v11 = vmul.f32 %v3065_v15, %v3369_v18  ;;  %v4890_v45 = vld [vmem:[#allocation51_spill] sm:$0xff] }
  0x5f   :  { %v581_v7 = vadd.f32 %v3146_v41, %v557_v28  ;;  %v138_v13 = vadd.f32 %v136_v30, %v102_v3  ;;  %v3381_v56 = vsel %vm47_vm0, %v455_v61, 0.0  ;;  %v3389_v9 = vmul.f32 %v4890_v45, %v3255_v39  ;;  %v4892_v61 = vld [vmem:[#allocation52_spill] sm:$0xff] }
  0x60   :  { %4888 = vst [vmem:[#allocation86_spill] sm:$0xff] %v3381_v56  ;;  %v480_v14 = vadd.f32 %v478_v8, %v420_v53  ;;  %v3385_v48 = vmul.f32 %v4889_v43, %v3381_v56  ;;  %v3392_v30 = vsel %vm47_vm0, %v515_v63, 0.0  ;;  %v4893_v8 = vld [vmem:[#allocation53_spill] sm:$0xff]  ;;  %v695_v56 = vld [vmem:[#allocation3 + $0xb9] sm:$0x7f]  ;;  %v3405_v39 = vsel %vm47_vm0, %v575_v47, 0.0 }
  0x61   :  { %4891 = vst [vmem:[#allocation50_spill] sm:$0xff] %v3392_v30  ;;  %v617_v41 = vadd.f32 %v3150_v60, %v581_v7  ;;  %v162_v28 = vadd.f32 %v160_v19, %v138_v13  ;;  %v3397_v3 = vmul.f32 %v4892_v61, %v3392_v30  ;;  %v3401_v53 = vmul.f32 %v4893_v8, %v3257_v32  ;;  %v755_v19 = vld [vmem:[#allocation3 + $0xc9] sm:$0x7f]  ;;  %v815_v47 = vld [vmem:[#allocation3 + $0xd9] sm:$0x7f] }
  0x62   :  { %v540_v18 = vadd.f32 %v3278_v12, %v480_v14  ;;  %4894 = vst [vmem:[#allocation51_spill] sm:$0xff] %v3405_v39  ;;  %v3409_v63 = vmul.f32 %v3135_v46, %v3265_v4  ;;  %v3412_v60 = vsel %vm47_vm0, %v635_v55, 0.0  ;;  %v3417_v32 = vmul.f32 %v3132_v0, %v3405_v39 }
  0x63   :  { %4895 = vst [vmem:[#allocation52_spill] sm:$0xff] %v3412_v60  ;;  %v641_v7 = vadd.f32 %v3154_v36, %v617_v41  ;;  %v198_v13 = vadd.f32 %v196_v40, %v162_v28  ;;  %v3421_v12 = vmul.f32 %v3138_v50, %v3412_v60  ;;  %v3426_v4 = vmul.f32 %v3157_v24, %v3280_v16  ;;  %v935_v16 = vld [vmem:[#allocation3 + $0xf9] sm:$0x7f] }
  0x64   :  { %v600_v14 = vadd.f32 %v3289_v31, %v540_v18  ;;  %v3429_v55 = vsel %vm47_vm0, %v695_v56, 0.0  ;;  %v3433_v36 = vmul.f32 %v3172_v27, %v3282_v10  ;;  %v3441_v31 = vsel %vm47_vm0, %v755_v19, 0.0  ;;  %v875_v18 = vld [vmem:[#allocation3 + $0xe9] sm:$0x7f]  ;;  %v4901_v56 = vld [vmem:[#allocation55_spill] sm:$0xff]  ;;  %v4903_v10 = vld [vmem:[#allocation56_spill] sm:$0xff] }
  0x65   :  { %4896 = vst [vmem:[#allocation53_spill] sm:$0xff] %v3426_v4  ;;  %4897 = vst [vmem:[#allocation87_spill] sm:$0xff] %v3429_v55  ;;  %v677_v40 = vadd.f32 %v3165_v58, %v641_v7  ;;  %v222_v41 = vadd.f32 %v220_v29, %v198_v13  ;;  %v3438_v28 = vmul.f32 %v3160_v49, %v3429_v55  ;;  %v3453_v29 = vsel %vm47_vm0, %v815_v47, 0.0  ;;  %v4906_v58 = vld [vmem:[#allocation54_spill] sm:$0xff]  ;;  %v4907_v19 = vld [vmem:[#allocation60_spill] sm:$0xff] }
  0x66   :  { %4898 = vst [vmem:[#allocation88_spill] sm:$0xff] %v3433_v36  ;;  %4900 = vst [vmem:[#allocation90_spill] sm:$0xff] %v3441_v31  ;;  %v660_v60 = vadd.f32 %v3293_v52, %v600_v14  ;;  %v3446_v39 = vmul.f32 %v4901_v56, %v3441_v31  ;;  %v3450_v30 = vmul.f32 %v4903_v10, %v3299_v25  ;;  %v4909_v52 = vld [vmem:[#allocation61_spill] sm:$0xff]  ;;  %v4911_v31 = vld [vmem:[#allocation76_spill] sm:$0xff]  ;;  %v3466_v51 = vsel %vm47_vm0, %v875_v18, 0.0 }
  0x67   :  { %4899 = vst [vmem:[#allocation89_spill] sm:$0xff] %v3438_v28  ;;  %4905 = vst [vmem:[#allocation92_spill] sm:$0xff] %v3453_v29  ;;  %v701_v7 = vadd.f32 %v4906_v58, %v677_v40  ;;  %v258_v13 = vadd.f32 %v256_v59, %v222_v41  ;;  %v3458_v55 = vmul.f32 %v4907_v19, %v3453_v29  ;;  %v4913_v25 = vld [vmem:[#allocation66_spill] sm:$0xff]  ;;  %v3473_v40 = vsel %vm47_vm0, %v935_v16, 0.0  ;;  %v4916_v59 = vld [vmem:[#allocation57_spill] sm:$0xff] }
  0x68   :  { %4902 = vst [vmem:[#allocation55_spill] sm:$0xff] %v3446_v39  ;;  %4904 = vst [vmem:[#allocation91_spill] sm:$0xff] %v3450_v30  ;;  %v3462_v14 = vmul.f32 %v4909_v52, %v3267_v1  ;;  %v720_v2 = vadd.f32 %v4911_v31, %v660_v60  ;;  %v3470_v47 = vmul.f32 %v4913_v25, %v3269_v6  ;;  %v4917_v29 = vld [vmem:[#allocation62_spill] sm:$0xff]  ;;  %v4919_v1 = vld [vmem:[#allocation67_spill] sm:$0xff] }
  0x69   :  { %4908 = vst [vmem:[#allocation54_spill] sm:$0xff] %v3458_v55  ;;  %4912 = vst [vmem:[#allocation76_spill] sm:$0xff] %v3466_v51  ;;  %v737_v41 = vadd.f32 %v4916_v59, %v701_v7  ;;  %v282_v58 = vadd.f32 %v280_v34, %v258_v13  ;;  %v3478_v55 = vmul.f32 %v4917_v29, %v3466_v51  ;;  %v3484_v31 = vld [vmem:[#allocation3 + $0x100] sm:$0xff]  ;;  %v3486_v18 = vld [vmem:[#allocation3 + $0x110] sm:$0xff] }
  0x6a   :  { %4910 = vst [vmem:[#allocation93_spill] sm:$0xff] %v3462_v14  ;;  %4914 = vst [vmem:[#allocation94_spill] sm:$0xff] %v3470_v47  ;;  %v3482_v60 = vmul.f32 %v4919_v1, %v3473_v40  ;;  %v4923_v6 = vld [vmem:[#allocation77_spill] sm:$0xff]  ;;  %v4924_v16 = vld [vmem:[#allocation68_spill] sm:$0xff] }
  0x6b   :  { %4915 = vst [vmem:[#allocation95_spill] sm:$0xff] %v3473_v40  ;;  %4918 = vst [vmem:[#allocation57_spill] sm:$0xff] %v3478_v55  ;;  %v780_v47 = vadd.f32 %v4923_v6, %v720_v2  ;;  %v3491_v14 = vmul.f32 %v4924_v16, %v3284_v44  ;;  %v4926_v34 = vld [vmem:[#allocation13_spill] sm:$0xff]  ;;  %v4927_v13 = vld [vmem:[#allocation15_spill] sm:$0xff]  ;;  %v318_v30 = vadd.f32 %v3352_v17, %v282_v58 }
  0x6c   :  { %4920 = vst [vmem:[#allocation96_spill] sm:$0xff] %v3482_v60  ;;  %4921 = vst [vmem:[#allocation97_spill] sm:$0xff] %v3484_v31  ;;  %v1114_v7 = vmul.f32 %v4926_v34, %v3484_v31  ;;  %v1168_v59 = vmul.f32 %v4927_v13, %v3486_v18  ;;  %v3497_v51 = vld [vmem:[#allocation3 + $0x120] sm:$0xff]  ;;  %v3499_v40 = vld [vmem:[#allocation3 + $0x130] sm:$0xff] }
  0x6d   :  { %4922 = vst [vmem:[#allocation98_spill] sm:$0xff] %v3486_v18  ;;  %4925 = vst [vmem:[#allocation77_spill] sm:$0xff] %v3491_v14  ;;  %v4930_v60 = vld [vmem:[#allocation58_spill] sm:$0xff]  ;;  %v4931_v2 = vld [vmem:[#allocation17_spill] sm:$0xff] }
  0x6e   :  { %4928 = vst [vmem:[#allocation13_spill] sm:$0xff] %v3497_v51  ;;  %4929 = vst [vmem:[#allocation15_spill] sm:$0xff] %v3499_v40  ;;  %v761_v55 = vadd.f32 %v4930_v60, %v737_v41  ;;  %v1228_v6 = vmul.f32 %v4931_v2, %v3497_v51  ;;  %v4932_v44 = vld [vmem:[#allocation19_spill] sm:$0xff]  ;;  %v3507_v39 = vld [vmem:[#allocation3 + $0x140] sm:$0xff]  ;;  %v1170_v18 = vadd.f32 %v1168_v59, %v1114_v7 }
  0x6f   :  { %v1288_v14 = vmul.f32 %v4932_v44, %v3499_v40  ;;  %4933 = vst [vmem:[#allocation58_spill] sm:$0xff] %v3507_v39  ;;  %v3509_v34 = vld [vmem:[#allocation3 + $0x150] sm:$0xff]  ;;  %v4936_v31 = vld [vmem:[#allocation21_spill] sm:$0xff]  ;;  %v4937_v41 = vld [vmem:[#allocation23_spill] sm:$0xff]  ;;  %v342_v51 = vadd.f32 %v3362_v57, %v318_v30 }
  0x70   :  { %4934 = vst [vmem:[#allocation17_spill] sm:$0xff] %v3509_v34  ;;  %v4935_v36 = vld [vmem:[#allocation78_spill] sm:$0xff]  ;;  %v1348_v16 = vmul.f32 %v4936_v31, %v3507_v39  ;;  %v1408_v60 = vmul.f32 %v4937_v41, %v3509_v34  ;;  %v3516_v17 = vld [vmem:[#allocation3 + $0x160] sm:$0xff]  ;;  %v4941_v44 = vld [vmem:[#allocation59_spill] sm:$0xff]  ;;  %v1230_v29 = vadd.f32 %v1228_v6, %v1170_v18 }
  0x71   :  { %v840_v13 = vadd.f32 %v4935_v36, %v780_v47  ;;  %4938 = vst [vmem:[#allocation19_spill] sm:$0xff] %v3516_v17  ;;  %v3518_v58 = vld [vmem:[#allocation3 + $0x170] sm:$0xff]  ;;  %v3520_v2 = vld [vmem:[#allocation3 + $0x180] sm:$0xff]  ;;  %v797_v40 = vadd.f32 %v4941_v44, %v761_v55  ;;  %v4942_v1 = vld [vmem:[#allocation25_spill] sm:$0xff]  ;;  %v378_v25 = vadd.f32 %v3366_v20, %v342_v51 }
  0x72   :  { %4939 = vst [vmem:[#allocation78_spill] sm:$0xff] %v3518_v58  ;;  %4940 = vst [vmem:[#allocation21_spill] sm:$0xff] %v3520_v2  ;;  %v1468_v36 = vmul.f32 %v4942_v1, %v3516_v17  ;;  %v4943_v47 = vld [vmem:[#allocation29_spill] sm:$0xff]  ;;  %v3528_v31 = vld [vmem:[#allocation3 + $0x190] sm:$0xff]  ;;  %v1290_v19 = vadd.f32 %v1288_v14, %v1230_v29 }
  0x73   :  { %v1528_v7 = vmul.f32 %v4943_v47, %v3518_v58  ;;  %4944 = vst [vmem:[#allocation23_spill] sm:$0xff] %v3528_v31  ;;  %v3530_v59 = vld [vmem:[#allocation3 + $0x1a0] sm:$0xff]  ;;  %v3532_v41 = vld [vmem:[#allocation3 + $0x1d0] sm:$0xff]  ;;  %v4947_v34 = vld [vmem:[#allocation79_spill] sm:$0xff] }
  0x74   :  { %4945 = vst [vmem:[#allocation59_spill] sm:$0xff] %v3530_v59  ;;  %4946 = vst [vmem:[#allocation25_spill] sm:$0xff] %v3532_v41  ;;  %v900_v39 = vadd.f32 %v4947_v34, %v840_v13  ;;  %v4948_v28 = vld [vmem:[#allocation31_spill] sm:$0xff]  ;;  %v4949_v57 = vld [vmem:[#allocation32_spill] sm:$0xff] }
  0x75   :  { %v1588_v55 = vmul.f32 %v4948_v28, %v3520_v2  ;;  %v3539_v30 = vmul.f32 %v4949_v57, %v3528_v31  ;;  %v3541_v1 = vld [vmem:[#allocation3 + $0x1b0] sm:$0xff]  ;;  %v3543_v44 = vld [vmem:[#allocation3 + $0x1e0] sm:$0xff]  ;;  %v4953_v58 = vld [vmem:[#allocation63_spill] sm:$0xff] }
  0x76   :  { %4950 = vst [vmem:[#allocation29_spill] sm:$0xff] %v3541_v1  ;;  %4951 = vst [vmem:[#allocation79_spill] sm:$0xff] %v3543_v44  ;;  %v3545_v47 = vld [vmem:[#allocation3 + $0x1f0] sm:$0xff]  ;;  %v821_v17 = vadd.f32 %v4953_v58, %v797_v40  ;;  %v4954_v34 = vld [vmem:[#allocation33_spill] sm:$0xff] }
  0x77   :  { %4952 = vst [vmem:[#allocation31_spill] sm:$0xff] %v3545_v47  ;;  %v3551_v18 = vmul.f32 %v4954_v34, %v3530_v59  ;;  %v4955_v28 = vld [vmem:[#allocation39_spill] sm:$0xff]  ;;  %v3557_v13 = vld [vmem:[#allocation3 + $0x1c0] sm:$0xff]  ;;  %v1098_v57 = vld [vmem:[#allocation3 + $0x109] sm:$0x7f] }
  0x78   :  { %v3555_v6 = vmul.f32 %v4955_v28, %v3541_v1  ;;  %4956 = vst [vmem:[#allocation32_spill] sm:$0xff] %v3557_v13  ;;  %v1146_v31 = vld [vmem:[#allocation3 + $0x119] sm:$0x7f]  ;;  %v4957_v2 = vld [vmem:[#allocation80_spill] sm:$0xff]  ;;  %v4959_v51 = vld [vmem:[#allocation41_spill] sm:$0xff]  ;;  %v402_v28 = vadd.f32 %v3378_v11, %v378_v25  ;;  %v3580_v14 = vsel %vm47_vm0, %v1098_v57, 0.0 }
  0x79   :  { %v960_v52 = vadd.f32 %v4957_v2, %v900_v39  ;;  %v4958_v4 = vld [vmem:[#allocation40_spill] sm:$0xff]  ;;  %v3566_v20 = vmul.f32 %v4959_v51, %v3532_v41  ;;  %v4961_v1 = vld [vmem:[#allocation42_spill] sm:$0xff]  ;;  %v4962_v10 = vld [vmem:[#allocation43_spill] sm:$0xff]  ;;  %4964 = vst [vmem:[#allocation33_spill] sm:$0xff] %v3580_v14  ;;  %v3585_v11 = vsel %vm47_vm0, %v1146_v31, 0.0 }
  0x7a   :  { %v3562_v40 = vmul.f32 %v4958_v4, %v3557_v13  ;;  %v4960_v58 = vld [vmem:[#allocation64_spill] sm:$0xff]  ;;  %v3572_v59 = vmul.f32 %v4961_v1, %v3543_v44  ;;  %v3576_v39 = vmul.f32 %v4962_v10, %v3545_v47  ;;  %v1206_v29 = vld [vmem:[#allocation3 + $0x129] sm:$0x7f]  ;;  %v1350_v4 = vadd.f32 %v1348_v16, %v1290_v19  ;;  %v4965_v2 = vld [vmem:[#allocation46_spill] sm:$0xff]  ;;  %4967 = vst [vmem:[#allocation39_spill] sm:$0xff] %v3585_v11 }
  0x7b   :  { %v857_v34 = vadd.f32 %v4960_v58, %v821_v17  ;;  %1016 = vrot.lane.b32.xlu0 %v960_v52, %s2692_s23  ;;  %v4966_v51 = vld [vmem:[#allocation12_spill] sm:$0xff]  ;;  %v4968_v25 = vld [vmem:[#allocation65_spill] sm:$0xff]  ;;  %v438_v58 = vadd.f32 %v3373_v33, %v402_v28  ;;  %v1103_v10 = vmul.f32 %v3580_v14, %v4880_v54  ;;  %v1151_v52 = vmul.f32 %v3585_v11, %v4881_v37  ;;  %v1266_v19 = vld [vmem:[#allocation3 + $0x139] sm:$0x7f] }
  0x7c   :  { %4963 = vst [vmem:[#allocation63_spill] sm:$0xff] %v3576_v39  ;;  %v1127_v17 = vmul.f32 %v4966_v51, %v4965_v2  ;;  %v1326_v16 = vld [vmem:[#allocation3 + $0x149] sm:$0x7f]  ;;  %v1410_v57 = vadd.f32 %v1408_v60, %v1350_v4  ;;  %v4969_v47 = vld [vmem:[#allocation48_spill] sm:$0xff]  ;;  %v4970_v44 = vld [vmem:[#allocation14_spill] sm:$0xff]  ;;  %v3596_v51 = vsel %vm47_vm0, %v1206_v29, 0.0 }
  0x7d   :  { %v881_v1 = vadd.f32 %v4968_v25, %v857_v34  ;;  %v1187_v41 = vmul.f32 %v4970_v44, %v4969_v47  ;;  %4971 = vst [vmem:[#allocation80_spill] sm:$0xff] %v3596_v51  ;;  %v4972_v31 = vld [vmem:[#allocation16_spill] sm:$0xff]  ;;  %v462_v28 = vadd.f32 %v3385_v48, %v438_v58  ;;  %v1211_v11 = vmul.f32 %v3596_v51, %v3007_v42  ;;  %v1386_v13 = vld [vmem:[#allocation3 + $0x159] sm:$0x7f]  ;;  %v4975_v44 = vld [vmem:[#allocation18_spill] sm:$0xff] }
  0x7e   :  { %v1247_v34 = vmul.f32 %v4972_v31, %v4883_v26  ;;  %v4973_v25 = vld [vmem:[#allocation72_spill] sm:$0xff]  ;;  %v1129_v14 = vadd.f32 %v1127_v17, %v1103_v10  ;;  %v1470_v39 = vadd.f32 %v1468_v36, %v1410_v57  ;;  %v3605_v60 = vsel %vm47_vm0, %v1266_v19, 0.0  ;;  %v4977_v31 = vld [vmem:[#allocation73_spill] sm:$0xff]  ;;  %v5011_v51 = vld [vmem:[#allocation66_spill] sm:$0xff] }
  0x7f   :  { %v917_v33 = vadd.f32 %v4973_v25, %v881_v1  ;;  %4974 = vst [vmem:[#allocation40_spill] sm:$0xff] %v3605_v60  ;;  %v1307_v29 = vmul.f32 %v4975_v44, %v3026_v5  ;;  %v3610_v4 = vsel %vm47_vm0, %v1326_v16, 0.0  ;;  %v498_v1 = vadd.f32 %v3389_v9, %v462_v28  ;;  %v1446_v58 = vld [vmem:[#allocation3 + $0x169] sm:$0x7f]  ;;  %v4978_v19 = vld [vmem:[#allocation20_spill] sm:$0xff]  ;;  %v4981_v28 = vld [vmem:[#allocation22_spill] sm:$0xff] }
  0x80   :  { %4976 = vst [vmem:[#allocation41_spill] sm:$0xff] %v3610_v4  ;;  %v1153_v48 = vadd.f32 %v1151_v52, %v1129_v14  ;;  %v1271_v17 = vmul.f32 %v3605_v60, %v3023_v23  ;;  %v1530_v10 = vadd.f32 %v1528_v7, %v1470_v39  ;;  %v1331_v36 = vmul.f32 %v3610_v4, %v3039_v21  ;;  %v1506_v25 = vld [vmem:[#allocation3 + $0x179] sm:$0x7f]  ;;  %v1566_v7 = vld [vmem:[#allocation3 + $0x189] sm:$0x7f] }
  0x81   :  { %v941_v26 = vadd.f32 %v4977_v31, %v917_v33  ;;  %v3620_v57 = vmul.f32 %v4978_v19, %v3042_v38  ;;  %v3623_v16 = vsel %vm47_vm0, %v1386_v13, 0.0  ;;  %v4980_v33 = vld [vmem:[#allocation74_spill] sm:$0xff]  ;;  %v522_v9 = vadd.f32 %v3397_v3, %v498_v1  ;;  %v4983_v13 = vld [vmem:[#allocation24_spill] sm:$0xff]  ;;  %v1626_v1 = vld [vmem:[#allocation3 + $0x199] sm:$0x7f] }
  0x82   :  { %4979 = vst [vmem:[#allocation64_spill] sm:$0xff] %v3623_v16  ;;  %v1189_v14 = vadd.f32 %v1187_v41, %v1153_v48  ;;  %v3629_v52 = vmul.f32 %v3623_v16, %v3045_v22  ;;  %v1590_v39 = vadd.f32 %v1588_v55, %v1530_v10  ;;  %v3633_v31 = vmul.f32 %v4981_v28, %v3062_v62  ;;  %v1686_v48 = vld [vmem:[#allocation3 + $0x1a9] sm:$0x7f] }
  0x83   :  { %v977_v44 = vadd.f32 %v4980_v33, %v941_v26  ;;  %v3636_v19 = vsel %vm47_vm0, %v1446_v58, 0.0  ;;  %v3640_v4 = vmul.f32 %v4983_v13, %v3083_v35  ;;  %v558_v26 = vadd.f32 %v3401_v53, %v522_v9  ;;  %v4985_v33 = vld [vmem:[#allocation28_spill] sm:$0xff]  ;;  %v5007_v16 = vld [vmem:[#allocation61_spill] sm:$0xff] }
  0x84   :  { %4982 = vst [vmem:[#allocation42_spill] sm:$0xff] %v3636_v19  ;;  %v1213_v3 = vadd.f32 %v1211_v11, %v1189_v14  ;;  %v3646_v41 = vmul.f32 %v3636_v19, %v3065_v15  ;;  %v3649_v55 = vsel %vm47_vm0, %v1506_v25, 0.0  ;;  %v1650_v58 = vadd.f32 %v3539_v30, %v1590_v39  ;;  %v4987_v30 = vld [vmem:[#allocation30_spill] sm:$0xff]  ;;  %v1746_v39 = vld [vmem:[#allocation3 + $0x1b9] sm:$0x7f] }
  0x85   :  { %1065 = vrot.lane.b32.xlu1 %v977_v44, %s2692_s23  ;;  %4984 = vst [vmem:[#allocation43_spill] sm:$0xff] %v3649_v55  ;;  %v3654_v10 = vmul.f32 %v3649_v55, %v4889_v43  ;;  %v3658_v44 = vmul.f32 %v4985_v33, %v4890_v45  ;;  %v3661_v53 = vsel %vm47_vm0, %v1566_v7, 0.0  ;;  %v582_v11 = vadd.f32 %v3417_v32, %v558_v26  ;;  %v4989_v7 = vld [vmem:[#allocation26_spill] sm:$0xff]  ;;  %v5001_v55 = vld [vmem:[#allocation35_spill] sm:$0xff] }
  0x86   :  { %4986 = vst [vmem:[#allocation46_spill] sm:$0xff] %v3661_v53  ;;  %v1249_v9 = vadd.f32 %v1247_v34, %v1213_v3  ;;  %v3666_v25 = vmul.f32 %v3661_v53, %v4892_v61  ;;  %v3670_v14 = vmul.f32 %v4987_v30, %v4893_v8  ;;  %v1710_v28 = vadd.f32 %v3551_v18, %v1650_v58  ;;  %v1806_v34 = vld [vmem:[#allocation3 + $0x1c9] sm:$0x7f] }
  0x87   :  { %v3674_v13 = vsel %vm47_vm0, %v1626_v1, 0.0  ;;  %v3678_v33 = vmul.f32 %v4989_v7, %v3135_v46  ;;  %v3681_v32 = vsel %vm47_vm0, %v1686_v48, 0.0  ;;  %v618_v26 = vadd.f32 %v3409_v63, %v582_v11  ;;  %v1866_v1 = vld [vmem:[#allocation3 + $0x1d9] sm:$0x7f]  ;;  %v4995_v63 = vld [vmem:[#allocation34_spill] sm:$0xff] }
  0x88   :  { %4988 = vst [vmem:[#allocation12_spill] sm:$0xff] %v3674_v13  ;;  %4990 = vst [vmem:[#allocation65_spill] sm:$0xff] %v3681_v32  ;;  %v1273_v3 = vadd.f32 %v1271_v17, %v1249_v9  ;;  %v3686_v30 = vmul.f32 %v3674_v13, %v3132_v0  ;;  %v3690_v18 = vmul.f32 %v3681_v32, %v3138_v50  ;;  %v4992_v7 = vld [vmem:[#allocation27_spill] sm:$0xff]  ;;  %v3698_v48 = vsel %vm47_vm0, %v1746_v39, 0.0 }
  0x89   :  { %v1770_v58 = vadd.f32 %v3555_v6, %v1710_v28  ;;  %v3695_v53 = vmul.f32 %v4992_v7, %v3157_v24  ;;  %4994 = vst [vmem:[#allocation16_spill] sm:$0xff] %v3698_v48  ;;  %v3702_v17 = vmul.f32 %v4995_v63, %v3172_v27  ;;  %v642_v11 = vadd.f32 %v3421_v12, %v618_v26  ;;  %v1926_v28 = vld [vmem:[#allocation3 + $0x1e9] sm:$0x7f]  ;;  %v1986_v7 = vld [vmem:[#allocation3 + $0x1f9] sm:$0x7f]  ;;  %v5000_v63 = vld [vmem:[#allocation56_spill] sm:$0xff] }
  0x8a   :  { %4991 = vst [vmem:[#allocation48_spill] sm:$0xff] %v3690_v18  ;;  %v1309_v9 = vadd.f32 %v1307_v29, %v1273_v3  ;;  %v3707_v32 = vmul.f32 %v3698_v48, %v3160_v49  ;;  %v3710_v6 = vsel %vm47_vm0, %v1806_v34, 0.0  ;;  %v3719_v19 = vmul.f32 %v5001_v55, %v5000_v63  ;;  %v5004_v29 = vld [vmem:[#allocation53_spill] sm:$0xff]  ;;  %v5005_v34 = vld [vmem:[#allocation60_spill] sm:$0xff]  ;;  %v5029_v18 = vld [vmem:[#allocation55_spill] sm:$0xff] }
  0x8b   :  { %4993 = vst [vmem:[#allocation14_spill] sm:$0xff] %v3695_v53  ;;  %4996 = vst [vmem:[#allocation72_spill] sm:$0xff] %v3702_v17  ;;  %v1830_v13 = vadd.f32 %v3562_v40, %v1770_v58  ;;  %v3715_v39 = vmul.f32 %v3710_v6, %v4901_v56  ;;  %v3722_v12 = vsel %vm47_vm0, %v1866_v1, 0.0  ;;  %v678_v26 = vadd.f32 %v5004_v29, %v642_v11  ;;  %v5008_v40 = vld [vmem:[#allocation36_spill] sm:$0xff]  ;;  %v5012_v1 = vld [vmem:[#allocation37_spill] sm:$0xff] }
  0x8c   :  { %4997 = vst [vmem:[#allocation18_spill] sm:$0xff] %v3707_v32  ;;  %4998 = vst [vmem:[#allocation73_spill] sm:$0xff] %v3710_v6  ;;  %v1333_v3 = vadd.f32 %v1331_v36, %v1309_v9  ;;  %v3727_v48 = vmul.f32 %v3722_v12, %v5005_v34  ;;  %v3731_v58 = vmul.f32 %v5008_v40, %v5007_v16  ;;  %v1097_v6 = vld [vmem:[#allocation3 + $0x101] sm:$0xff]  ;;  %v3735_v55 = vsel %vm47_vm0, %v1926_v28, 0.0  ;;  %v1145_v11 = vld [vmem:[#allocation3 + $0x111] sm:$0xff] }
  0x8d   :  { %4999 = vst [vmem:[#allocation20_spill] sm:$0xff] %v3715_v39  ;;  %5002 = vst [vmem:[#allocation74_spill] sm:$0xff] %v3719_v19  ;;  %v1890_v60 = vadd.f32 %v3566_v20, %v1830_v13  ;;  %v3739_v19 = vmul.f32 %v5012_v1, %v5011_v51  ;;  %v3742_v36 = vsel %vm47_vm0, %v1986_v7, 0.0  ;;  %v5015_v9 = vld [vmem:[#allocation89_spill] sm:$0xff]  ;;  %v5016_v40 = vld [vmem:[#allocation62_spill] sm:$0xff]  ;;  %v1102_v39 = vmul.f32 %v1097_v6, %v4880_v54 }
  0x8e   :  { %5003 = vst [vmem:[#allocation22_spill] sm:$0xff] %v3722_v12  ;;  %5006 = vst [vmem:[#allocation24_spill] sm:$0xff] %v3727_v48  ;;  %v702_v29 = vadd.f32 %v5015_v9, %v678_v26  ;;  %v1369_v12 = vadd.f32 %v3620_v57, %v1333_v3  ;;  %v5018_v20 = vld [vmem:[#allocation67_spill] sm:$0xff]  ;;  %v1205_v28 = vld [vmem:[#allocation3 + $0x121] sm:$0xff] }
  0x8f   :  { %5009 = vst [vmem:[#allocation28_spill] sm:$0xff] %v3731_v58  ;;  %5010 = vst [vmem:[#allocation30_spill] sm:$0xff] %v3735_v55  ;;  %v3748_v58 = vmul.f32 %v3735_v55, %v5016_v40  ;;  %v3752_v13 = vmul.f32 %v3742_v36, %v5018_v20  ;;  %v1950_v1 = vadd.f32 %v3572_v59, %v1890_v60  ;;  %v5021_v48 = vld [vmem:[#allocation38_spill] sm:$0xff]  ;;  %v5023_v26 = vld [vmem:[#allocation97_spill] sm:$0xff] }
  0x90   :  { %5013 = vst [vmem:[#allocation26_spill] sm:$0xff] %v3739_v19  ;;  %5014 = vst [vmem:[#allocation27_spill] sm:$0xff] %v3742_v36  ;;  %v5020_v19 = vld [vmem:[#allocation68_spill] sm:$0xff]  ;;  %v1126_v57 = vmul.f32 %v5023_v26, %v4965_v2  ;;  %v1265_v3 = vld [vmem:[#allocation3 + $0x131] sm:$0xff]  ;;  %v1150_v36 = vmul.f32 %v1145_v11, %v4881_v37  ;;  %v1210_v54 = vmul.f32 %v1205_v28, %v3007_v42 }
  0x91   :  { %5017 = vst [vmem:[#allocation34_spill] sm:$0xff] %v3748_v58  ;;  %5019 = vst [vmem:[#allocation56_spill] sm:$0xff] %v3752_v13  ;;  %v3757_v7 = vmul.f32 %v5021_v48, %v5020_v19  ;;  %v5024_v9 = vld [vmem:[#allocation88_spill] sm:$0xff]  ;;  %v1393_v58 = vadd.f32 %v3629_v52, %v1369_v12  ;;  %v5025_v13 = vld [vmem:[#allocation98_spill] sm:$0xff]  ;;  %v1270_v37 = vmul.f32 %v1265_v3, %v3023_v23 }
  0x92   :  { %v738_v55 = vadd.f32 %v5024_v9, %v702_v29  ;;  %v1186_v17 = vmul.f32 %v5025_v13, %v4969_v47  ;;  %v1325_v59 = vld [vmem:[#allocation3 + $0x141] sm:$0xff]  ;;  %v1385_v60 = vld [vmem:[#allocation3 + $0x151] sm:$0xff] }
  0x93   :  { %5022 = vst [vmem:[#allocation35_spill] sm:$0xff] %v3757_v7  ;;  %v5026_v32 = vld [vmem:[#allocation63_spill] sm:$0xff]  ;;  %v1128_v7 = vadd.f32 %v1126_v57, %v1102_v39  ;;  %v5027_v6 = vld [vmem:[#allocation49_spill] sm:$0xff]  ;;  %v1429_v52 = vadd.f32 %v3633_v31, %v1393_v58  ;;  %v3778_v39 = vmul.f32 %v1325_v59, %v3039_v21  ;;  %v5031_v42 = vld [vmem:[#allocation58_spill] sm:$0xff] }
  0x94   :  { %v2010_v48 = vadd.f32 %v5026_v32, %v1950_v1  ;;  %v5028_v53 = vld [vmem:[#allocation13_spill] sm:$0xff]  ;;  %v762_v29 = vadd.f32 %v5029_v18, %v738_v55  ;;  %v5030_v12 = vld [vmem:[#allocation15_spill] sm:$0xff]  ;;  %v3785_v18 = vmul.f32 %v1385_v60, %v3045_v22 }
  0x95   :  { %v1246_v2 = vmul.f32 %v5028_v53, %v5027_v6  ;;  %v1445_v26 = vld [vmem:[#allocation3 + $0x161] sm:$0xff]  ;;  %v1306_v47 = vmul.f32 %v5030_v12, %v3026_v5  ;;  %v1505_v11 = vld [vmem:[#allocation3 + $0x171] sm:$0xff]  ;;  %v1152_v32 = vadd.f32 %v1150_v36, %v1128_v7  ;;  %v3782_v53 = vmul.f32 %v5031_v42, %v3042_v38 }
  0x96   :  { %2065 = vrot.lane.b32.xlu0 %v2010_v48, %s2692_s23  ;;  %v1565_v31 = vld [vmem:[#allocation3 + $0x181] sm:$0xff]  ;;  %v5032_v58 = vld [vmem:[#allocation91_spill] sm:$0xff]  ;;  %v1453_v55 = vadd.f32 %v3646_v41, %v1429_v52  ;;  %v3794_v36 = vmul.f32 %v1445_v26, %v3065_v15  ;;  %v3803_v7 = vmul.f32 %v1505_v11, %v4889_v43  ;;  %v5035_v41 = vld [vmem:[#allocation78_spill] sm:$0xff] }
  0x97   :  { %v798_v23 = vadd.f32 %v5032_v58, %v762_v29  ;;  %v5033_v5 = vld [vmem:[#allocation17_spill] sm:$0xff]  ;;  %v1625_v21 = vld [vmem:[#allocation3 + $0x191] sm:$0xff]  ;;  %v1188_v38 = vadd.f32 %v1186_v17, %v1152_v32  ;;  %v3807_v57 = vmul.f32 %v5035_v41, %v4890_v45  ;;  %v3814_v17 = vmul.f32 %v1565_v31, %v4892_v61 }
  0x98   :  { %v3791_v13 = vmul.f32 %v5033_v5, %v3062_v62  ;;  %v1685_v28 = vld [vmem:[#allocation3 + $0x1a1] sm:$0xff]  ;;  %v5034_v22 = vld [vmem:[#allocation19_spill] sm:$0xff]  ;;  %v5036_v15 = vld [vmem:[#allocation54_spill] sm:$0xff]  ;;  %v1489_v9 = vadd.f32 %v3640_v4, %v1453_v55  ;;  %v3823_v45 = vmul.f32 %v1625_v21, %v3132_v0 }
  0x99   :  { %v3800_v1 = vmul.f32 %v5034_v22, %v3083_v35  ;;  %v1745_v62 = vld [vmem:[#allocation3 + $0x1b1] sm:$0xff]  ;;  %v822_v3 = vadd.f32 %v5036_v15, %v798_v23  ;;  %v5037_v35 = vld [vmem:[#allocation21_spill] sm:$0xff]  ;;  %v1212_v60 = vadd.f32 %v1210_v54, %v1188_v38  ;;  %v3830_v4 = vmul.f32 %v1685_v28, %v3138_v50  ;;  %v5048_v22 = vld [vmem:[#allocation44_spill] sm:$0xff] }
  0x9a   :  { %v3818_v59 = vmul.f32 %v5037_v35, %v4893_v8  ;;  %v1805_v43 = vld [vmem:[#allocation3 + $0x1c1] sm:$0xff]  ;;  %v5038_v48 = vld [vmem:[#allocation23_spill] sm:$0xff]  ;;  %v1513_v29 = vadd.f32 %v3654_v10, %v1489_v9  ;;  %v3843_v52 = vmul.f32 %v1745_v62, %v3160_v49  ;;  %v58_v15 = vstv %s3809_s26  ;;  %s4006_s26 = sld [smem:[#allocation7 + $0x29]] }
  0x9b   :  { %v3827_v6 = vmul.f32 %v5038_v48, %v3135_v46  ;;  %v1865_v61 = vld [vmem:[#allocation3 + $0x1d1] sm:$0xff]  ;;  %v5039_v8 = vld [vmem:[#allocation93_spill] sm:$0xff]  ;;  %v1248_v50 = vadd.f32 %v1246_v2, %v1212_v60  ;;  %v3850_v42 = vmul.f32 %v1805_v43, %v4901_v56  ;;  %v5042_v10 = vld [vmem:[#allocation32_spill] sm:$0xff]  ;;  %v59_v35 = vmul.f32 %v58_v15, %v5048_v22 }
  0x9c   :  { %v858_v26 = vadd.f32 %v5039_v8, %v822_v3  ;;  %v5040_v54 = vld [vmem:[#allocation59_spill] sm:$0xff]  ;;  %v1925_v46 = vld [vmem:[#allocation3 + $0x1e1] sm:$0xff]  ;;  %v3854_v31 = vmul.f32 %v5042_v10, %v5000_v63  ;;  %v1549_v49 = vadd.f32 %v3658_v44, %v1513_v29  ;;  %v3859_v23 = vmul.f32 %v1865_v61, %v5005_v34  ;;  %v5046_v34 = vld [vmem:[#allocation94_spill] sm:$0xff] }
  0x9d   :  { %v3840_v0 = vmul.f32 %v5040_v54, %v3157_v24  ;;  %v1985_v12 = vld [vmem:[#allocation3 + $0x1f1] sm:$0xff]  ;;  %v5041_v11 = vld [vmem:[#allocation29_spill] sm:$0xff]  ;;  %v1272_v56 = vadd.f32 %v1270_v37, %v1248_v50  ;;  %v3870_v63 = vmul.f32 %v1925_v46, %v5016_v40  ;;  %v54_v40 = vstv %s3796_s24  ;;  %v5050_v3 = vld [vmem:[#allocation96_spill] sm:$0xff]  ;;  %s3999_s24 = sld [smem:[#allocation7 + $0x28]] }
  0x9e   :  { %v3847_v32 = vmul.f32 %v5041_v11, %v3172_v27  ;;  %v5043_v24 = vld [vmem:[#allocation57_spill] sm:$0xff]  ;;  %v5045_v55 = vld [vmem:[#allocation79_spill] sm:$0xff]  ;;  %v3877_v44 = vmul.f32 %v1985_v12, %v5018_v20  ;;  %v1573_v21 = vadd.f32 %v3666_v25, %v1549_v49  ;;  %v55_v41 = vmul.f32 %v54_v40, %v5048_v22  ;;  %v2534_v8 = vld [vmem:[#allocation3] sm:$0xff] }
  0x9f   :  { %v882_v58 = vadd.f32 %v5043_v24, %v858_v26  ;;  %v5044_v2 = vld [vmem:[#allocation25_spill] sm:$0xff]  ;;  %v3874_v5 = vmul.f32 %v5045_v55, %v5011_v51  ;;  %v5047_v28 = vld [vmem:[#allocation31_spill] sm:$0xff]  ;;  %v1308_v38 = vadd.f32 %v1306_v47, %v1272_v56  ;;  %v70_v25 = vstv %s3832_s28  ;;  %v5053_v56 = vld [vmem:[#allocation48_spill] sm:$0xff]  ;;  %s4014_s28 = sld [smem:[#allocation7 + $0x2c]] }
  0xa0   :  { %v3863_v27 = vmul.f32 %v5044_v2, %v5007_v16  ;;  %v3883_v37 = vmul.f32 %v5047_v28, %v5020_v19  ;;  %v5049_v51 = vld [vmem:[#allocation81_spill] sm:$0xff]  ;;  %v1609_v9 = vadd.f32 %v3670_v14, %v1573_v21  ;;  %v80_v60 = vstv %s3834_s29  ;;  %v5054_v22 = vld [vmem:[#allocation82_spill] sm:$0xff]  ;;  %s4019_s29 = sld [smem:[#allocation7 + $0x2e]] }
  0xa1   :  { %v918_v16 = vadd.f32 %v5046_v34, %v882_v58  ;;  %v56_v62 = vmul.f32 %v54_v40, %v5049_v51  ;;  %v60_v43 = vmul.f32 %v58_v15, %v5049_v51  ;;  %v1332_v19 = vadd.f32 %v3778_v39, %v1308_v38  ;;  %v5051_v48 = vld [vmem:[#allocation77_spill] sm:$0xff] }
  0xa2   :  { %v86_v47 = vstv %s3820_s27  ;;  %v1633_v14 = vadd.f32 %v3686_v30, %v1609_v9  ;;  %v71_v26 = vmul.f32 %v2534_v8, %v70_v25  ;;  %v5052_v29 = vld [vmem:[#allocation69_spill] sm:$0xff]  ;;  %v81_v39 = vmul.f32 %v2534_v8, %v80_v60  ;;  %s4008_s27 = sld [smem:[#allocation7 + $0x2b]] }
  0xa3   :  { %v942_v20 = vadd.f32 %v5050_v3, %v918_v16  ;;  %v72_v54 = vmul.f32 %v70_v25, %v5052_v29  ;;  %v1368_v46 = vadd.f32 %v3782_v53, %v1332_v19  ;;  %v82_v12 = vmul.f32 %v80_v60, %v5052_v29 }
  0xa4   :  { %v87_v50 = vmul.f32 %v2534_v8, %v86_v47  ;;  %v1669_v11 = vadd.f32 %v3678_v33, %v1633_v14  ;;  %v88_v10 = vmul.f32 %v86_v47, %v5052_v29  ;;  %v104_v24 = vstv %s3865_s30  ;;  %v2535_v33 = vld [vmem:[#allocation3 + $0x11] sm:$0xff]  ;;  %s4021_s30 = sld [smem:[#allocation7 + $0x2f]] }
  0xa5   :  { %v978_v61 = vadd.f32 %v5051_v48, %v942_v20  ;;  %v110_v58 = vstv %s3867_s4  ;;  %v1392_v30 = vadd.f32 %v3785_v18, %v1368_v46  ;;  %v83_v53 = vadd.f32 %v81_v39, %v55_v41  ;;  %v5055_v18 = vld [vmem:[#allocation14_spill] sm:$0xff]  ;;  %v5058_v46 = vld [vmem:[#allocation72_spill] sm:$0xff]  ;;  %s4026_s4 = sld [smem:[#allocation7 + $0x31]] }
  0xa6   :  { %v84_v49 = vadd.f32 %v82_v12, %v56_v62  ;;  %v89_v2 = vadd.f32 %v87_v50, %v59_v35  ;;  %v1693_v55 = vadd.f32 %v5053_v56, %v1669_v11  ;;  %v66_v34 = vstv %s3893_s5  ;;  %v2536_v47 = vld [vmem:[#allocation3 + $0x10] sm:$0xff]  ;;  %s4028_s5 = sld [smem:[#allocation7 + $0x32]] }
  0xa7   :  { %1067 = vrot.lane.b32.xlu1 %v978_v61, %s2692_s23  ;;  %v90_v16 = vadd.f32 %v88_v10, %v60_v43  ;;  %v105_v21 = vmul.f32 %v2535_v33, %v104_v24  ;;  %v1428_v28 = vadd.f32 %v3791_v13, %v1392_v30  ;;  %v67_v40 = vmul.f32 %v2534_v8, %v66_v34  ;;  %v5056_v43 = vld [vmem:[#allocation18_spill] sm:$0xff] }
  0xa8   :  { %v68_v38 = vmul.f32 %v66_v34, %v5052_v29  ;;  %v106_v51 = vmul.f32 %v104_v24, %v5054_v22  ;;  %v1729_v41 = vadd.f32 %v5055_v18, %v1693_v55  ;;  %v111_v15 = vmul.f32 %v2535_v33, %v110_v58  ;;  %v5057_v14 = vld [vmem:[#allocation70_spill] sm:$0xff]  ;;  %v5061_v18 = vld [vmem:[#allocation45_spill] sm:$0xff] }
  0xa9   :  { %v107_v62 = vadd.f32 %v105_v21, %v83_v53  ;;  %v112_v3 = vmul.f32 %v110_v58, %v5054_v22  ;;  %v1452_v20 = vadd.f32 %v3794_v36, %v1428_v28  ;;  %v122_v13 = vstv %s3899_s6  ;;  %v2537_v22 = vld [vmem:[#allocation3 + $0x21] sm:$0xff]  ;;  %s4033_s6 = sld [smem:[#allocation7 + $0x34]] }
  0xaa   :  { %v108_v9 = vadd.f32 %v106_v51, %v84_v49  ;;  %v128_v35 = vstv %s3901_s0  ;;  %v1753_v19 = vadd.f32 %v5056_v43, %v1729_v41  ;;  %v113_v25 = vadd.f32 %v111_v15, %v89_v2  ;;  %s4037_s0 = sld [smem:[#allocation7 + $0x35]] }
  0xab   :  { %v114_v60 = vadd.f32 %v112_v3, %v90_v16  ;;  %v123_v48 = vmul.f32 %v2536_v47, %v122_v13  ;;  %v1488_v61 = vadd.f32 %v3800_v1, %v1452_v20  ;;  %v124_v8 = vmul.f32 %v122_v13, %v5057_v14  ;;  %v5059_v1 = vld [vmem:[#allocation20_spill] sm:$0xff] }
  0xac   :  { %v129_v29 = vmul.f32 %v2536_v47, %v128_v35  ;;  %v130_v36 = vmul.f32 %v128_v35, %v5057_v14  ;;  %v1789_v39 = vadd.f32 %v5058_v46, %v1753_v19  ;;  %v140_v50 = vstv %s3913_s7  ;;  %v2538_v35 = vld [vmem:[#allocation3 + $0x20] sm:$0xff]  ;;  %v5065_v46 = vld [vmem:[#allocation34_spill] sm:$0xff]  ;;  %s4039_s7 = sld [smem:[#allocation7 + $0x37]] }
  0xad   :  { %v125_v12 = vadd.f32 %v123_v48, %v67_v40  ;;  %v146_v11 = vstv %s3915_s8  ;;  %v1512_v10 = vadd.f32 %v3803_v7, %v1488_v61  ;;  %v126_v24 = vadd.f32 %v124_v8, %v68_v38  ;;  %v5063_v19 = vld [vmem:[#allocation28_spill] sm:$0xff]  ;;  %v5064_v48 = vld [vmem:[#allocation71_spill] sm:$0xff]  ;;  %s4044_s8 = sld [smem:[#allocation7 + $0x38]] }
  0xae   :  { %v131_v58 = vadd.f32 %v129_v29, %v71_v26  ;;  %v132_v30 = vadd.f32 %v130_v36, %v72_v54  ;;  %v1813_v53 = vadd.f32 %v5059_v1, %v1789_v39  ;;  %v141_v49 = vmul.f32 %v2536_v47, %v140_v50  ;;  %v5060_v26 = vld [vmem:[#allocation74_spill] sm:$0xff] }
  0xaf   :  { %v142_v2 = vmul.f32 %v140_v50, %v5057_v14  ;;  %v147_v56 = vmul.f32 %v2536_v47, %v146_v11  ;;  %v1548_v55 = vadd.f32 %v3807_v57, %v1512_v10  ;;  %v148_v34 = vmul.f32 %v146_v11, %v5057_v14  ;;  %v5062_v57 = vld [vmem:[#allocation24_spill] sm:$0xff] }
  0xb0   :  { %v164_v16 = vstv %s3923_s9  ;;  %v170_v7 = vstv %s3925_s10  ;;  %v1849_v54 = vadd.f32 %v5060_v26, %v1813_v53  ;;  %v143_v33 = vadd.f32 %v141_v49, %v107_v62  ;;  %s4046_s9 = sld [smem:[#allocation7 + $0x3a]]  ;;  %s4053_s10 = sld [smem:[#allocation7 + $0x3e]] }
  0xb1   :  { %v144_v21 = vadd.f32 %v142_v2, %v108_v9  ;;  %v149_v28 = vadd.f32 %v147_v56, %v113_v25  ;;  %v1572_v40 = vadd.f32 %v3814_v17, %v1548_v55  ;;  %v150_v38 = vadd.f32 %v148_v34, %v114_v60 }
  0xb2   :  { %v165_v51 = vmul.f32 %v2537_v22, %v164_v16  ;;  %v166_v41 = vmul.f32 %v164_v16, %v5061_v18  ;;  %v1873_v15 = vadd.f32 %v5062_v57, %v1849_v54  ;;  %v171_v3 = vmul.f32 %v2537_v22, %v170_v7 }
  0xb3   :  { %v172_v20 = vmul.f32 %v170_v7, %v5061_v18  ;;  %v182_v13 = vstv %s3933_s11  ;;  %v1608_v62 = vadd.f32 %v3818_v59, %v1572_v40  ;;  %v188_v29 = vstv %s3942_s12  ;;  %v5067_v7 = vld [vmem:[#allocation56_spill] sm:$0xff]  ;;  %s4056_s11 = sld [smem:[#allocation7 + $0x3b]]  ;;  %s4058_s12 = sld [smem:[#allocation7 + $0x3d]] }
  0xb4   :  { %v167_v17 = vadd.f32 %v165_v51, %v143_v33  ;;  %v168_v9 = vadd.f32 %v166_v41, %v144_v21  ;;  %v183_v43 = vmul.f32 %v2538_v35, %v182_v13  ;;  %v1909_v25 = vadd.f32 %v5063_v19, %v1873_v15 }
  0xb5   :  { %v173_v60 = vadd.f32 %v171_v3, %v149_v28  ;;  %v174_v47 = vadd.f32 %v172_v20, %v150_v38  ;;  %v184_v61 = vmul.f32 %v182_v13, %v5064_v48  ;;  %v1632_v14 = vadd.f32 %v3823_v45, %v1608_v62  ;;  %v5066_v45 = vld [vmem:[#allocation26_spill] sm:$0xff]  ;;  %v5068_v38 = vld [vmem:[#allocation47_spill] sm:$0xff] }
  0xb6   :  { %v185_v8 = vadd.f32 %v183_v43, %v125_v12  ;;  %v200_v36 = vstv %s3944_s13  ;;  %v1933_v59 = vadd.f32 %v5065_v46, %v1909_v25  ;;  %v189_v50 = vmul.f32 %v2538_v35, %v188_v29  ;;  %v2539_v28 = vld [vmem:[#allocation3 + $0x31] sm:$0xff]  ;;  %s4064_s13 = sld [smem:[#allocation7 + $0x40]] }
  0xb7   :  { %v186_v39 = vadd.f32 %v184_v61, %v126_v24  ;;  %v190_v11 = vmul.f32 %v188_v29, %v5064_v48  ;;  %v1668_v10 = vadd.f32 %v3827_v6, %v1632_v14  ;;  %v201_v1 = vmul.f32 %v2538_v35, %v200_v36 }
  0xb8   :  { %v202_v53 = vmul.f32 %v200_v36, %v5064_v48  ;;  %v206_v49 = vstv %s3952_s14  ;;  %v1969_v12 = vadd.f32 %v5066_v45, %v1933_v59  ;;  %v191_v2 = vadd.f32 %v189_v50, %v131_v58  ;;  %s4066_s14 = sld [smem:[#allocation7 + $0x41]] }
  0xb9   :  { %v192_v56 = vadd.f32 %v190_v11, %v132_v30  ;;  %v207_v24 = vmul.f32 %v2538_v35, %v206_v49  ;;  %v1692_v55 = vadd.f32 %v3830_v4, %v1668_v10  ;;  %v203_v6 = vadd.f32 %v201_v1, %v167_v17  ;;  %v5069_v4 = vld [vmem:[#allocation35_spill] sm:$0xff]  ;;  %v2542_v10 = vld [vmem:[#allocation3 + $0x41] sm:$0xff] }
  0xba   :  { %v204_v34 = vadd.f32 %v202_v53, %v168_v9  ;;  %v208_v16 = vmul.f32 %v206_v49, %v5064_v48  ;;  %v1993_v26 = vadd.f32 %v5067_v7, %v1969_v12  ;;  %v224_v33 = vstv %s3960_s15  ;;  %v5070_v9 = vld [vmem:[#allocation75_spill] sm:$0xff]  ;;  %s4073_s15 = sld [smem:[#allocation7 + $0x43]] }
  0xbb   :  { %v209_v54 = vadd.f32 %v207_v24, %v173_v60  ;;  %v230_v21 = vstv %s3962_s16  ;;  %v1728_v58 = vadd.f32 %v3840_v0, %v1692_v55  ;;  %v225_v40 = vmul.f32 %v2539_v28, %v224_v33  ;;  %v2540_v0 = vld [vmem:[#allocation3 + $0x30] sm:$0xff]  ;;  %v5071_v49 = vld [vmem:[#allocation83_spill] sm:$0xff]  ;;  %s4075_s16 = sld [smem:[#allocation7 + $0x44]] }
  0xbc   :  { %v210_v30 = vadd.f32 %v208_v16, %v174_v47  ;;  %v226_v22 = vmul.f32 %v224_v33, %v5068_v38  ;;  %v2029_v51 = vadd.f32 %v5069_v4, %v1993_v26  ;;  %v231_v18 = vmul.f32 %v2539_v28, %v230_v21  ;;  %v2543_v26 = vld [vmem:[#allocation3 + $0x40] sm:$0xff]  ;;  %v2544_v33 = vld [vmem:[#allocation3 + $0x48] sm:$0xff] }
  0xbd   :  { %v232_v41 = vmul.f32 %v230_v21, %v5068_v38  ;;  %v242_v57 = vstv %s3967_s17  ;;  %v1752_v15 = vadd.f32 %v3843_v52, %v1728_v58  ;;  %v227_v3 = vadd.f32 %v225_v40, %v203_v6  ;;  %s4081_s17 = sld [smem:[#allocation7 + $0x47]] }
  0xbe   :  { %v228_v20 = vadd.f32 %v226_v22, %v204_v34  ;;  %v243_v13 = vmul.f32 %v2540_v0, %v242_v57  ;;  %2117 = vrot.lane.b32.xlu1 %v2029_v51, %s2692_s23  ;;  %v233_v62 = vadd.f32 %v231_v18, %v209_v54  ;;  %v244_v35 = vmul.f32 %v242_v57, %v5070_v9 }
  0xbf   :  { %v234_v17 = vadd.f32 %v232_v41, %v210_v30  ;;  %v248_v43 = vstv %s3974_s18  ;;  %v1788_v19 = vadd.f32 %v3847_v32, %v1752_v15  ;;  %v260_v48 = vstv %s3982_s20  ;;  %v2541_v32 = vld [vmem:[#allocation3 + $0x38] sm:$0xff]  ;;  %s4085_s18 = sld [smem:[#allocation7 + $0x49]]  ;;  %s4090_s20 = sld [smem:[#allocation7 + $0x4c]] }
  0xc0   :  { %v245_v25 = vadd.f32 %v243_v13, %v185_v8  ;;  %v249_v52 = vmul.f32 %v2540_v0, %v248_v43  ;;  %v250_v60 = vmul.f32 %v248_v43, %v5070_v9  ;;  %v246_v47 = vadd.f32 %v244_v35, %v186_v39  ;;  %v2545_v35 = vld [vmem:[#allocation3 + $0x51] sm:$0xff] }
  0xc1   :  { %v266_v61 = vstv %s3979_s19  ;;  %v284_v14 = vstv %s3984_s21  ;;  %v1812_v29 = vadd.f32 %v3850_v42, %v1788_v19  ;;  %v261_v59 = vmul.f32 %v2540_v0, %v260_v48  ;;  %v5072_v19 = vld [vmem:[#allocation84_spill] sm:$0xff]  ;;  %s4087_s19 = sld [smem:[#allocation7 + $0x4a]]  ;;  %s4096_s21 = sld [smem:[#allocation7 + $0x4d]] }
  0xc2   :  { %v251_v36 = vadd.f32 %v249_v52, %v191_v2  ;;  %v252_v46 = vadd.f32 %v250_v60, %v192_v56  ;;  %v262_v8 = vmul.f32 %v2541_v32, %v260_v48  ;;  %v267_v50 = vmul.f32 %v2540_v0, %v266_v61 }
  0xc3   :  { %v268_v11 = vmul.f32 %v2541_v32, %v266_v61  ;;  %v285_v1 = vmul.f32 %v2542_v10, %v284_v14  ;;  %v1848_v39 = vadd.f32 %v3854_v31, %v1812_v29  ;;  %v263_v53 = vadd.f32 %v261_v59, %v227_v3  ;;  %v2547_v32 = vld [vmem:[#allocation3 + $0x58] sm:$0xff] }
  0xc4   :  { %v286_v45 = vmul.f32 %v284_v14, %v5071_v49  ;;  %v290_v12 = vstv %s3993_s22  ;;  %v264_v42 = vadd.f32 %v262_v8, %v228_v20  ;;  %v269_v2 = vadd.f32 %v267_v50, %v233_v62  ;;  %s4098_s22 = sld [smem:[#allocation7 + $0x4f]] }
  0xc5   :  { %v270_v56 = vadd.f32 %v268_v11, %v234_v17  ;;  %v291_v24 = vmul.f32 %v2542_v10, %v290_v12  ;;  %v1872_v55 = vadd.f32 %v3859_v23, %v1848_v39  ;;  %v287_v6 = vadd.f32 %v285_v1, %v263_v53 }
  0xc6   :  { %v292_v34 = vmul.f32 %v290_v12, %v5071_v49  ;;  %v302_v31 = vstv %s3999_s24  ;;  %v288_v16 = vadd.f32 %v286_v45, %v264_v42  ;;  %v308_v28 = vstv %s4006_s26  ;;  %s4101_s24 = sld [smem:[#allocation7 + $0x50]]  ;;  %s4103_s26 = sld [smem:[#allocation7 + $0x52]] }
  0xc7   :  { %v293_v7 = vadd.f32 %v291_v24, %v269_v2  ;;  %v303_v54 = vmul.f32 %v2543_v26, %v302_v31  ;;  %v304_v21 = vmul.f32 %v2544_v33, %v302_v31  ;;  %v1908_v58 = vadd.f32 %v3863_v27, %v1872_v55 }
  0xc8   :  { %v294_v30 = vadd.f32 %v292_v34, %v270_v56  ;;  %v320_v23 = vstv %s4008_s27  ;;  %v309_v22 = vmul.f32 %v2543_v26, %v308_v28  ;;  %v310_v4 = vmul.f32 %v2544_v33, %v308_v28  ;;  %s4108_s27 = sld [smem:[#allocation7 + $0x53]] }
  0xc9   :  { %v305_v40 = vadd.f32 %v303_v54, %v245_v25  ;;  %v306_v38 = vadd.f32 %v304_v21, %v246_v47  ;;  %v1932_v51 = vadd.f32 %v3870_v63, %v1908_v58  ;;  %v321_v18 = vmul.f32 %v2543_v26, %v320_v23 }
  0xca   :  { %v322_v41 = vmul.f32 %v2544_v33, %v320_v23  ;;  %v326_v57 = vstv %s4014_s28  ;;  %v311_v15 = vadd.f32 %v309_v22, %v251_v36  ;;  %v312_v3 = vadd.f32 %v310_v4, %v252_v46  ;;  %v2546_v46 = vld [vmem:[#allocation3 + $0x50] sm:$0xff]  ;;  %v2550_v22 = vld [vmem:[#allocation3 + $0x68] sm:$0xff]  ;;  %s4110_s28 = sld [smem:[#allocation7 + $0x55]] }
  0xcb   :  { %v327_v20 = vmul.f32 %v2543_v26, %v326_v57  ;;  %v328_v27 = vmul.f32 %v2544_v33, %v326_v57  ;;  %v1968_v0 = vadd.f32 %v3874_v5, %v1932_v51  ;;  %v323_v13 = vadd.f32 %v321_v18, %v287_v6  ;;  %v2548_v6 = vld [vmem:[#allocation3 + $0x61] sm:$0xff] }
  0xcc   :  { %v324_v62 = vadd.f32 %v322_v41, %v288_v16  ;;  %v344_v17 = vstv %s4019_s29  ;;  %v350_v60 = vstv %s4021_s30  ;;  %v362_v47 = vstv %s4026_s4  ;;  %v5073_v16 = vld [vmem:[#allocation85_spill] sm:$0xff]  ;;  %s4114_s29 = sld [smem:[#allocation7 + $0x56]]  ;;  %s4116_s30 = sld [smem:[#allocation7 + $0x58]] }
  0xcd   :  { %v329_v63 = vadd.f32 %v327_v20, %v293_v7  ;;  %v330_v9 = vadd.f32 %v328_v27, %v294_v30  ;;  %v345_v43 = vmul.f32 %v2545_v35, %v344_v17  ;;  %v346_v25 = vmul.f32 %v344_v17, %v5072_v19  ;;  %s4122_s4 = sld [smem:[#allocation7 + $0x59]] }
  0xce   :  { %v1992_v52 = vadd.f32 %v3877_v44, %v1968_v0  ;;  %v368_v48 = vstv %s4028_s5  ;;  %v351_v14 = vmul.f32 %v2545_v35, %v350_v60  ;;  %v352_v29 = vmul.f32 %v350_v60, %v5072_v19  ;;  %s4124_s5 = sld [smem:[#allocation7 + $0x5b]] }
  0xcf   :  { %v347_v61 = vadd.f32 %v345_v43, %v323_v13  ;;  %v348_v5 = vadd.f32 %v346_v25, %v324_v62  ;;  %v363_v59 = vmul.f32 %v2546_v46, %v362_v47  ;;  %v364_v8 = vmul.f32 %v2547_v32, %v362_v47 }
  0xd0   :  { %v2028_v36 = vadd.f32 %v3883_v37, %v1992_v52  ;;  %v369_v44 = vmul.f32 %v2546_v46, %v368_v48  ;;  %v353_v50 = vadd.f32 %v351_v14, %v329_v63  ;;  %v354_v11 = vadd.f32 %v352_v29, %v330_v9 }
  0xd1   :  { %v370_v10 = vmul.f32 %v2547_v32, %v368_v48  ;;  %v380_v1 = vstv %s4033_s6  ;;  %v365_v39 = vadd.f32 %v363_v59, %v305_v40  ;;  %v366_v53 = vadd.f32 %v364_v8, %v306_v38  ;;  %v2549_v40 = vld [vmem:[#allocation3 + $0x60] sm:$0xff]  ;;  %v2551_v48 = vld [vmem:[#allocation3 + $0x71] sm:$0xff]  ;;  %s4127_s6 = sld [smem:[#allocation7 + $0x5c]] }
  0xd2   :  { %2115 = vrot.lane.b32.xlu0 %v2028_v36, %s2692_s23  ;;  %v371_v37 = vadd.f32 %v369_v44, %v311_v15  ;;  %v381_v49 = vmul.f32 %v2546_v46, %v380_v1  ;;  %v382_v12 = vmul.f32 %v2547_v32, %v380_v1  ;;  %v386_v42 = vstv %s4037_s0  ;;  %s4071_s23 = sld [smem:[#allocation7 + $0x46]] }
  0xd3   :  { %v372_v45 = vadd.f32 %v370_v10, %v312_v3  ;;  %v404_v2 = vstv %s4039_s7  ;;  %v387_v24 = vmul.f32 %v2546_v46, %v386_v42  ;;  %v388_v55 = vmul.f32 %v2547_v32, %v386_v42  ;;  %s4129_s0 = sld [smem:[#allocation7 + $0x5e]]  ;;  %s4136_s7 = sld [smem:[#allocation7 + $0x5f]] }
  0xd4   :  { %v383_v56 = vadd.f32 %v381_v49, %v347_v61  ;;  %v405_v34 = vmul.f32 %v2548_v6, %v404_v2  ;;  %v384_v31 = vadd.f32 %v382_v12, %v348_v5  ;;  %v406_v7 = vmul.f32 %v404_v2, %v5073_v16  ;;  %v5074_v5 = vld [vmem:[#allocation86_spill] sm:$0xff] }
  0xd5   :  { %v410_v26 = vstv %s4044_s8  ;;  %v422_v54 = vstv %s4046_s9  ;;  %v389_v33 = vadd.f32 %v387_v24, %v353_v50  ;;  %v390_v21 = vadd.f32 %v388_v55, %v354_v11  ;;  %v2552_v11 = vld [vmem:[#allocation3 + $0x70] sm:$0xff]  ;;  %s4138_s8 = sld [smem:[#allocation7 + $0x61]]  ;;  %s4140_s9 = sld [smem:[#allocation7 + $0x62]] }
  0xd6   :  { %v407_v58 = vadd.f32 %v405_v34, %v383_v56  ;;  %v411_v30 = vmul.f32 %v2548_v6, %v410_v26  ;;  %v408_v28 = vadd.f32 %v406_v7, %v384_v31  ;;  %v412_v23 = vmul.f32 %v410_v26, %v5073_v16 }
  0xd7   :  { %v423_v38 = vmul.f32 %v2549_v40, %v422_v54  ;;  %v424_v4 = vmul.f32 %v2550_v22, %v422_v54  ;;  %v428_v18 = vstv %s4056_s11  ;;  %v440_v41 = vstv %s4058_s12  ;;  %v2554_v54 = vld [vmem:[#allocation3 + $0x81] sm:$0xff]  ;;  %s4149_s11 = sld [smem:[#allocation7 + $0x65]]  ;;  %s4151_s12 = sld [smem:[#allocation7 + $0x67]] }
  0xd8   :  { %v413_v51 = vadd.f32 %v411_v30, %v389_v33  ;;  %v446_v57 = vstv %s4053_s10  ;;  %v414_v15 = vadd.f32 %v412_v23, %v390_v21  ;;  %v429_v27 = vmul.f32 %v2549_v40, %v428_v18  ;;  %v5075_v21 = vld [vmem:[#allocation50_spill] sm:$0xff]  ;;  %s4142_s10 = sld [smem:[#allocation7 + $0x64]] }
  0xd9   :  { %v425_v3 = vadd.f32 %v423_v38, %v365_v39  ;;  %v426_v20 = vadd.f32 %v424_v4, %v366_v53  ;;  %v430_v0 = vmul.f32 %v2550_v22, %v428_v18  ;;  %v441_v13 = vmul.f32 %v2549_v40, %v440_v41  ;;  %v2553_v39 = vld [vmem:[#allocation3 + $0x78] sm:$0xff] }
  0xda   :  { %v442_v62 = vmul.f32 %v2550_v22, %v440_v41  ;;  %v447_v17 = vmul.f32 %v2549_v40, %v446_v57  ;;  %v431_v63 = vadd.f32 %v429_v27, %v371_v37  ;;  %v448_v9 = vmul.f32 %v2550_v22, %v446_v57  ;;  %v2556_v41 = vld [vmem:[#allocation3 + $0x88] sm:$0xff] }
  0xdb   :  { %v464_v35 = vstv %s4064_s13  ;;  %v470_v43 = vstv %s4066_s14  ;;  %v432_v19 = vadd.f32 %v430_v0, %v372_v45  ;;  %v443_v25 = vadd.f32 %v441_v13, %v407_v58  ;;  %s4154_s13 = sld [smem:[#allocation7 + $0x68]]  ;;  %s4156_s14 = sld [smem:[#allocation7 + $0x6a]] }
  0xdc   :  { %v444_v52 = vadd.f32 %v442_v62, %v408_v28  ;;  %v449_v60 = vadd.f32 %v447_v17, %v413_v51  ;;  %v450_v47 = vadd.f32 %v448_v9, %v414_v15  ;;  %v465_v61 = vmul.f32 %v2551_v48, %v464_v35  ;;  %v2555_v51 = vld [vmem:[#allocation3 + $0x80] sm:$0xff] }
  0xdd   :  { %v466_v14 = vmul.f32 %v464_v35, %v5074_v5  ;;  %v471_v29 = vmul.f32 %v2551_v48, %v470_v43  ;;  %v472_v36 = vmul.f32 %v470_v43, %v5074_v5  ;;  %v482_v46 = vstv %s4073_s15  ;;  %s4164_s15 = sld [smem:[#allocation7 + $0x6d]] }
  0xde   :  { %v488_v59 = vstv %s4075_s16  ;;  %v500_v32 = vstv %s4071_s23  ;;  %v467_v8 = vadd.f32 %v465_v61, %v443_v25  ;;  %v483_v10 = vmul.f32 %v2552_v11, %v482_v46  ;;  %v2557_v61 = vld [vmem:[#allocation3 + $0x91] sm:$0xff]  ;;  %s4162_s23 = sld [smem:[#allocation7 + $0x6b]]  ;;  %s4167_s16 = sld [smem:[#allocation7 + $0x6e]] }
  0xdf   :  { %v468_v44 = vadd.f32 %v466_v14, %v444_v52  ;;  %v473_v50 = vadd.f32 %v471_v29, %v449_v60  ;;  %v474_v1 = vadd.f32 %v472_v36, %v450_v47  ;;  %v484_v53 = vmul.f32 %v2553_v39, %v482_v46  ;;  %v5076_v14 = vld [vmem:[#allocation51_spill] sm:$0xff] }
  0xe0   :  { %v489_v37 = vmul.f32 %v2552_v11, %v488_v59  ;;  %v490_v49 = vmul.f32 %v2553_v39, %v488_v59  ;;  %v485_v45 = vadd.f32 %v483_v10, %v425_v3  ;;  %v501_v12 = vmul.f32 %v2552_v11, %v500_v32  ;;  %v2558_v10 = vld [vmem:[#allocation3 + $0x90] sm:$0xff] }
  0xe1   :  { %v502_v42 = vmul.f32 %v2553_v39, %v500_v32  ;;  %v506_v2 = vstv %s4081_s17  ;;  %v486_v56 = vadd.f32 %v484_v53, %v426_v20  ;;  %v524_v7 = vstv %s4085_s18  ;;  %s4169_s17 = sld [smem:[#allocation7 + $0x70]]  ;;  %s4176_s18 = sld [smem:[#allocation7 + $0x71]] }
  0xe2   :  { %v491_v24 = vadd.f32 %v489_v37, %v431_v63  ;;  %v492_v55 = vadd.f32 %v490_v49, %v432_v19  ;;  %v507_v6 = vmul.f32 %v2552_v11, %v506_v2  ;;  %v503_v34 = vadd.f32 %v501_v12, %v467_v8 }
  0xe3   :  { %v504_v31 = vadd.f32 %v502_v42, %v468_v44  ;;  %v508_v16 = vmul.f32 %v2553_v39, %v506_v2  ;;  %v525_v33 = vmul.f32 %v2554_v54, %v524_v7  ;;  %v526_v58 = vmul.f32 %v524_v7, %v5075_v21  ;;  %v2559_v39 = vld [vmem:[#allocation3 + $0x98] sm:$0xff] }
  0xe4   :  { %v509_v26 = vadd.f32 %v507_v6, %v473_v50  ;;  %v530_v30 = vstv %s4087_s19  ;;  %v542_v38 = vstv %s4090_s20  ;;  %v548_v20 = vstv %s4096_s21  ;;  %s4178_s19 = sld [smem:[#allocation7 + $0x73]]  ;;  %s4180_s20 = sld [smem:[#allocation7 + $0x74]] }
  0xe5   :  { %v510_v28 = vadd.f32 %v508_v16, %v474_v1  ;;  %v531_v23 = vmul.f32 %v2554_v54, %v530_v30  ;;  %v532_v40 = vmul.f32 %v530_v30, %v5075_v21  ;;  %v527_v22 = vadd.f32 %v525_v33, %v503_v34  ;;  %s4182_s21 = sld [smem:[#allocation7 + $0x76]] }
  0xe6   :  { %v528_v4 = vadd.f32 %v526_v58, %v504_v31  ;;  %v543_v18 = vmul.f32 %v2555_v51, %v542_v38  ;;  %v544_v57 = vmul.f32 %v2556_v41, %v542_v38  ;;  %v560_v27 = vstv %s4098_s22  ;;  %v2560_v58 = vld [vmem:[#allocation3 + $0xa1] sm:$0xff]  ;;  %s4189_s22 = sld [smem:[#allocation7 + $0x77]] }
  0xe7   :  { %v533_v15 = vadd.f32 %v531_v23, %v509_v26  ;;  %v534_v3 = vadd.f32 %v532_v40, %v510_v28  ;;  %v549_v62 = vmul.f32 %v2555_v51, %v548_v20  ;;  %v550_v17 = vmul.f32 %v2556_v41, %v548_v20  ;;  %v5077_v28 = vld [vmem:[#allocation52_spill] sm:$0xff]  ;;  %v2562_v20 = vld [vmem:[#allocation3 + $0xa8] sm:$0xff] }
  0xe8   :  { %v545_v0 = vadd.f32 %v543_v18, %v485_v45  ;;  %v546_v13 = vadd.f32 %v544_v57, %v486_v56  ;;  %v561_v63 = vmul.f32 %v2555_v51, %v560_v27  ;;  %v562_v9 = vmul.f32 %v2556_v41, %v560_v27 }
  0xe9   :  { %v566_v35 = vstv %s4101_s24  ;;  %v584_v43 = vstv %s4103_s26  ;;  %v551_v19 = vadd.f32 %v549_v62, %v491_v24  ;;  %v552_v25 = vadd.f32 %v550_v17, %v492_v55  ;;  %s4191_s24 = sld [smem:[#allocation7 + $0x79]]  ;;  %s4194_s26 = sld [smem:[#allocation7 + $0x7a]] }
  0xea   :  { %v567_v52 = vmul.f32 %v2555_v51, %v566_v35  ;;  %v568_v60 = vmul.f32 %v2556_v41, %v566_v35  ;;  %v563_v47 = vadd.f32 %v561_v63, %v527_v22  ;;  %v564_v48 = vadd.f32 %v562_v9, %v528_v4 }
  0xeb   :  { %v585_v5 = vmul.f32 %v2557_v61, %v584_v43  ;;  %v586_v29 = vmul.f32 %v584_v43, %v5076_v14  ;;  %v590_v59 = vstv %s4108_s27  ;;  %v602_v32 = vstv %s4110_s28  ;;  %s4196_s27 = sld [smem:[#allocation7 + $0x7c]]  ;;  %s4202_s28 = sld [smem:[#allocation7 + $0x7d]] }
  0xec   :  { %v569_v36 = vadd.f32 %v567_v52, %v533_v15  ;;  %v570_v46 = vadd.f32 %v568_v60, %v534_v3  ;;  %v591_v50 = vmul.f32 %v2557_v61, %v590_v59  ;;  %v592_v11 = vmul.f32 %v590_v59, %v5076_v14  ;;  %v2561_v15 = vld [vmem:[#allocation3 + $0xa0] sm:$0xff]  ;;  %v5078_v59 = vld [vmem:[#allocation87_spill] sm:$0xff] }
  0xed   :  { %v587_v8 = vadd.f32 %v585_v5, %v563_v47  ;;  %v588_v44 = vadd.f32 %v586_v29, %v564_v48  ;;  %v603_v1 = vmul.f32 %v2558_v10, %v602_v32  ;;  %v604_v53 = vmul.f32 %v2559_v39, %v602_v32 }
  0xee   :  { %v608_v37 = vstv %s4114_s29  ;;  %v620_v49 = vstv %s4116_s30  ;;  %v593_v45 = vadd.f32 %v591_v50, %v569_v36  ;;  %v594_v12 = vadd.f32 %v592_v11, %v570_v46  ;;  %v2563_v36 = vld [vmem:[#allocation3 + $0xb1] sm:$0xff]  ;;  %s4204_s29 = sld [smem:[#allocation7 + $0x7f]]  ;;  %s4207_s30 = sld [smem:[#allocation7 + $0x80]] }
  0xef   :  { %v609_v42 = vmul.f32 %v2558_v10, %v608_v37  ;;  %v610_v2 = vmul.f32 %v2559_v39, %v608_v37  ;;  %v605_v56 = vadd.f32 %v603_v1, %v545_v0  ;;  %v606_v24 = vadd.f32 %v604_v53, %v546_v13  ;;  %v2564_v37 = vld [vmem:[#allocation3 + $0xb0] sm:$0xff] }
  0xf0   :  { %v621_v55 = vmul.f32 %v2558_v10, %v620_v49  ;;  %v622_v6 = vmul.f32 %v2559_v39, %v620_v49  ;;  %v626_v16 = vstv %s4122_s4  ;;  %v644_v7 = vstv %s4124_s5  ;;  %s4209_s4 = sld [smem:[#allocation7 + $0x82]]  ;;  %s4216_s5 = sld [smem:[#allocation7 + $0x83]] }
  0xf1   :  { %v611_v34 = vadd.f32 %v609_v42, %v551_v19  ;;  %v612_v31 = vadd.f32 %v610_v2, %v552_v25  ;;  %v627_v33 = vmul.f32 %v2558_v10, %v626_v16  ;;  %v628_v21 = vmul.f32 %v2559_v39, %v626_v16 }
  0xf2   :  { %v623_v26 = vadd.f32 %v621_v55, %v587_v8  ;;  %v624_v54 = vadd.f32 %v622_v6, %v588_v44  ;;  %v645_v30 = vmul.f32 %v2560_v58, %v644_v7  ;;  %v646_v23 = vmul.f32 %v644_v7, %v5077_v28 }
  0xf3   :  { %v650_v40 = vstv %s4127_s6  ;;  %v662_v38 = vstv %s4129_s0  ;;  %v629_v22 = vadd.f32 %v627_v33, %v593_v45  ;;  %v630_v4 = vadd.f32 %v628_v21, %v594_v12  ;;  %v2565_v45 = vld [vmem:[#allocation3 + $0xb8] sm:$0xff]  ;;  %s4218_s6 = sld [smem:[#allocation7 + $0x85]]  ;;  %s4220_s0 = sld [smem:[#allocation7 + $0x86]] }
  0xf4   :  { %v651_v51 = vmul.f32 %v2560_v58, %v650_v40  ;;  %v652_v18 = vmul.f32 %v650_v40, %v5077_v28  ;;  %v647_v41 = vadd.f32 %v645_v30, %v623_v26  ;;  %v648_v57 = vadd.f32 %v646_v23, %v624_v54  ;;  %v2566_v40 = vld [vmem:[#allocation3 + $0xc1] sm:$0xff] }
  0xf5   :  { %v663_v3 = vmul.f32 %v2561_v15, %v662_v38  ;;  %v664_v27 = vmul.f32 %v2562_v20, %v662_v38  ;;  %v668_v62 = vstv %s4136_s7  ;;  %v680_v17 = vstv %s4138_s8  ;;  %s4222_s7 = sld [smem:[#allocation7 + $0x88]]  ;;  %s4229_s8 = sld [smem:[#allocation7 + $0x89]] }
  0xf6   :  { %v653_v0 = vadd.f32 %v651_v51, %v629_v22  ;;  %v654_v13 = vadd.f32 %v652_v18, %v630_v4  ;;  %v669_v35 = vmul.f32 %v2561_v15, %v668_v62  ;;  %v670_v43 = vmul.f32 %v2562_v20, %v668_v62  ;;  %v5079_v22 = vld [vmem:[#allocation90_spill] sm:$0xff]  ;;  %v2568_v62 = vld [vmem:[#allocation3 + $0xc8] sm:$0xff] }
  0xf7   :  { %v665_v63 = vadd.f32 %v663_v3, %v605_v56  ;;  %v666_v9 = vadd.f32 %v664_v27, %v606_v24  ;;  %v681_v19 = vmul.f32 %v2561_v15, %v680_v17  ;;  %v682_v25 = vmul.f32 %v2562_v20, %v680_v17 }
  0xf8   :  { %v686_v52 = vstv %s4140_s9  ;;  %v704_v60 = vstv %s4142_s10  ;;  %v671_v47 = vadd.f32 %v669_v35, %v611_v34  ;;  %v672_v48 = vadd.f32 %v670_v43, %v612_v31  ;;  %s4231_s9 = sld [smem:[#allocation7 + $0x8b]]  ;;  %s4234_s10 = sld [smem:[#allocation7 + $0x8c]] }
  0xf9   :  { %v687_v61 = vmul.f32 %v2561_v15, %v686_v52  ;;  %v688_v5 = vmul.f32 %v2562_v20, %v686_v52  ;;  %v683_v14 = vadd.f32 %v681_v19, %v647_v41  ;;  %v684_v29 = vadd.f32 %v682_v25, %v648_v57 }
  0xfa   :  { %v705_v46 = vmul.f32 %v2563_v36, %v704_v60  ;;  %v706_v32 = vmul.f32 %v704_v60, %v5078_v59  ;;  %v710_v50 = vstv %s4149_s11  ;;  %v722_v11 = vstv %s4151_s12  ;;  %s4236_s11 = sld [smem:[#allocation7 + $0x8e]]  ;;  %s4244_s12 = sld [smem:[#allocation7 + $0x8f]] }
  0xfb   :  { %v689_v8 = vadd.f32 %v687_v61, %v653_v0  ;;  %v690_v44 = vadd.f32 %v688_v5, %v654_v13  ;;  %v711_v39 = vmul.f32 %v2563_v36, %v710_v50  ;;  %v712_v53 = vmul.f32 %v710_v50, %v5078_v59  ;;  %v2567_v0 = vld [vmem:[#allocation3 + $0xc0] sm:$0xff] }
  0xfc   :  { %v707_v10 = vadd.f32 %v705_v46, %v683_v14  ;;  %v708_v1 = vadd.f32 %v706_v32, %v684_v29  ;;  %v723_v49 = vmul.f32 %v2564_v37, %v722_v11  ;;  %v724_v12 = vmul.f32 %v2565_v45, %v722_v11  ;;  %v5080_v50 = vld [vmem:[#allocation92_spill] sm:$0xff] }
  0xfd   :  { %v728_v42 = vstv %s4154_s13  ;;  %v740_v2 = vstv %s4156_s14  ;;  %v713_v56 = vadd.f32 %v711_v39, %v689_v8  ;;  %v714_v24 = vadd.f32 %v712_v53, %v690_v44  ;;  %v2569_v8 = vld [vmem:[#allocation3 + $0xd1] sm:$0xff]  ;;  %s4358_s13 = sld [smem:[#allocation7 + $0x28]]  ;;  %s4360_s14 = sld [smem:[#allocation7 + $0x29]] }
  0xfe   :  { %v729_v55 = vmul.f32 %v2564_v37, %v728_v42  ;;  %v730_v6 = vmul.f32 %v2565_v45, %v728_v42  ;;  %v725_v34 = vadd.f32 %v723_v49, %v665_v63  ;;  %v726_v31 = vadd.f32 %v724_v12, %v666_v9  ;;  %v2570_v42 = vld [vmem:[#allocation3 + $0xd0] sm:$0xff] }
  0xff   :  { %v741_v16 = vmul.f32 %v2564_v37, %v740_v2  ;;  %v742_v7 = vmul.f32 %v2565_v45, %v740_v2  ;;  %v746_v33 = vstv %s4162_s23  ;;  %v764_v21 = vstv %s4164_s15  ;;  %s4258_s23 = sld [smem:[#allocation7 + $0x1]]  ;;  %s4262_s15 = sld [smem:[#allocation7 + $0x2]] }
 0x100   :  { %v731_v26 = vadd.f32 %v729_v55, %v671_v47  ;;  %v732_v54 = vadd.f32 %v730_v6, %v672_v48  ;;  %v747_v28 = vmul.f32 %v2564_v37, %v746_v33  ;;  %v748_v23 = vmul.f32 %v2565_v45, %v746_v33 }
 0x101   :  { %v743_v58 = vadd.f32 %v741_v16, %v707_v10  ;;  %v744_v30 = vadd.f32 %v742_v7, %v708_v1  ;;  %v765_v38 = vmul.f32 %v2566_v40, %v764_v21  ;;  %v766_v4 = vmul.f32 %v764_v21, %v5079_v22 }
 0x102   :  { %v770_v51 = vstv %s4167_s16  ;;  %v782_v18 = vstv %s4169_s17  ;;  %v749_v41 = vadd.f32 %v747_v28, %v713_v56  ;;  %v750_v57 = vadd.f32 %v748_v23, %v714_v24  ;;  %v2571_v56 = vld [vmem:[#allocation3 + $0xd8] sm:$0xff]  ;;  %s4264_s16 = sld [smem:[#allocation7 + $0x4]]  ;;  %s4274_s17 = sld [smem:[#allocation7 + $0x7]] }
 0x103   :  { %v771_v15 = vmul.f32 %v2566_v40, %v770_v51  ;;  %v772_v3 = vmul.f32 %v770_v51, %v5079_v22  ;;  %v767_v20 = vadd.f32 %v765_v38, %v743_v58  ;;  %v768_v27 = vadd.f32 %v766_v4, %v744_v30  ;;  %v2572_v51 = vld [vmem:[#allocation3 + $0xe1] sm:$0xff] }
 0x104   :  { %v783_v13 = vmul.f32 %v2567_v0, %v782_v18  ;;  %v784_v17 = vmul.f32 %v2568_v62, %v782_v18  ;;  %v788_v35 = vstv %s4176_s18  ;;  %v800_v43 = vstv %s4178_s19  ;;  %s4278_s18 = sld [smem:[#allocation7 + $0x8]]  ;;  %s4280_s19 = sld [smem:[#allocation7 + $0xa]] }
 0x105   :  { %v773_v63 = vadd.f32 %v771_v15, %v749_v41  ;;  %v774_v9 = vadd.f32 %v772_v3, %v750_v57  ;;  %v789_v52 = vmul.f32 %v2567_v0, %v788_v35  ;;  %v790_v60 = vmul.f32 %v2568_v62, %v788_v35  ;;  %v5081_v41 = vld [vmem:[#allocation76_spill] sm:$0xff]  ;;  %v2574_v35 = vld [vmem:[#allocation3 + $0xe8] sm:$0xff] }
 0x106   :  { %v785_v19 = vadd.f32 %v783_v13, %v725_v34  ;;  %v786_v25 = vadd.f32 %v784_v17, %v726_v31  ;;  %v801_v47 = vmul.f32 %v2567_v0, %v800_v43  ;;  %v802_v48 = vmul.f32 %v2568_v62, %v800_v43 }
 0x107   :  { %v806_v61 = vstv %s4180_s20  ;;  %v824_v5 = vstv %s4182_s21  ;;  %v791_v14 = vadd.f32 %v789_v52, %v731_v26  ;;  %v792_v29 = vadd.f32 %v790_v60, %v732_v54  ;;  %s4282_s20 = sld [smem:[#allocation7 + $0xb]]  ;;  %s4291_s21 = sld [smem:[#allocation7 + $0xd]] }
 0x108   :  { %v807_v36 = vmul.f32 %v2567_v0, %v806_v61  ;;  %v808_v46 = vmul.f32 %v2568_v62, %v806_v61  ;;  %v803_v59 = vadd.f32 %v801_v47, %v767_v20  ;;  %v804_v32 = vadd.f32 %v802_v48, %v768_v27 }
 0x109   :  { %v825_v44 = vmul.f32 %v2569_v8, %v824_v5  ;;  %v826_v11 = vmul.f32 %v824_v5, %v5080_v50  ;;  %v830_v39 = vstv %s4189_s22  ;;  %v842_v53 = vstv %s4191_s24  ;;  %s4293_s22 = sld [smem:[#allocation7 + $0xe]]  ;;  %s4298_s24 = sld [smem:[#allocation7 + $0x10]] }
 0x10a   :  { %v809_v10 = vadd.f32 %v807_v36, %v773_v63  ;;  %v810_v1 = vadd.f32 %v808_v46, %v774_v9  ;;  %v831_v45 = vmul.f32 %v2569_v8, %v830_v39  ;;  %v832_v12 = vmul.f32 %v830_v39, %v5080_v50  ;;  %v2573_v63 = vld [vmem:[#allocation3 + $0xe0] sm:$0xff]  ;;  %v2575_v39 = vld [vmem:[#allocation3 + $0xf1] sm:$0xff] }
 0x10b   :  { %v827_v37 = vadd.f32 %v825_v44, %v803_v59  ;;  %v828_v49 = vadd.f32 %v826_v11, %v804_v32  ;;  %v843_v2 = vmul.f32 %v2570_v42, %v842_v53  ;;  %v844_v24 = vmul.f32 %v2571_v56, %v842_v53  ;;  %v1015_v11 = vpop.permute.xlu0 %1014 }
 0x10c   :  { %v848_v55 = vstv %s4194_s26  ;;  %v860_v6 = vstv %s4196_s27  ;;  %v833_v34 = vadd.f32 %v831_v45, %v809_v10  ;;  %v834_v31 = vadd.f32 %v832_v12, %v810_v1  ;;  %s4303_s26 = sld [smem:[#allocation7 + $0x11]]  ;;  %s4308_s27 = sld [smem:[#allocation7 + $0x13]] }
 0x10d   :  { %v849_v16 = vmul.f32 %v2570_v42, %v848_v55  ;;  %v850_v7 = vmul.f32 %v2571_v56, %v848_v55  ;;  %v845_v26 = vadd.f32 %v843_v2, %v785_v19  ;;  %v846_v54 = vadd.f32 %v844_v24, %v786_v25  ;;  %v4238_v19 = vpop.permute.xlu1 %2067 }
 0x10e   :  { %v861_v33 = vmul.f32 %v2570_v42, %v860_v6  ;;  %v862_v21 = vmul.f32 %v2571_v56, %v860_v6  ;;  %v866_v28 = vstv %s4202_s28  ;;  %v884_v23 = vstv %s4204_s29  ;;  %s4310_s28 = sld [smem:[#allocation7 + $0x14]]  ;;  %s4312_s29 = sld [smem:[#allocation7 + $0x16]] }
 0x10f   :  { %v851_v58 = vadd.f32 %v849_v16, %v791_v14  ;;  %v852_v30 = vadd.f32 %v850_v7, %v792_v29  ;;  %v867_v22 = vmul.f32 %v2570_v42, %v866_v28  ;;  %v868_v4 = vmul.f32 %v2571_v56, %v866_v28  ;;  %v2577_v7 = vld [vmem:[#allocation3 + $0xf8] sm:$0xff] }
 0x110   :  { %v863_v40 = vadd.f32 %v861_v33, %v827_v37  ;;  %v864_v38 = vadd.f32 %v862_v21, %v828_v49  ;;  %v885_v18 = vmul.f32 %v2572_v51, %v884_v23  ;;  %v886_v57 = vmul.f32 %v884_v23, %v5081_v41  ;;  %v5082_v37 = vld [vmem:[#allocation95_spill] sm:$0xff] }
 0x111   :  { %v890_v15 = vstv %s4207_s30  ;;  %v902_v3 = vstv %s4209_s4  ;;  %v869_v20 = vadd.f32 %v867_v22, %v833_v34  ;;  %v870_v27 = vadd.f32 %v868_v4, %v834_v31  ;;  %v1066_v56 = vpop.permute.xlu1 %1065  ;;  %v2576_v31 = vld [vmem:[#allocation3 + $0xf0] sm:$0xff]  ;;  %v1017_v4 = vpop.permute.xlu0 %1016  ;;  %s4314_s30 = sld [smem:[#allocation7 + $0x17]]  ;;  %s4317_s4 = sld [smem:[#allocation7 + $0x19]] }
 0x112   :  { %v891_v0 = vmul.f32 %v2572_v51, %v890_v15  ;;  %v892_v13 = vmul.f32 %v890_v15, %v5081_v41  ;;  %v887_v62 = vadd.f32 %v885_v18, %v863_v40  ;;  %v888_v17 = vadd.f32 %v886_v57, %v864_v38 }
 0x113   :  { %v903_v9 = vmul.f32 %v2573_v63, %v902_v3  ;;  %v904_v43 = vmul.f32 %v2574_v35, %v902_v3  ;;  %v908_v60 = vstv %s4216_s5  ;;  %v920_v47 = vstv %s4218_s6  ;;  %s4320_s5 = sld [smem:[#allocation7 + $0x1a]]  ;;  %s4325_s6 = sld [smem:[#allocation7 + $0x1c]] }
 0x114   :  { %v893_v25 = vadd.f32 %v891_v0, %v869_v20  ;;  %v894_v52 = vadd.f32 %v892_v13, %v870_v27  ;;  %v909_v5 = vmul.f32 %v2573_v63, %v908_v60  ;;  %v910_v14 = vmul.f32 %v2574_v35, %v908_v60 }
 0x115   :  { %v905_v48 = vadd.f32 %v903_v9, %v845_v26  ;;  %v906_v61 = vadd.f32 %v904_v43, %v846_v54  ;;  %v921_v29 = vmul.f32 %v2573_v63, %v920_v47  ;;  %v922_v36 = vmul.f32 %v2574_v35, %v920_v47 }
 0x116   :  { %v926_v46 = vstv %s4220_s0  ;;  %v944_v59 = vstv %s4222_s7  ;;  %v911_v32 = vadd.f32 %v909_v5, %v851_v58  ;;  %v912_v8 = vadd.f32 %v910_v14, %v852_v30  ;;  %s4327_s0 = sld [smem:[#allocation7 + $0x1d]]  ;;  %s4332_s7 = sld [smem:[#allocation7 + $0x1f]] }
 0x117   :  { %v927_v44 = vmul.f32 %v2573_v63, %v926_v46  ;;  %v928_v50 = vmul.f32 %v2574_v35, %v926_v46  ;;  %v923_v10 = vadd.f32 %v921_v29, %v887_v62  ;;  %v924_v1 = vadd.f32 %v922_v36, %v888_v17 }
 0x118   :  { %v945_v53 = vmul.f32 %v2575_v39, %v944_v59  ;;  %v946_v49 = vmul.f32 %v944_v59, %v5082_v37  ;;  %v950_v42 = vstv %s4229_s8  ;;  %v962_v2 = vstv %s4231_s9  ;;  %s4334_s8 = sld [smem:[#allocation7 + $0x20]]  ;;  %s4341_s9 = sld [smem:[#allocation7 + $0x22]] }
 0x119   :  { %v929_v45 = vadd.f32 %v927_v44, %v893_v25  ;;  %v930_v12 = vadd.f32 %v928_v50, %v894_v52  ;;  %v951_v6 = vmul.f32 %v2575_v39, %v950_v42  ;;  %v952_v34 = vmul.f32 %v950_v42, %v5082_v37  ;;  %v1068_v0 = vpop.permute.xlu1 %1067 }
 0x11a   :  { %v947_v24 = vadd.f32 %v945_v53, %v923_v10  ;;  %v948_v55 = vadd.f32 %v946_v49, %v924_v1  ;;  %v963_v16 = vmul.f32 %v2576_v31, %v962_v2  ;;  %v964_v26 = vmul.f32 %v2577_v7, %v962_v2  ;;  %v2578_v1 = vld [vmem:[#allocation3 + $0x101] sm:$0xff] }
 0x11b   :  { %v968_v54 = vstv %s4234_s10  ;;  %v980_v33 = vstv %s4236_s11  ;;  %v953_v21 = vadd.f32 %v951_v6, %v929_v45  ;;  %v954_v58 = vadd.f32 %v952_v34, %v930_v12  ;;  %v5083_v53 = vld [vmem:[#allocation33_spill] sm:$0xff]  ;;  %s4343_s10 = sld [smem:[#allocation7 + $0x23]]  ;;  %s4350_s11 = sld [smem:[#allocation7 + $0x25]] }
 0x11c   :  { %v969_v30 = vmul.f32 %v2576_v31, %v968_v54  ;;  %v970_v28 = vmul.f32 %v2577_v7, %v968_v54  ;;  %v965_v23 = vadd.f32 %v963_v16, %v905_v48  ;;  %v966_v40 = vadd.f32 %v964_v26, %v906_v61  ;;  %v2580_v6 = vld [vmem:[#allocation3 + $0x108] sm:$0xff] }
 0x11d   :  { %v981_v38 = vmul.f32 %v2576_v31, %v980_v33  ;;  %v982_v22 = vmul.f32 %v2577_v7, %v980_v33  ;;  %v986_v41 = vstv %s4244_s12  ;;  %v4256_v57 = vstv %s4639_s2  ;;  %s4268_s2 = sld [smem:[#allocation7 + $0x5]]  ;;  %s4352_s12 = sld [smem:[#allocation7 + $0x26]] }
 0x11e   :  { %v971_v51 = vadd.f32 %v969_v30, %v911_v32  ;;  %v972_v18 = vadd.f32 %v970_v28, %v912_v8  ;;  %v987_v20 = vmul.f32 %v2576_v31, %v986_v41  ;;  %v988_v27 = vmul.f32 %v2577_v7, %v986_v41 }
 0x11f   :  { %v983_v15 = vadd.f32 %v981_v38, %v947_v24  ;;  %v984_v3 = vadd.f32 %v982_v22, %v948_v55  ;;  %v993_v13 = vadd.f32 %v4256_v57, %v965_v23  ;;  %v994_v62 = vadd.f32 %v4256_v57, %v966_v40  ;;  %v2579_v24 = vld [vmem:[#allocation3 + $0x100] sm:$0xff] }
 0x120   :  { %v989_v17 = vadd.f32 %v987_v20, %v953_v21  ;;  %v990_v63 = vadd.f32 %v988_v27, %v954_v58  ;;  %v1021_v9 = vsel %vm1020_vm1, %v1015_v11, 0.0  ;;  %v1022_v35 = vsel %vm1020_vm1, %v1017_v4, 0.0  ;;  %v2581_v4 = vld [vmem:[#allocation3 + $0x111] sm:$0xff] }
 0x121   :  { %v2305_v43 = vmul.f32 -1.442695, %v993_v13  ;;  %v2306_v25 = vmul.f32 -1.442695, %v994_v62  ;;  %v1023_v52 = vadd.f32 %v1021_v9, %v971_v51  ;;  %v1024_v60 = vadd.f32 %v1022_v35, %v972_v18  ;;  %v5084_v18 = vld [vmem:[#allocation39_spill] sm:$0xff] }
 0x122   :  { %v1044_v47 = vadd.f32 %v4256_v57, %v983_v15  ;;  %v1045_v48 = vadd.f32 %v4256_v57, %v984_v3  ;;  %v1071_v61 = vsel %vm1020_vm1, %v1066_v56, 0.0  ;;  %v1072_v5 = vsel %vm1020_vm1, %v1068_v0, 0.0 }
 0x123   :  { %2470 = vpow2.f32 %v2305_v43  ;;  %v1025_v14 = vadd.f32 %v1023_v52, %v4256_v57  ;;  %v1026_v29 = vadd.f32 %v1024_v60, %v4256_v57  ;;  %v1073_v36 = vadd.f32 %v1071_v61, %v989_v17 }
 0x124   :  { %2472 = vpow2.f32 %v2306_v25  ;;  %v2309_v46 = vmul.f32 -1.442695, %v1044_v47  ;;  %v2310_v59 = vmul.f32 -1.442695, %v1045_v48  ;;  %v1074_v32 = vadd.f32 %v1072_v5, %v990_v63  ;;  %v2582_v48 = vld [vmem:[#allocation3 + $0x110] sm:$0xff] }
 0x125   :  { %v2307_v8 = vmul.f32 -1.442695, %v1025_v14  ;;  %v2308_v44 = vmul.f32 -1.442695, %v1026_v29  ;;  %v1075_v50 = vadd.f32 %v1073_v36, %v4256_v57  ;;  %v1105_v11 = vstv %s4258_s23  ;;  %v2583_v29 = vld [vmem:[#allocation3 + $0x118] sm:$0xff]  ;;  %s4368_s23 = sld [smem:[#allocation7 + $0x2b]] }
 0x126   :  { %2474 = vpow2.f32 %v2309_v46  ;;  %v1076_v10 = vadd.f32 %v1074_v32, %v4256_v57  ;;  %v1106_v39 = vmul.f32 %v2578_v1, %v1105_v11  ;;  %v1107_v37 = vmul.f32 %v1105_v11, %v5083_v53 }
 0x127   :  { %2476 = vpow2.f32 %v2307_v8  ;;  %v2311_v49 = vmul.f32 -1.442695, %v1075_v50  ;;  %v1109_v45 = vstv %s4262_s15  ;;  %v1117_v12 = vstv %s4264_s16  ;;  %s4370_s15 = sld [smem:[#allocation7 + $0x2c]]  ;;  %s4373_s16 = sld [smem:[#allocation7 + $0x2e]] }
 0x128   :  { %2478 = vpow2.f32 %v2308_v44  ;;  %v2312_v42 = vmul.f32 -1.442695, %v1076_v10  ;;  %v1110_v2 = vmul.f32 %v2578_v1, %v1109_v45  ;;  %v1111_v56 = vmul.f32 %v1109_v45, %v5083_v53 }
 0x129   :  { %2480 = vpow2.f32 %v2310_v59  ;;  %v1118_v55 = vmul.f32 %v2579_v24, %v1117_v12  ;;  %v1119_v34 = vmul.f32 %v2580_v6, %v1117_v12  ;;  %v1121_v31 = vstv %s4268_s2  ;;  %s4375_s2 = sld [smem:[#allocation7 + $0x2f]] }
 0x12a   :  { %2482 = vpow2.f32 %v2311_v49  ;;  %v1122_v16 = vmul.f32 %v2579_v24, %v1121_v31  ;;  %v1123_v7 = vmul.f32 %v2580_v6, %v1121_v31  ;;  %v1131_v26 = vstv %s4274_s17  ;;  %s4383_s17 = sld [smem:[#allocation7 + $0x31]] }
 0x12b   :  { %2484 = vpow2.f32 %v2312_v42  ;;  %v1132_v54 = vmul.f32 %v2579_v24, %v1131_v26  ;;  %v1133_v33 = vmul.f32 %v2580_v6, %v1131_v26  ;;  %v1137_v21 = vstv %s4278_s18  ;;  %v2584_v26 = vld [vmem:[#allocation3 + $0x121] sm:$0xff]  ;;  %s4385_s18 = sld [smem:[#allocation7 + $0x32]] }
 0x12c   :  { %v1138_v58 = vmul.f32 %v2579_v24, %v1137_v21  ;;  %v1139_v30 = vmul.f32 %v2580_v6, %v1137_v21  ;;  %v1155_v28 = vstv %s4280_s19  ;;  %v1161_v23 = vstv %s4282_s20  ;;  %s4387_s19 = sld [smem:[#allocation7 + $0x34]]  ;;  %s4389_s20 = sld [smem:[#allocation7 + $0x35]] }
 0x12d   :  { %v2471_v40 = vpop.eup %2470  ;;  %v1134_v38 = vadd.f32 %v1132_v54, %v1106_v39  ;;  %v1135_v22 = vadd.f32 %v1133_v33, %v1107_v37  ;;  %v1156_v51 = vmul.f32 %v2581_v4, %v1155_v28  ;;  %v1157_v41 = vmul.f32 %v1155_v28, %v5084_v18  ;;  %v5085_v33 = vld [vmem:[#allocation80_spill] sm:$0xff] }
 0x12e   :  { %v2473_v15 = vpop.eup %2472  ;;  %v1001_v3 = vadd.f32 1.0, %v2471_v40  ;;  %v1140_v20 = vadd.f32 %v1138_v58, %v1110_v2  ;;  %v1141_v27 = vadd.f32 %v1139_v30, %v1111_v56  ;;  %v1162_v0 = vmul.f32 %v2581_v4, %v1161_v23 }
 0x12f   :  { %v1002_v13 = vadd.f32 1.0, %v2473_v15  ;;  %v1158_v62 = vadd.f32 %v1156_v51, %v1134_v38  ;;  %v1159_v17 = vadd.f32 %v1157_v41, %v1135_v22  ;;  %v1163_v63 = vmul.f32 %v1161_v23, %v5084_v18  ;;  %v2585_v18 = vld [vmem:[#allocation3 + $0x120] sm:$0xff] }
 0x130   :  { %v2475_v9 = vpop.eup %2474  ;;  %2486 = vrcp.f32 %v1001_v3  ;;  %v1164_v35 = vadd.f32 %v1162_v0, %v1140_v20  ;;  %v1173_v43 = vstv %s4291_s21  ;;  %v1179_v25 = vstv %s4293_s22  ;;  %s4395_s21 = sld [smem:[#allocation7 + $0x37]]  ;;  %s4397_s22 = sld [smem:[#allocation7 + $0x38]] }
 0x131   :  { %v2477_v52 = vpop.eup %2476  ;;  %2488 = vrcp.f32 %v1002_v13  ;;  %v1052_v60 = vadd.f32 1.0, %v2475_v9  ;;  %v1165_v47 = vadd.f32 %v1163_v63, %v1141_v27  ;;  %v1174_v61 = vmul.f32 %v2582_v48, %v1173_v43  ;;  %v2586_v27 = vld [vmem:[#allocation3 + $0x128] sm:$0xff] }
 0x132   :  { %v2479_v5 = vpop.eup %2478  ;;  %v1033_v14 = vadd.f32 1.0, %v2477_v52  ;;  %v1175_v36 = vmul.f32 %v2583_v29, %v1173_v43  ;;  %v1180_v46 = vmul.f32 %v2582_v48, %v1179_v25  ;;  %v1181_v59 = vmul.f32 %v2583_v29, %v1179_v25 }
 0x133   :  { %v2481_v32 = vpop.eup %2480  ;;  %v1034_v8 = vadd.f32 1.0, %v2479_v5  ;;  %2490 = vrcp.f32 %v1052_v60  ;;  %v1176_v44 = vadd.f32 %v1174_v61, %v1118_v55  ;;  %v1191_v50 = vstv %s4298_s24  ;;  %s4401_s24 = sld [smem:[#allocation7 + $0x3a]] }
 0x134   :  { %v2483_v11 = vpop.eup %2482  ;;  %2492 = vrcp.f32 %v1033_v14  ;;  %v1053_v10 = vadd.f32 1.0, %v2481_v32  ;;  %v1177_v1 = vadd.f32 %v1175_v36, %v1119_v34  ;;  %v1182_v39 = vadd.f32 %v1180_v46, %v1122_v16 }
 0x135   :  { %v2485_v53 = vpop.eup %2484  ;;  %2494 = vrcp.f32 %v1034_v8  ;;  %v1083_v37 = vadd.f32 1.0, %v2483_v11  ;;  %v1183_v49 = vadd.f32 %v1181_v59, %v1123_v7  ;;  %v1192_v45 = vmul.f32 %v2582_v48, %v1191_v50 }
 0x136   :  { %2496 = vrcp.f32 %v1053_v10  ;;  %v1084_v12 = vadd.f32 1.0, %v2485_v53  ;;  %v1193_v42 = vmul.f32 %v2583_v29, %v1191_v50  ;;  %v1197_v2 = vstv %s4303_s26  ;;  %s4403_s26 = sld [smem:[#allocation7 + $0x3b]] }
 0x137   :  { %2498 = vrcp.f32 %v1083_v37  ;;  %v1194_v56 = vadd.f32 %v1192_v45, %v1158_v62  ;;  %v1198_v24 = vmul.f32 %v2582_v48, %v1197_v2  ;;  %v1199_v55 = vmul.f32 %v2583_v29, %v1197_v2  ;;  %v2587_v37 = vld [vmem:[#allocation3 + $0x131] sm:$0xff]  ;;  %v5086_v45 = vld [vmem:[#allocation40_spill] sm:$0xff] }
 0x138   :  { %2500 = vrcp.f32 %v1084_v12  ;;  %v1195_v6 = vadd.f32 %v1193_v42, %v1159_v17  ;;  %v1215_v34 = vstv %s4308_s27  ;;  %v1221_v31 = vstv %s4310_s28  ;;  %s4409_s27 = sld [smem:[#allocation7 + $0x3d]]  ;;  %s4411_s28 = sld [smem:[#allocation7 + $0x3e]] }
 0x139   :  { %v1200_v16 = vadd.f32 %v1198_v24, %v1164_v35  ;;  %v1201_v7 = vadd.f32 %v1199_v55, %v1165_v47  ;;  %v1216_v54 = vmul.f32 %v2584_v26, %v1215_v34  ;;  %v1217_v21 = vmul.f32 %v1215_v34, %v5085_v33 }
 0x13a   :  { %v2487_v58 = vpop.eup %2486  ;;  %v1222_v30 = vmul.f32 %v2584_v26, %v1221_v31  ;;  %v1223_v28 = vmul.f32 %v1221_v31, %v5085_v33  ;;  %v1233_v23 = vstv %s4312_s29  ;;  %v1239_v40 = vstv %s4314_s30  ;;  %v2588_v26 = vld [vmem:[#allocation3 + $0x130] sm:$0xff]  ;;  %v2589_v33 = vld [vmem:[#allocation3 + $0x138] sm:$0xff]  ;;  %s4413_s29 = sld [smem:[#allocation7 + $0x40]]  ;;  %s4415_s30 = sld [smem:[#allocation7 + $0x41]] }
 0x13b   :  { %v2489_v38 = vpop.eup %2488  ;;  %v1007_v22 = vmul.f32 256.0, %v2487_v58  ;;  %v1218_v4 = vadd.f32 %v1216_v54, %v1194_v56  ;;  %v1219_v51 = vadd.f32 %v1217_v21, %v1195_v6  ;;  %v1234_v41 = vmul.f32 %v2585_v18, %v1233_v23 }
 0x13c   :  { %v1008_v15 = vmul.f32 256.0, %v2489_v38  ;;  %v1224_v3 = vadd.f32 %v1222_v30, %v1200_v16  ;;  %v1225_v20 = vadd.f32 %v1223_v28, %v1201_v7  ;;  %v1235_v0 = vmul.f32 %v2586_v27, %v1233_v23 }
 0x13d   :  { %v2491_v13 = vpop.eup %2490  ;;  %1010 = vst.msk [vmem:[#allocation8] sm:$0xff] %vm1009_vm2, %v1007_v22  ;;  %v4337_v62 = vadd.f32 %v1234_v41, %v1176_v44  ;;  %v1240_v17 = vmul.f32 %v2585_v18, %v1239_v40  ;;  %v1241_v63 = vmul.f32 %v2586_v27, %v1239_v40  ;;  %v1251_v9 = vstv %s4317_s4  ;;  %s4423_s4 = sld [smem:[#allocation7 + $0x43]] }
 0x13e   :  { %v2493_v35 = vpop.eup %2492  ;;  %1011 = vst.msk [vmem:[#allocation8 + $0x8] sm:$0xff] %vm1009_vm2, %v1008_v15  ;;  %v1058_v43 = vmul.f32 256.0, %v2491_v13  ;;  %v1237_v25 = vadd.f32 %v1235_v0, %v1177_v1  ;;  %v1252_v52 = vmul.f32 %v2585_v18, %v1251_v9  ;;  %v1253_v60 = vmul.f32 %v2586_v27, %v1251_v9  ;;  %v5087_v9 = vld [vmem:[#allocation41_spill] sm:$0xff] }
 0x13f   :  { %v2495_v47 = vpop.eup %2494  ;;  %v1039_v48 = vmul.f32 256.0, %v2493_v35  ;;  %v1242_v61 = vadd.f32 %v1240_v17, %v1182_v39  ;;  %v1243_v5 = vadd.f32 %v1241_v63, %v1183_v49  ;;  %v1257_v14 = vstv %s4320_s5  ;;  %s4425_s5 = sld [smem:[#allocation7 + $0x44]] }
 0x140   :  { %v2497_v29 = vpop.eup %2496  ;;  %v1040_v36 = vmul.f32 256.0, %v2495_v47  ;;  %1061 = vst.msk [vmem:[#allocation8 + $0x20] sm:$0xff] %vm1009_vm2, %v1058_v43  ;;  %v1254_v46 = vadd.f32 %v1252_v52, %v1218_v4  ;;  %v1255_v59 = vadd.f32 %v1253_v60, %v1219_v51  ;;  %v1258_v32 = vmul.f32 %v2585_v18, %v1257_v14 }
 0x141   :  { %v2499_v8 = vpop.eup %2498  ;;  %1042 = vst.msk [vmem:[#allocation8 + $0x10] sm:$0xff] %vm1009_vm2, %v1039_v48  ;;  %v1059_v44 = vmul.f32 256.0, %v2497_v29  ;;  %v1259_v50 = vmul.f32 %v2586_v27, %v1257_v14  ;;  %v1275_v11 = vstv %s4325_s6  ;;  %v1281_v10 = vstv %s4327_s0  ;;  %v2592_v14 = vld [vmem:[#allocation3 + $0x148] sm:$0xff]  ;;  %s4427_s6 = sld [smem:[#allocation7 + $0x46]]  ;;  %s4429_s0 = sld [smem:[#allocation7 + $0x47]] }
 0x142   :  { %v2501_v1 = vpop.eup %2500  ;;  %1043 = vst.msk [vmem:[#allocation8 + $0x18] sm:$0xff] %vm1009_vm2, %v1040_v36  ;;  %v1089_v39 = vmul.f32 256.0, %v2499_v8  ;;  %v1260_v53 = vadd.f32 %v1258_v32, %v1224_v3  ;;  %v1276_v49 = vmul.f32 %v2587_v37, %v1275_v11  ;;  %v1277_v12 = vmul.f32 %v1275_v11, %v5086_v45 }
 0x143   :  { %1062 = vst.msk [vmem:[#allocation8 + $0x28] sm:$0xff] %vm1009_vm2, %v1059_v44  ;;  %v1090_v42 = vmul.f32 256.0, %v2501_v1  ;;  %v1261_v2 = vadd.f32 %v1259_v50, %v1225_v20  ;;  %v1282_v56 = vmul.f32 %v2587_v37, %v1281_v10  ;;  %v1283_v24 = vmul.f32 %v1281_v10, %v5086_v45 }
 0x144   :  { %1092 = vst.msk [vmem:[#allocation8 + $0x30] sm:$0xff] %vm1009_vm2, %v1089_v39  ;;  %v1278_v55 = vadd.f32 %v1276_v49, %v1254_v46  ;;  %v1279_v6 = vadd.f32 %v1277_v12, %v1255_v59  ;;  %v1293_v34 = vstv %s4332_s7  ;;  %v1299_v31 = vstv %s4334_s8  ;;  %s4435_s7 = sld [smem:[#allocation7 + $0x49]]  ;;  %s4437_s8 = sld [smem:[#allocation7 + $0x4a]] }
 0x145   :  { %1093 = vst.msk [vmem:[#allocation8 + $0x38] sm:$0xff] %vm1009_vm2, %v1090_v42  ;;  %v1284_v16 = vadd.f32 %v1282_v56, %v1260_v53  ;;  %v1285_v7 = vadd.f32 %v1283_v24, %v1261_v2  ;;  %v1294_v54 = vmul.f32 %v2588_v26, %v1293_v34  ;;  %v1295_v21 = vmul.f32 %v2589_v33, %v1293_v34  ;;  %v2593_v56 = vld [vmem:[#allocation3 + $0x151] sm:$0xff] }
 0x146   :  { %v1300_v58 = vmul.f32 %v2588_v26, %v1299_v31  ;;  %v1301_v30 = vmul.f32 %v2589_v33, %v1299_v31  ;;  %v1311_v28 = vstv %s4341_s9  ;;  %v1317_v23 = vstv %s4343_s10  ;;  %s4441_s9 = sld [smem:[#allocation7 + $0x4c]]  ;;  %s4443_s10 = sld [smem:[#allocation7 + $0x4d]] }
 0x147   :  { %v1296_v40 = vadd.f32 %v1294_v54, %v4337_v62  ;;  %v1297_v38 = vadd.f32 %v1295_v21, %v1237_v25  ;;  %v1312_v22 = vmul.f32 %v2588_v26, %v1311_v28  ;;  %v1313_v4 = vmul.f32 %v2589_v33, %v1311_v28  ;;  %v2590_v62 = vld [vmem:[#allocation3 + $0x141] sm:$0xff]  ;;  %v2594_v28 = vld [vmem:[#allocation3 + $0x150] sm:$0xff] }
 0x148   :  { %v1302_v51 = vadd.f32 %v1300_v58, %v1242_v61  ;;  %v1303_v18 = vadd.f32 %v1301_v30, %v1243_v5  ;;  %v1318_v41 = vmul.f32 %v2588_v26, %v1317_v23  ;;  %v1319_v15 = vmul.f32 %v2589_v33, %v1317_v23  ;;  %v2591_v61 = vld [vmem:[#allocation3 + $0x140] sm:$0xff] }
 0x149   :  { %v1314_v3 = vadd.f32 %v1312_v22, %v1278_v55  ;;  %v1315_v20 = vadd.f32 %v1313_v4, %v1279_v6  ;;  %v1335_v27 = vstv %s4350_s11  ;;  %v1341_v0 = vstv %s4352_s12  ;;  %v5088_v55 = vld [vmem:[#allocation64_spill] sm:$0xff]  ;;  %s4449_s11 = sld [smem:[#allocation7 + $0x4f]]  ;;  %s4451_s12 = sld [smem:[#allocation7 + $0x50]] }
 0x14a   :  { %v1320_v13 = vadd.f32 %v1318_v41, %v1284_v16  ;;  %v1321_v17 = vadd.f32 %v1319_v15, %v1285_v7  ;;  %v1336_v63 = vmul.f32 %v2590_v62, %v1335_v27  ;;  %v1337_v35 = vmul.f32 %v1335_v27, %v5087_v9 }
 0x14b   :  { %v1342_v43 = vmul.f32 %v2590_v62, %v1341_v0  ;;  %v1343_v25 = vmul.f32 %v1341_v0, %v5087_v9  ;;  %v1353_v52 = vstv %s4358_s13  ;;  %v1359_v60 = vstv %s4360_s14  ;;  %s4453_s13 = sld [smem:[#allocation7 + $0x52]]  ;;  %s4455_s14 = sld [smem:[#allocation7 + $0x53]] }
 0x14c   :  { %v1338_v47 = vadd.f32 %v1336_v63, %v1314_v3  ;;  %v1339_v48 = vadd.f32 %v1337_v35, %v1315_v20  ;;  %v1354_v5 = vmul.f32 %v2591_v61, %v1353_v52  ;;  %v1355_v29 = vmul.f32 %v2592_v14, %v1353_v52  ;;  %v2596_v52 = vld [vmem:[#allocation3 + $0x161] sm:$0xff] }
 0x14d   :  { %v1344_v36 = vadd.f32 %v1342_v43, %v1320_v13  ;;  %v1345_v46 = vadd.f32 %v1343_v25, %v1321_v17  ;;  %v1360_v59 = vmul.f32 %v2591_v61, %v1359_v60  ;;  %v1361_v32 = vmul.f32 %v2592_v14, %v1359_v60 }
 0x14e   :  { %v1356_v8 = vadd.f32 %v1354_v5, %v1296_v40  ;;  %v1357_v44 = vadd.f32 %v1355_v29, %v1297_v38  ;;  %v1371_v50 = vstv %s4368_s23  ;;  %v1377_v11 = vstv %s4370_s15  ;;  %v2595_v40 = vld [vmem:[#allocation3 + $0x158] sm:$0xff]  ;;  %s4463_s23 = sld [smem:[#allocation7 + $0x55]]  ;;  %s4465_s15 = sld [smem:[#allocation7 + $0x56]] }
 0x14f   :  { %v1362_v10 = vadd.f32 %v1360_v59, %v1302_v51  ;;  %v1363_v1 = vadd.f32 %v1361_v32, %v1303_v18  ;;  %v1372_v39 = vmul.f32 %v2591_v61, %v1371_v50  ;;  %v1373_v53 = vmul.f32 %v2592_v14, %v1371_v50  ;;  %v2597_v59 = vld [vmem:[#allocation3 + $0x160] sm:$0xff] }
 0x150   :  { %v1378_v37 = vmul.f32 %v2591_v61, %v1377_v11  ;;  %v1379_v49 = vmul.f32 %v2592_v14, %v1377_v11  ;;  %v1395_v45 = vstv %s4373_s16  ;;  %v1401_v12 = vstv %s4375_s2  ;;  %s4467_s16 = sld [smem:[#allocation7 + $0x58]]  ;;  %s4469_s2 = sld [smem:[#allocation7 + $0x59]] }
 0x151   :  { %v1374_v42 = vadd.f32 %v1372_v39, %v1338_v47  ;;  %v1375_v2 = vadd.f32 %v1373_v53, %v1339_v48  ;;  %v1396_v24 = vmul.f32 %v2593_v56, %v1395_v45  ;;  %v1397_v6 = vmul.f32 %v1395_v45, %v5088_v55  ;;  %v5089_v47 = vld [vmem:[#allocation42_spill] sm:$0xff] }
 0x152   :  { %v1380_v34 = vadd.f32 %v1378_v37, %v1344_v36  ;;  %v1381_v31 = vadd.f32 %v1379_v49, %v1345_v46  ;;  %v1402_v16 = vmul.f32 %v2593_v56, %v1401_v12  ;;  %v1403_v7 = vmul.f32 %v1401_v12, %v5088_v55 }
 0x153   :  { %v1398_v26 = vadd.f32 %v1396_v24, %v1374_v42  ;;  %v1399_v54 = vadd.f32 %v1397_v6, %v1375_v2  ;;  %v1413_v33 = vstv %s4383_s17  ;;  %v1419_v21 = vstv %s4385_s18  ;;  %s4475_s17 = sld [smem:[#allocation7 + $0x5b]]  ;;  %s4477_s18 = sld [smem:[#allocation7 + $0x5c]] }
 0x154   :  { %v1404_v58 = vadd.f32 %v1402_v16, %v1380_v34  ;;  %v1405_v30 = vadd.f32 %v1403_v7, %v1381_v31  ;;  %v1414_v23 = vmul.f32 %v2594_v28, %v1413_v33  ;;  %v1415_v38 = vmul.f32 %v2595_v40, %v1413_v33  ;;  %v2599_v16 = vld [vmem:[#allocation3 + $0x171] sm:$0xff] }
 0x155   :  { %v1420_v22 = vmul.f32 %v2594_v28, %v1419_v21  ;;  %v1421_v4 = vmul.f32 %v2595_v40, %v1419_v21  ;;  %v1431_v51 = vstv %s4387_s19  ;;  %v1437_v18 = vstv %s4389_s20  ;;  %s4481_s19 = sld [smem:[#allocation7 + $0x5e]]  ;;  %s4483_s20 = sld [smem:[#allocation7 + $0x5f]] }
 0x156   :  { %v1416_v41 = vadd.f32 %v1414_v23, %v1356_v8  ;;  %v1417_v15 = vadd.f32 %v1415_v38, %v1357_v44  ;;  %v1432_v3 = vmul.f32 %v2594_v28, %v1431_v51  ;;  %v1433_v20 = vmul.f32 %v2595_v40, %v1431_v51  ;;  %v2598_v8 = vld [vmem:[#allocation3 + $0x168] sm:$0xff]  ;;  %v2600_v51 = vld [vmem:[#allocation3 + $0x170] sm:$0xff] }
 0x157   :  { %v1422_v27 = vadd.f32 %v1420_v22, %v1362_v10  ;;  %v1423_v0 = vadd.f32 %v1421_v4, %v1363_v1  ;;  %v1438_v13 = vmul.f32 %v2594_v28, %v1437_v18  ;;  %v1439_v17 = vmul.f32 %v2595_v40, %v1437_v18 }
 0x158   :  { %v1434_v62 = vadd.f32 %v1432_v3, %v1398_v26  ;;  %v1435_v63 = vadd.f32 %v1433_v20, %v1399_v54  ;;  %v1455_v9 = vstv %s4395_s21  ;;  %v1461_v35 = vstv %s4397_s22  ;;  %v5090_v26 = vld [vmem:[#allocation43_spill] sm:$0xff]  ;;  %s4489_s21 = sld [smem:[#allocation7 + $0x61]]  ;;  %s4491_s22 = sld [smem:[#allocation7 + $0x62]] }
 0x159   :  { %v1440_v43 = vadd.f32 %v1438_v13, %v1404_v58  ;;  %v1441_v25 = vadd.f32 %v1439_v17, %v1405_v30  ;;  %v1456_v60 = vmul.f32 %v2596_v52, %v1455_v9  ;;  %v1457_v48 = vmul.f32 %v1455_v9, %v5089_v47 }
 0x15a   :  { %v1462_v61 = vmul.f32 %v2596_v52, %v1461_v35  ;;  %v1463_v5 = vmul.f32 %v1461_v35, %v5089_v47  ;;  %v1473_v14 = vstv %s4401_s24  ;;  %v1479_v29 = vstv %s4403_s26  ;;  %s4493_s24 = sld [smem:[#allocation7 + $0x64]]  ;;  %s4495_s26 = sld [smem:[#allocation7 + $0x65]] }
 0x15b   :  { %v1458_v36 = vadd.f32 %v1456_v60, %v1434_v62  ;;  %v1459_v46 = vadd.f32 %v1457_v48, %v1435_v63  ;;  %v1474_v32 = vmul.f32 %v2597_v59, %v1473_v14  ;;  %v1475_v44 = vmul.f32 %v2598_v8, %v1473_v14  ;;  %v2602_v14 = vld [vmem:[#allocation3 + $0x181] sm:$0xff] }
 0x15c   :  { %v1464_v50 = vadd.f32 %v1462_v61, %v1440_v43  ;;  %v1465_v11 = vadd.f32 %v1463_v5, %v1441_v25  ;;  %v1480_v10 = vmul.f32 %v2597_v59, %v1479_v29  ;;  %v1481_v1 = vmul.f32 %v2598_v8, %v1479_v29 }
 0x15d   :  { %v1476_v39 = vadd.f32 %v1474_v32, %v1416_v41  ;;  %v1477_v53 = vadd.f32 %v1475_v44, %v1417_v15  ;;  %v1491_v37 = vstv %s4409_s27  ;;  %v1497_v49 = vstv %s4411_s28  ;;  %v2601_v41 = vld [vmem:[#allocation3 + $0x178] sm:$0xff]  ;;  %s4503_s27 = sld [smem:[#allocation7 + $0x67]]  ;;  %s4505_s28 = sld [smem:[#allocation7 + $0x68]] }
 0x15e   :  { %v1482_v45 = vadd.f32 %v1480_v10, %v1422_v27  ;;  %v1483_v12 = vadd.f32 %v1481_v1, %v1423_v0  ;;  %v1492_v42 = vmul.f32 %v2597_v59, %v1491_v37  ;;  %v1493_v2 = vmul.f32 %v2598_v8, %v1491_v37  ;;  %v2603_v10 = vld [vmem:[#allocation3 + $0x180] sm:$0xff] }
 0x15f   :  { %v1498_v56 = vmul.f32 %v2597_v59, %v1497_v49  ;;  %v1499_v24 = vmul.f32 %v2598_v8, %v1497_v49  ;;  %v1515_v55 = vstv %s4413_s29  ;;  %v1521_v6 = vstv %s4415_s30  ;;  %s4507_s29 = sld [smem:[#allocation7 + $0x6a]]  ;;  %s4509_s30 = sld [smem:[#allocation7 + $0x6b]] }
 0x160   :  { %v1494_v34 = vadd.f32 %v1492_v42, %v1458_v36  ;;  %v1495_v31 = vadd.f32 %v1493_v2, %v1459_v46  ;;  %v1516_v7 = vmul.f32 %v2599_v16, %v1515_v55  ;;  %v1517_v54 = vmul.f32 %v1515_v55, %v5090_v26  ;;  %v5091_v36 = vld [vmem:[#allocation46_spill] sm:$0xff] }
 0x161   :  { %v1500_v33 = vadd.f32 %v1498_v56, %v1464_v50  ;;  %v1501_v21 = vadd.f32 %v1499_v24, %v1465_v11  ;;  %v1522_v58 = vmul.f32 %v2599_v16, %v1521_v6  ;;  %v1523_v30 = vmul.f32 %v1521_v6, %v5090_v26 }
 0x162   :  { %v1518_v28 = vadd.f32 %v1516_v7, %v1494_v34  ;;  %v1519_v23 = vadd.f32 %v1517_v54, %v1495_v31  ;;  %v1533_v40 = vstv %s4423_s4  ;;  %v1539_v38 = vstv %s4425_s5  ;;  %s4515_s4 = sld [smem:[#allocation7 + $0x6d]]  ;;  %s4517_s5 = sld [smem:[#allocation7 + $0x6e]] }
 0x163   :  { %v1524_v22 = vadd.f32 %v1522_v58, %v1500_v33  ;;  %v1525_v4 = vadd.f32 %v1523_v30, %v1501_v21  ;;  %v1534_v18 = vmul.f32 %v2600_v51, %v1533_v40  ;;  %v1535_v15 = vmul.f32 %v2601_v41, %v1533_v40  ;;  %v2605_v58 = vld [vmem:[#allocation3 + $0x191] sm:$0xff] }
 0x164   :  { %v1540_v3 = vmul.f32 %v2600_v51, %v1539_v38  ;;  %v1541_v20 = vmul.f32 %v2601_v41, %v1539_v38  ;;  %v1551_v27 = vstv %s4427_s6  ;;  %v1557_v0 = vstv %s4429_s0  ;;  %s4521_s6 = sld [smem:[#allocation7 + $0x70]]  ;;  %s4523_s0 = sld [smem:[#allocation7 + $0x71]] }
 0x165   :  { %v1536_v13 = vadd.f32 %v1534_v18, %v1476_v39  ;;  %v1537_v17 = vadd.f32 %v1535_v15, %v1477_v53  ;;  %v1552_v62 = vmul.f32 %v2600_v51, %v1551_v27  ;;  %v1553_v63 = vmul.f32 %v2601_v41, %v1551_v27  ;;  %v2604_v39 = vld [vmem:[#allocation3 + $0x188] sm:$0xff]  ;;  %v2606_v27 = vld [vmem:[#allocation3 + $0x190] sm:$0xff] }
 0x166   :  { %v1542_v9 = vadd.f32 %v1540_v3, %v1482_v45  ;;  %v1543_v35 = vadd.f32 %v1541_v20, %v1483_v12  ;;  %v1558_v43 = vmul.f32 %v2600_v51, %v1557_v0  ;;  %v1559_v25 = vmul.f32 %v2601_v41, %v1557_v0 }
 0x167   :  { %v1554_v52 = vadd.f32 %v1552_v62, %v1518_v28  ;;  %v1555_v60 = vadd.f32 %v1553_v63, %v1519_v23  ;;  %v1575_v47 = vstv %s4435_s7  ;;  %v1581_v48 = vstv %s4437_s8  ;;  %v5092_v28 = vld [vmem:[#allocation12_spill] sm:$0xff]  ;;  %s4529_s7 = sld [smem:[#allocation7 + $0x73]]  ;;  %s4531_s8 = sld [smem:[#allocation7 + $0x74]] }
 0x168   :  { %v1560_v61 = vadd.f32 %v1558_v43, %v1524_v22  ;;  %v1561_v5 = vadd.f32 %v1559_v25, %v1525_v4  ;;  %v1576_v29 = vmul.f32 %v2602_v14, %v1575_v47  ;;  %v1577_v46 = vmul.f32 %v1575_v47, %v5091_v36 }
 0x169   :  { %v1582_v59 = vmul.f32 %v2602_v14, %v1581_v48  ;;  %v1583_v32 = vmul.f32 %v1581_v48, %v5091_v36  ;;  %v1593_v8 = vstv %s4441_s9  ;;  %v1599_v44 = vstv %s4443_s10  ;;  %s4533_s9 = sld [smem:[#allocation7 + $0x76]]  ;;  %s4535_s10 = sld [smem:[#allocation7 + $0x77]] }
 0x16a   :  { %v1578_v50 = vadd.f32 %v1576_v29, %v1554_v52  ;;  %v1579_v11 = vadd.f32 %v1577_v46, %v1555_v60  ;;  %v1594_v1 = vmul.f32 %v2603_v10, %v1593_v8  ;;  %v1595_v53 = vmul.f32 %v2604_v39, %v1593_v8  ;;  %v2608_v8 = vld [vmem:[#allocation3 + $0x1a1] sm:$0xff] }
 0x16b   :  { %v1584_v37 = vadd.f32 %v1582_v59, %v1560_v61  ;;  %v1585_v49 = vadd.f32 %v1583_v32, %v1561_v5  ;;  %v1600_v45 = vmul.f32 %v2603_v10, %v1599_v44  ;;  %v1601_v12 = vmul.f32 %v2604_v39, %v1599_v44 }
 0x16c   :  { %v1596_v42 = vadd.f32 %v1594_v1, %v1536_v13  ;;  %v1597_v2 = vadd.f32 %v1595_v53, %v1537_v17  ;;  %v1611_v56 = vstv %s4449_s11  ;;  %v1617_v24 = vstv %s4451_s12  ;;  %v2607_v13 = vld [vmem:[#allocation3 + $0x198] sm:$0xff]  ;;  %s4543_s11 = sld [smem:[#allocation7 + $0x79]]  ;;  %s4545_s12 = sld [smem:[#allocation7 + $0x7a]] }
 0x16d   :  { %v1602_v55 = vadd.f32 %v1600_v45, %v1542_v9  ;;  %v1603_v6 = vadd.f32 %v1601_v12, %v1543_v35  ;;  %v1612_v34 = vmul.f32 %v2603_v10, %v1611_v56  ;;  %v1613_v31 = vmul.f32 %v2604_v39, %v1611_v56  ;;  %v2609_v45 = vld [vmem:[#allocation3 + $0x1a0] sm:$0xff] }
 0x16e   :  { %v1618_v16 = vmul.f32 %v2603_v10, %v1617_v24  ;;  %v1619_v7 = vmul.f32 %v2604_v39, %v1617_v24  ;;  %v1635_v26 = vstv %s4453_s13  ;;  %v1641_v54 = vstv %s4455_s14  ;;  %s4547_s13 = sld [smem:[#allocation7 + $0x7c]]  ;;  %s4549_s14 = sld [smem:[#allocation7 + $0x7d]] }
 0x16f   :  { %v1614_v33 = vadd.f32 %v1612_v34, %v1578_v50  ;;  %v1615_v21 = vadd.f32 %v1613_v31, %v1579_v11  ;;  %v1636_v30 = vmul.f32 %v2605_v58, %v1635_v26  ;;  %v1637_v23 = vmul.f32 %v1635_v26, %v5092_v28  ;;  %v5093_v50 = vld [vmem:[#allocation65_spill] sm:$0xff] }
 0x170   :  { %v1620_v40 = vadd.f32 %v1618_v16, %v1584_v37  ;;  %v1621_v38 = vadd.f32 %v1619_v7, %v1585_v49  ;;  %v1642_v22 = vmul.f32 %v2605_v58, %v1641_v54  ;;  %v1643_v4 = vmul.f32 %v1641_v54, %v5092_v28 }
 0x171   :  { %v1638_v51 = vadd.f32 %v1636_v30, %v1614_v33  ;;  %v1639_v18 = vadd.f32 %v1637_v23, %v1615_v21  ;;  %v1653_v41 = vstv %s4463_s23  ;;  %v1659_v15 = vstv %s4465_s15  ;;  %s4555_s23 = sld [smem:[#allocation7 + $0x7f]]  ;;  %s4557_s15 = sld [smem:[#allocation7 + $0x80]] }
 0x172   :  { %v1644_v3 = vadd.f32 %v1642_v22, %v1620_v40  ;;  %v1645_v20 = vadd.f32 %v1643_v4, %v1621_v38  ;;  %v1654_v0 = vmul.f32 %v2606_v27, %v1653_v41  ;;  %v1655_v17 = vmul.f32 %v2607_v13, %v1653_v41  ;;  %v2611_v22 = vld [vmem:[#allocation3 + $0x1b1] sm:$0xff] }
 0x173   :  { %v1660_v62 = vmul.f32 %v2606_v27, %v1659_v15  ;;  %v1661_v63 = vmul.f32 %v2607_v13, %v1659_v15  ;;  %v1671_v9 = vstv %s4467_s16  ;;  %v1677_v35 = vstv %s4469_s2  ;;  %s4561_s16 = sld [smem:[#allocation7 + $0x82]]  ;;  %s4563_s2 = sld [smem:[#allocation7 + $0x83]] }
 0x174   :  { %v1656_v43 = vadd.f32 %v1654_v0, %v1596_v42  ;;  %v1657_v25 = vadd.f32 %v1655_v17, %v1597_v2  ;;  %v1672_v52 = vmul.f32 %v2606_v27, %v1671_v9  ;;  %v1673_v60 = vmul.f32 %v2607_v13, %v1671_v9  ;;  %v2610_v42 = vld [vmem:[#allocation3 + $0x1a8] sm:$0xff]  ;;  %v2612_v9 = vld [vmem:[#allocation3 + $0x1b0] sm:$0xff] }
 0x175   :  { %v1662_v47 = vadd.f32 %v1660_v62, %v1602_v55  ;;  %v1663_v48 = vadd.f32 %v1661_v63, %v1603_v6  ;;  %v1678_v61 = vmul.f32 %v2606_v27, %v1677_v35  ;;  %v1679_v5 = vmul.f32 %v2607_v13, %v1677_v35 }
 0x176   :  { %v1674_v14 = vadd.f32 %v1672_v52, %v1638_v51  ;;  %v1675_v29 = vadd.f32 %v1673_v60, %v1639_v18  ;;  %v1695_v36 = vstv %s4475_s17  ;;  %v1701_v46 = vstv %s4477_s18  ;;  %v5094_v51 = vld [vmem:[#allocation16_spill] sm:$0xff]  ;;  %s4569_s17 = sld [smem:[#allocation7 + $0x85]]  ;;  %s4571_s18 = sld [smem:[#allocation7 + $0x86]] }
 0x177   :  { %v1680_v59 = vadd.f32 %v1678_v61, %v1644_v3  ;;  %v1681_v32 = vadd.f32 %v1679_v5, %v1645_v20  ;;  %v1696_v44 = vmul.f32 %v2608_v8, %v1695_v36  ;;  %v1697_v11 = vmul.f32 %v1695_v36, %v5093_v50 }
 0x178   :  { %v1702_v10 = vmul.f32 %v2608_v8, %v1701_v46  ;;  %v1703_v1 = vmul.f32 %v1701_v46, %v5093_v50  ;;  %v1713_v39 = vstv %s4481_s19  ;;  %v1719_v53 = vstv %s4483_s20  ;;  %s4573_s19 = sld [smem:[#allocation7 + $0x88]]  ;;  %s4575_s20 = sld [smem:[#allocation7 + $0x89]] }
 0x179   :  { %v1698_v37 = vadd.f32 %v1696_v44, %v1674_v14  ;;  %v1699_v49 = vadd.f32 %v1697_v11, %v1675_v29  ;;  %v1714_v12 = vmul.f32 %v2609_v45, %v1713_v39  ;;  %v1715_v2 = vmul.f32 %v2610_v42, %v1713_v39  ;;  %v2614_v39 = vld [vmem:[#allocation3 + $0x1c1] sm:$0xff] }
 0x17a   :  { %v1704_v56 = vadd.f32 %v1702_v10, %v1680_v59  ;;  %v1705_v24 = vadd.f32 %v1703_v1, %v1681_v32  ;;  %v1720_v55 = vmul.f32 %v2609_v45, %v1719_v53  ;;  %v1721_v6 = vmul.f32 %v2610_v42, %v1719_v53 }
 0x17b   :  { %v1716_v34 = vadd.f32 %v1714_v12, %v1656_v43  ;;  %v1717_v31 = vadd.f32 %v1715_v2, %v1657_v25  ;;  %v1731_v16 = vstv %s4489_s21  ;;  %v1737_v7 = vstv %s4491_s22  ;;  %v2613_v43 = vld [vmem:[#allocation3 + $0x1b8] sm:$0xff]  ;;  %s4583_s21 = sld [smem:[#allocation7 + $0x8b]]  ;;  %s4585_s22 = sld [smem:[#allocation7 + $0x8c]] }
 0x17c   :  { %v1722_v26 = vadd.f32 %v1720_v55, %v1662_v47  ;;  %v1723_v54 = vadd.f32 %v1721_v6, %v1663_v48  ;;  %v1732_v33 = vmul.f32 %v2609_v45, %v1731_v16  ;;  %v1733_v21 = vmul.f32 %v2610_v42, %v1731_v16  ;;  %v2615_v55 = vld [vmem:[#allocation3 + $0x1c0] sm:$0xff] }
 0x17d   :  { %v1738_v58 = vmul.f32 %v2609_v45, %v1737_v7  ;;  %v1739_v30 = vmul.f32 %v2610_v42, %v1737_v7  ;;  %v1755_v28 = vstv %s4493_s24  ;;  %v1761_v23 = vstv %s4495_s26  ;;  %s4587_s24 = sld [smem:[#allocation7 + $0x8e]]  ;;  %s4589_s26 = sld [smem:[#allocation7 + $0x8f]] }
 0x17e   :  { %v1734_v40 = vadd.f32 %v1732_v33, %v1698_v37  ;;  %v1735_v38 = vadd.f32 %v1733_v21, %v1699_v49  ;;  %v1756_v4 = vmul.f32 %v2611_v22, %v1755_v28  ;;  %v1757_v18 = vmul.f32 %v1755_v28, %v5094_v51  ;;  %v5095_v37 = vld [vmem:[#allocation73_spill] sm:$0xff] }
 0x17f   :  { %v1740_v41 = vadd.f32 %v1738_v58, %v1704_v56  ;;  %v1741_v15 = vadd.f32 %v1739_v30, %v1705_v24  ;;  %v1762_v3 = vmul.f32 %v2611_v22, %v1761_v23  ;;  %v1763_v20 = vmul.f32 %v1761_v23, %v5094_v51 }
 0x180   :  { %v1758_v27 = vadd.f32 %v1756_v4, %v1734_v40  ;;  %v1759_v0 = vadd.f32 %v1757_v18, %v1735_v38  ;;  %v1773_v13 = vstv %s4503_s27  ;;  %v1779_v17 = vstv %s4505_s28  ;;  %s2693_s27 = smov [#allocation8]  }
 0x181   :  { %v1764_v62 = vadd.f32 %v1762_v3, %v1740_v41  ;;  %v1765_v63 = vadd.f32 %v1763_v20, %v1741_v15  ;;  %v1774_v35 = vmul.f32 %v2612_v9, %v1773_v13  ;;  %v1775_v25 = vmul.f32 %v2613_v43, %v1773_v13  ;;  %v2617_v3 = vld [vmem:[#allocation3 + $0x1d1] sm:$0xff]  ;;  %s2149_s28 = sshll.u32 %s2693_s27, 4  ;;  %s2150_s28 = int_to_ptr.vmem [resolvable:$true] %s2149_s28 }
 0x182   :  { %v1780_v52 = vmul.f32 %v2612_v9, %v1779_v17  ;;  %v1781_v60 = vmul.f32 %v2613_v43, %v1779_v17  ;;  %v1791_v47 = vstv %s4507_s29  ;;  %v1797_v48 = vstv %s4509_s30  ;;  %s2660_s29 = scalar_lea.vmem %s2150_s28, 2048  ;;  %p2665_p0 = scmp.lt.s32.totalorder %s2150_s28, %s2150_s28 }
 0x183   :  { %v1776_v61 = vadd.f32 %v1774_v35, %v1716_v34  ;;  %v1777_v5 = vadd.f32 %v1775_v25, %v1717_v31  ;;  %v1792_v14 = vmul.f32 %v2612_v9, %v1791_v47  ;;  %v1793_v29 = vmul.f32 %v2613_v43, %v1791_v47  ;;  %v2616_v34 = vld [vmem:[#allocation3 + $0x1c8] sm:$0xff]  ;;  %v2618_v47 = vld [vmem:[#allocation3 + $0x1d0] sm:$0xff]  ;;  %p2661_p13 = scmp.ne.s32.totalorder %s2150_s28, %s2660_s29  ;;  %p2666_p1 = scmp.lt.s32.totalorder %s2660_s29, %s2660_s29 }
 0x184   :  { %v1782_v36 = vadd.f32 %v1780_v52, %v1722_v26  ;;  %v1783_v46 = vadd.f32 %v1781_v60, %v1723_v54  ;;  %v1798_v59 = vmul.f32 %v2612_v9, %v1797_v48  ;;  %v1799_v32 = vmul.f32 %v2613_v43, %v1797_v48 }
 0x185   :  { %v1794_v8 = vadd.f32 %v1792_v14, %v1758_v27  ;;  %v1795_v44 = vadd.f32 %v1793_v29, %v1759_v0  ;;  %v1815_v50 = vstv %s4515_s4  ;;  %v1821_v11 = vstv %s4517_s5  ;;  %v5096_v27 = vld [vmem:[#allocation22_spill] sm:$0xff]  ;;  %p2667_p2 = por %p2666_p1, %p2665_p0 }
 0x186   :  { %v1800_v10 = vadd.f32 %v1798_v59, %v1764_v62  ;;  %v1801_v1 = vadd.f32 %v1799_v32, %v1765_v63  ;;  %v1816_v53 = vmul.f32 %v2614_v39, %v1815_v50  ;;  %v1817_v49 = vmul.f32 %v1815_v50, %v5095_v37 }
 0x187   :  { %v1822_v45 = vmul.f32 %v2614_v39, %v1821_v11  ;;  %v1823_v12 = vmul.f32 %v1821_v11, %v5095_v37  ;;  %v1833_v42 = vstv %s4521_s6  ;;  %v1839_v2 = vstv %s4523_s0  ;;  %p2668_p3 = pnand %p2667_p2, %p2661_p13 }
 0x188   :  { %v1818_v56 = vadd.f32 %v1816_v53, %v1794_v8  ;;  %v1819_v24 = vadd.f32 %v1817_v49, %v1795_v44  ;;  %v1834_v6 = vmul.f32 %v2615_v55, %v1833_v42  ;;  %v1835_v31 = vmul.f32 %v2616_v34, %v1833_v42  ;;  %v2620_v42 = vld [vmem:[#allocation3 + $0x1e1] sm:$0xff] }
 0x189   :  { %v1824_v16 = vadd.f32 %v1822_v45, %v1800_v10  ;;  %v1825_v7 = vadd.f32 %v1823_v12, %v1801_v1  ;;  %v1840_v26 = vmul.f32 %v2615_v55, %v1839_v2  ;;  %v1841_v54 = vmul.f32 %v2616_v34, %v1839_v2 }
 0x18a   :  { %v1836_v33 = vadd.f32 %v1834_v6, %v1776_v61  ;;  %v1837_v21 = vadd.f32 %v1835_v31, %v1777_v5  ;;  %v1851_v58 = vstv %s4529_s7  ;;  %v1857_v30 = vstv %s4531_s8  ;;  %v2619_v61 = vld [vmem:[#allocation3 + $0x1d8] sm:$0xff] }
 0x18b   :  { %v1842_v28 = vadd.f32 %v1840_v26, %v1782_v36  ;;  %v1843_v23 = vadd.f32 %v1841_v54, %v1783_v46  ;;  %v1852_v40 = vmul.f32 %v2615_v55, %v1851_v58  ;;  %v1853_v38 = vmul.f32 %v2616_v34, %v1851_v58  ;;  %v2621_v26 = vld [vmem:[#allocation3 + $0x1e0] sm:$0xff] }
 0x18c   :  { %v1858_v22 = vmul.f32 %v2615_v55, %v1857_v30  ;;  %v1859_v4 = vmul.f32 %v2616_v34, %v1857_v30  ;;  %v1875_v51 = vstv %s4533_s9  ;;  %v1881_v18 = vstv %s4535_s10 }
 0x18d   :  { %v1854_v41 = vadd.f32 %v1852_v40, %v1818_v56  ;;  %v1855_v15 = vadd.f32 %v1853_v38, %v1819_v24  ;;  %v1876_v20 = vmul.f32 %v2617_v3, %v1875_v51  ;;  %v1877_v0 = vmul.f32 %v1875_v51, %v5096_v27  ;;  %v5097_v56 = vld [vmem:[#allocation30_spill] sm:$0xff] }
 0x18e   :  { %v1860_v13 = vadd.f32 %v1858_v22, %v1824_v16  ;;  %v1861_v17 = vadd.f32 %v1859_v4, %v1825_v7  ;;  %v1882_v62 = vmul.f32 %v2617_v3, %v1881_v18  ;;  %v1883_v63 = vmul.f32 %v1881_v18, %v5096_v27 }
 0x18f   :  { %v1878_v9 = vadd.f32 %v1876_v20, %v1854_v41  ;;  %v1879_v35 = vadd.f32 %v1877_v0, %v1855_v15  ;;  %v1893_v43 = vstv %s4543_s11  ;;  %v1899_v25 = vstv %s4545_s12 }
 0x190   :  { %v1884_v52 = vadd.f32 %v1882_v62, %v1860_v13  ;;  %v1885_v60 = vadd.f32 %v1883_v63, %v1861_v17  ;;  %v1894_v48 = vmul.f32 %v2618_v47, %v1893_v43  ;;  %v1895_v5 = vmul.f32 %v2619_v61, %v1893_v43  ;;  %v2623_v62 = vld [vmem:[#allocation3 + $0x1f1] sm:$0xff]  ;;  %v2066_v43 = vpop.permute.xlu0 %2065 }
 0x191   :  { %v1900_v14 = vmul.f32 %v2618_v47, %v1899_v25  ;;  %v1901_v29 = vmul.f32 %v2619_v61, %v1899_v25  ;;  %v1911_v36 = vstv %s4547_s13  ;;  %v1917_v46 = vstv %s4549_s14 }
 0x192   :  { %v1896_v59 = vadd.f32 %v1894_v48, %v1836_v33  ;;  %v1897_v32 = vadd.f32 %v1895_v5, %v1837_v21  ;;  %v1912_v8 = vmul.f32 %v2618_v47, %v1911_v36  ;;  %v1913_v44 = vmul.f32 %v2619_v61, %v1911_v36  ;;  %v2622_v33 = vld [vmem:[#allocation3 + $0x1e8] sm:$0xff] }
 0x193   :  { %v1902_v50 = vadd.f32 %v1900_v14, %v1842_v28  ;;  %v1903_v11 = vadd.f32 %v1901_v29, %v1843_v23  ;;  %v1918_v10 = vmul.f32 %v2618_v47, %v1917_v46  ;;  %v1919_v1 = vmul.f32 %v2619_v61, %v1917_v46  ;;  %v2624_v46 = vld [vmem:[#allocation3 + $0x1f0] sm:$0xff] }
 0x194   :  { %v1914_v39 = vadd.f32 %v1912_v8, %v1878_v9  ;;  %v1915_v53 = vadd.f32 %v1913_v44, %v1879_v35  ;;  %v1935_v37 = vstv %s4555_s23  ;;  %v1941_v49 = vstv %s4557_s15  ;;  %v5098_v9 = vld [vmem:[#allocation27_spill] sm:$0xff] }
 0x195   :  { %v1920_v45 = vadd.f32 %v1918_v10, %v1884_v52  ;;  %v1921_v12 = vadd.f32 %v1919_v1, %v1885_v60  ;;  %v1936_v2 = vmul.f32 %v2620_v42, %v1935_v37  ;;  %v1937_v24 = vmul.f32 %v1935_v37, %v5097_v56 }
 0x196   :  { %v1942_v55 = vmul.f32 %v2620_v42, %v1941_v49  ;;  %v1943_v6 = vmul.f32 %v1941_v49, %v5097_v56  ;;  %v1953_v34 = vstv %s4561_s16  ;;  %v1959_v31 = vstv %s4563_s2  ;;  %v2116_v56 = vpop.permute.xlu0 %2115 }
 0x197   :  { %v1938_v16 = vadd.f32 %v1936_v2, %v1914_v39  ;;  %v1939_v7 = vadd.f32 %v1937_v24, %v1915_v53  ;;  %v1954_v54 = vmul.f32 %v2621_v26, %v1953_v34  ;;  %v1955_v21 = vmul.f32 %v2622_v33, %v1953_v34  ;;  %v2118_v2 = vpop.permute.xlu1 %2117 }
 0x198   :  { %v1944_v58 = vadd.f32 %v1942_v55, %v1920_v45  ;;  %v1945_v30 = vadd.f32 %v1943_v6, %v1921_v12  ;;  %v1960_v28 = vmul.f32 %v2621_v26, %v1959_v31  ;;  %v1961_v23 = vmul.f32 %v2622_v33, %v1959_v31 }
 0x199   :  { %v1956_v40 = vadd.f32 %v1954_v54, %v1896_v59  ;;  %v1957_v38 = vadd.f32 %v1955_v21, %v1897_v32  ;;  %v1971_v22 = vstv %s4569_s17  ;;  %v1977_v4 = vstv %s4571_s18  ;;  %v2625_v32 = vld [vmem:[#allocation3 + $0x1f8] sm:$0xff] }
 0x19a   :  { %v1962_v51 = vadd.f32 %v1960_v28, %v1902_v50  ;;  %v1963_v18 = vadd.f32 %v1961_v23, %v1903_v11  ;;  %v1972_v41 = vmul.f32 %v2621_v26, %v1971_v22  ;;  %v1973_v15 = vmul.f32 %v2622_v33, %v1971_v22 }
 0x19b   :  { %v1978_v3 = vmul.f32 %v2621_v26, %v1977_v4  ;;  %v1979_v20 = vmul.f32 %v2622_v33, %v1977_v4  ;;  %v1995_v27 = vstv %s4573_s19  ;;  %v2001_v0 = vstv %s4575_s20 }
 0x19c   :  { %v1974_v13 = vadd.f32 %v1972_v41, %v1938_v16  ;;  %v1975_v17 = vadd.f32 %v1973_v15, %v1939_v7  ;;  %v1996_v63 = vmul.f32 %v2623_v62, %v1995_v27  ;;  %v1997_v35 = vmul.f32 %v1995_v27, %v5098_v9 }
 0x19d   :  { %v1980_v25 = vadd.f32 %v1978_v3, %v1944_v58  ;;  %v1981_v52 = vadd.f32 %v1979_v20, %v1945_v30  ;;  %v2002_v60 = vmul.f32 %v2623_v62, %v2001_v0  ;;  %v2003_v47 = vmul.f32 %v2001_v0, %v5098_v9 }
 0x19e   :  { %v1998_v48 = vadd.f32 %v1996_v63, %v1974_v13  ;;  %v1999_v61 = vadd.f32 %v1997_v35, %v1975_v17  ;;  %v2013_v5 = vstv %s4583_s21  ;;  %v2019_v14 = vstv %s4585_s22 }
 0x19f   :  { %v2004_v29 = vadd.f32 %v2002_v60, %v1980_v25  ;;  %v2005_v36 = vadd.f32 %v2003_v47, %v1981_v52  ;;  %v2014_v59 = vmul.f32 %v2624_v46, %v2013_v5  ;;  %v2015_v8 = vmul.f32 %v2625_v32, %v2013_v5 }
 0x1a0   :  { %v2020_v44 = vmul.f32 %v2624_v46, %v2019_v14  ;;  %v2021_v50 = vmul.f32 %v2625_v32, %v2019_v14  ;;  %v2031_v11 = vstv %s4587_s24  ;;  %v2037_v10 = vstv %s4589_s26 }
 0x1a1   :  { %v2016_v1 = vadd.f32 %v2014_v59, %v1956_v40  ;;  %v2017_v39 = vadd.f32 %v2015_v8, %v1957_v38  ;;  %v2032_v53 = vmul.f32 %v2624_v46, %v2031_v11  ;;  %v2033_v37 = vmul.f32 %v2625_v32, %v2031_v11 }
 0x1a2   :  { %v2022_v49 = vadd.f32 %v2020_v44, %v1962_v51  ;;  %v2023_v45 = vadd.f32 %v2021_v50, %v1963_v18  ;;  %v2038_v12 = vmul.f32 %v2624_v46, %v2037_v10  ;;  %v2039_v42 = vmul.f32 %v2625_v32, %v2037_v10 }
 0x1a3   :  { %v2034_v24 = vadd.f32 %v2032_v53, %v1998_v48  ;;  %v2035_v55 = vadd.f32 %v2033_v37, %v1999_v61  ;;  %v2044_v6 = vadd.f32 %v2016_v1, %v4256_v57  ;;  %v2045_v34 = vadd.f32 %v2017_v39, %v4256_v57 }
 0x1a4   :  { %v2040_v31 = vadd.f32 %v2038_v12, %v2004_v29  ;;  %v2041_v16 = vadd.f32 %v2039_v42, %v2005_v36  ;;  %v2071_v7 = vsel %vm1020_vm1, %v2066_v43, 0.0  ;;  %v2072_v26 = vsel %vm1020_vm1, %v4238_v19, 0.0 }
 0x1a5   :  { %v2456_v54 = vmul.f32 -1.442695, %v2044_v6  ;;  %v2457_v33 = vmul.f32 -1.442695, %v2045_v34  ;;  %v2073_v21 = vadd.f32 %v2071_v7, %v2022_v49  ;;  %v2074_v58 = vadd.f32 %v2072_v26, %v2023_v45 }
 0x1a6   :  { %v2094_v30 = vadd.f32 %v2034_v24, %v4256_v57  ;;  %v2095_v28 = vadd.f32 %v2035_v55, %v4256_v57  ;;  %v2121_v23 = vsel %vm1020_vm1, %v2116_v56, 0.0  ;;  %v2122_v40 = vsel %vm1020_vm1, %v2118_v2, 0.0 }
 0x1a7   :  { %2502 = vpow2.f32 %v2456_v54  ;;  %v2075_v38 = vadd.f32 %v2073_v21, %v4256_v57  ;;  %v2076_v22 = vadd.f32 %v2074_v58, %v4256_v57  ;;  %v2123_v4 = vadd.f32 %v2121_v23, %v2040_v31 }
 0x1a8   :  { %2504 = vpow2.f32 %v2457_v33  ;;  %v2460_v19 = vmul.f32 -1.442695, %v2094_v30  ;;  %v2124_v51 = vadd.f32 %v2122_v40, %v2041_v16  ;;  %v2461_v15 = vmul.f32 -1.442695, %v2095_v28 }
 0x1a9   :  { %v2458_v18 = vmul.f32 -1.442695, %v2075_v38  ;;  %v2459_v41 = vmul.f32 -1.442695, %v2076_v22  ;;  %v2125_v3 = vadd.f32 %v2123_v4, %v4256_v57 }
 0x1aa   :  { %2506 = vpow2.f32 %v2460_v19  ;;  %v2126_v20 = vadd.f32 %v2124_v51, %v4256_v57 }
 0x1ab   :  { %2508 = vpow2.f32 %v2458_v18  ;;  %v2462_v27 = vmul.f32 -1.442695, %v2125_v3 }
 0x1ac   :  { %2510 = vpow2.f32 %v2459_v41  ;;  %v2463_v0 = vmul.f32 -1.442695, %v2126_v20 }
 0x1ad   :  { %2512 = vpow2.f32 %v2461_v15 }
 0x1ae   :  { %2514 = vpow2.f32 %v2462_v27 }
 0x1af   :  { %2516 = vpow2.f32 %v2463_v0 }
 0x1b1   :  { %v2503_v13 = vpop.eup %2502 }
 0x1b2   :  { %v2505_v17 = vpop.eup %2504  ;;  %v2052_v62 = vadd.f32 1.0, %v2503_v13 }
 0x1b3   :  { %v2053_v63 = vadd.f32 1.0, %v2505_v17 }
 0x1b4   :  { %v2507_v9 = vpop.eup %2506  ;;  %2518 = vrcp.f32 %v2052_v62 }
 0x1b5   :  { %v2509_v35 = vpop.eup %2508  ;;  %2520 = vrcp.f32 %v2053_v63  ;;  %v2102_v43 = vadd.f32 1.0, %v2507_v9 }
 0x1b6   :  { %v2511_v25 = vpop.eup %2510  ;;  %v2083_v52 = vadd.f32 1.0, %v2509_v35 }
 0x1b7   :  { %v2513_v60 = vpop.eup %2512  ;;  %v2084_v57 = vadd.f32 1.0, %v2511_v25  ;;  %2522 = vrcp.f32 %v2102_v43 }
 0x1b8   :  { %v2515_v47 = vpop.eup %2514  ;;  %2524 = vrcp.f32 %v2083_v52  ;;  %v2103_v48 = vadd.f32 1.0, %v2513_v60 }
 0x1b9   :  { %v2517_v61 = vpop.eup %2516  ;;  %2526 = vrcp.f32 %v2084_v57  ;;  %v2133_v5 = vadd.f32 1.0, %v2515_v47 }
 0x1ba   :  { %2528 = vrcp.f32 %v2103_v48  ;;  %v2134_v14 = vadd.f32 1.0, %v2517_v61 }
 0x1bb   :  { %2530 = vrcp.f32 %v2133_v5 }
 0x1bc   :  { %2532 = vrcp.f32 %v2134_v14 }
 0x1be   :  { %v2519_v29 = vpop.eup %2518 }
 0x1bf   :  { %v2521_v36 = vpop.eup %2520  ;;  %v2058_v46 = vmul.f32 256.0, %v2519_v29 }
 0x1c0   :  { %v2059_v59 = vmul.f32 256.0, %v2521_v36 }
 0x1c1   :  { %v2523_v32 = vpop.eup %2522  ;;  %2061 = vst.msk [vmem:[#allocation8 + $0x40] sm:$0xff] %vm1009_vm2, %v2058_v46 }
 0x1c2   :  { %v2525_v8 = vpop.eup %2524  ;;  %2062 = vst.msk [vmem:[#allocation8 + $0x48] sm:$0xff] %vm1009_vm2, %v2059_v59  ;;  %v2108_v44 = vmul.f32 256.0, %v2523_v32 }
 0x1c3   :  { %v2527_v50 = vpop.eup %2526  ;;  %v2089_v11 = vmul.f32 256.0, %v2525_v8 }
 0x1c4   :  { %v2529_v10 = vpop.eup %2528  ;;  %v2090_v1 = vmul.f32 256.0, %v2527_v50  ;;  %2111 = vst.msk [vmem:[#allocation8 + $0x60] sm:$0xff] %vm1009_vm2, %v2108_v44 }
 0x1c5   :  { %v2531_v39 = vpop.eup %2530  ;;  %2092 = vst.msk [vmem:[#allocation8 + $0x50] sm:$0xff] %vm1009_vm2, %v2089_v11  ;;  %v2109_v53 = vmul.f32 256.0, %v2529_v10 }
 0x1c6   :  { %v2533_v37 = vpop.eup %2532  ;;  %2093 = vst.msk [vmem:[#allocation8 + $0x58] sm:$0xff] %vm1009_vm2, %v2090_v1  ;;  %v2139_v49 = vmul.f32 256.0, %v2531_v39 }
 0x1c7   :  { %2112 = vst.msk [vmem:[#allocation8 + $0x68] sm:$0xff] %vm1009_vm2, %v2109_v53  ;;  %v2140_v45 = vmul.f32 256.0, %v2533_v37 }
 0x1c8   :  { %2142 = vst.msk [vmem:[#allocation8 + $0x70] sm:$0xff] %vm1009_vm2, %v2139_v49 }
 0x1c9   :  { %2143 = vst.msk [vmem:[#allocation8 + $0x78] sm:$0xff] %vm1009_vm2, %v2140_v45 }
 0x1ca   :  { %2671 = shalt.err (!%p2668_p3)
}
 0x1cb   :  { %s2672_s5 = scalar_lea.hbm %s4640_s3, 2048 }
 0x1cc   :  { %p2673_p4 = scmp.ne.s32.totalorder %s4640_s3, %s2672_s5  ;;  %p2676_p5 = scmp.lt.u32.totalorder %s2672_s5, %s4640_s3 }
 0x1ce   :  { %p2678_p6 = pnand %p2676_p5, %p2673_p4 }
 0x1d0   :  { %2681 = shalt.err (!%p2678_p6)
}
 0x1d1   :  { %2155 = dma.vmem_to_hbm [thread:$0]  %s2150_s28, 2048, %s4640_s3, [#allocation5], %s2689_s1, %s2689_s1, %s2690_s25  }
 0x1d2   :  { %2686 = dma.done.wait [#allocation5], 2048  }
 0x1d3   :  { %2687 = vsyncadd [#allocation5], 4294965248 }
 0x1d4   :  { %2159 = vsyncpa [#allocation4], 1 }
 0x1d5   :  { %2160 = vsyncpa [#allocation5], 1 }
 0x1d6   :  { %2161 = vsyncpa [#allocation6], 1 }

</bundles_post_ra>
